<compile_context>
chip_gen: v5e
topology: v5e:2x2
jax: 0.10.0
libtpu: 0.0.40
codegen_flags: <defaults>
</compile_context>

<pallas_src>
import functools

import jax
import jax.numpy as jnp
from jax import lax
from jax.experimental import pallas as pl
from jax.experimental.pallas import tpu as pltpu


# ---------------------------------------------------------------------------
# Kernels
# ---------------------------------------------------------------------------


def _conv_tile(xm_ref, xh0_ref, xh1_ref, w_ref, *, fold):
    """f32 conv accumulator of shape (TH*W, CoutP) for the current row tile."""
    TH = xm_ref.shape[1]
    Wk = xm_ref.shape[2]          # folded: W ; unfolded: W + 2
    Ck = xm_ref.shape[3]          # folded: 3*Cin ; unfolded: Cin
    CoutP = w_ref.shape[-1]
    W = Wk if fold else Wk - 2

    # (TH+2, Wk, Ck) halo tile in VMEM: main rows + two extra rows below.
    # TODO(synk): an overlapping pl.Element window on the H axis would avoid this copy.
    halo = jnp.concatenate([xm_ref[0], xh0_ref[0], xh1_ref[0]], axis=0)

    acc = jnp.zeros((TH * W, CoutP), jnp.float32)
    if fold:
        # dx taps pre-folded into Ck = 3*Cin in the wrapper -> 3 matmuls, K = 3*Cin.
        for dy in range(3):
            lhs = halo[dy:dy + TH].reshape(TH * W, Ck)
            acc = acc + jnp.dot(lhs, w_ref[dy], preferred_element_type=jnp.float32)
    else:
        # Large Cin: K = Cin already feeds the MXU; 9 shifted matmuls.
        for dy in range(3):
            for dx in range(3):
                lhs = halo[dy:dy + TH, dx:dx + W, :].reshape(TH * W, Ck)
                acc = acc + jnp.dot(lhs, w_ref[dy * 3 + dx],
                                    preferred_element_type=jnp.float32)
    return acc


def _conv_stats_kernel(xm_ref, xh0_ref, xh1_ref, w_ref, psum_ref, pssq_ref, *, fold):
    """Pass 1: per-tile partial channel sums of the pre-BN conv output."""
    acc = _conv_tile(xm_ref, xh0_ref, xh1_ref, w_ref, fold=fold)
    psum_ref[0, 0] = jnp.sum(acc, axis=0, keepdims=True)
    pssq_ref[0, 0] = jnp.sum(acc * acc, axis=0, keepdims=True)


def _conv_apply_kernel(xm_ref, xh0_ref, xh1_ref, w_ref, scale_ref, shift_ref, o_ref,
                       *, neg_slope, fold):
    """Pass 2: recompute conv for the tile, apply BN (global stats) + activation."""
    TH, W, CoutP = o_ref.shape[1], o_ref.shape[2], o_ref.shape[3]
    acc = _conv_tile(xm_ref, xh0_ref, xh1_ref, w_ref, fold=fold)
    y = acc * scale_ref[...] + shift_ref[...]
    y = jnp.where(y > 0, y, y * neg_slope)        # neg_slope = 0.0 -> plain ReLU
    o_ref[0] = y.reshape(TH, W, CoutP).astype(o_ref.dtype)


# ---------------------------------------------------------------------------
# Wrapper
# ---------------------------------------------------------------------------


def _vmem_limit_bytes():
    """Generation-aware scoped-VMEM limit (v7x: 64 MiB physical, v5e/v6e: 128 MiB)."""
    try:
        cap = pltpu.get_tpu_info().vmem_capacity_bytes
    except Exception:
        cap = 64 * 1024 * 1024                    # conservative default (v7x-sized)
    return int(min(cap * 3 // 4, 96 * 1024 * 1024))


def _pick_tile_h(H, Wk, ck, coutp, out_bytes, budget):
    """Largest divisor of H whose row-tile working set fits `budget` bytes of VMEM."""
    def lane(c):                                  # last dim is padded to 128 lanes in VMEM
        return ((c + 127) // 128) * 128
    in_row = Wk * lane(ck) * 2                    # bf16, lane-padded
    per_row = (5 * in_row                         # 2x-buffered main tile + halo + lhs staging
               + Wk * coutp * 4                   # f32 accumulator
               + 3 * Wk * coutp * out_bytes)      # activation staging + 2x-buffered output
    cap = max(1, int(budget // max(per_row, 1)))
    best = 1
    for d in range(1, H + 1):
        if H % d == 0 and d <= cap:
            best = d                              # largest divisor that fits (never full-H OOM)
    return best


def _conv3x3_bn_act(x_nhwc, w_oihw, gamma, beta, *, neg_slope, out_dtype,
                    keep_cpad=False, eps=1e-5):
    """3x3 conv (pad=1, no bias) + BatchNorm (batch stats) + (leaky-)ReLU via Pallas."""
    N, H, W, Cin = x_nhwc.shape
    Cout, WIn = w_oihw.shape[0], w_oihw.shape[1]
    CoutP = ((Cout + 127) // 128) * 128           # lane-dense output channels

    # Fold the dx taps into the channel dim for small Cin (K: Cin -> 3*Cin).  The fold is
    # materialized once in the wrapper (small-Cin tensor, amortized over both passes) so
    # the kernel needs no lane-dim concatenation at all.
    fold = Cin <= 64
    # TODO(synk): for Cin in [64, 128) a VMEM-side 9*Cin im2col would avoid the 3x HBM
    # inflation while still deepening K; for very deep layers a store-raw-conv + pure
    # normalize second pass would halve the MXU work.

    # --- weights: OIHW -> MXU layout, output channels zero-padded to 128 lanes ---------
    w = w_oihw
    if WIn < Cin:                                 # input may carry zero-padded channels
        w = jnp.pad(w, ((0, 0), (0, Cin - WIn), (0, 0), (0, 0)))
    w = jnp.pad(w, ((0, CoutP - Cout), (0, 0), (0, 0), (0, 0)))
    w = jnp.transpose(w, (2, 3, 1, 0))            # (ky, kx, Cin, CoutP)
    if fold:
        wk = w.reshape(3, 3 * Cin, CoutP).astype(jnp.bfloat16)   # w[dy, dx*Cin+c, o]
        Ck, Wk = 3 * Cin, W
    else:
        wk = w.reshape(9, Cin, CoutP).astype(jnp.bfloat16)       # w[dy*3+dx, c, o]
        Ck, Wk = Cin, W + 2

    # --- input: spatial zero-padding (+ optional dx fold), bf16 for the MXU ------------
    xp = jnp.pad(x_nhwc, ((0, 0), (1, 1), (1, 1), (0, 0)))
    if fold:
        xp = jnp.concatenate([xp[:, :, dx:dx + W, :] for dx in range(3)], axis=-1)
    xp = xp.astype(jnp.bfloat16)                  # (N, H+2, Wk, Ck)
    # TODO(synk): for tiny Cin a W-minor layout would avoid the 128-lane padding of Ck.

    vmem_limit = _vmem_limit_bytes()
    TH = _pick_tile_h(H, Wk, Ck, CoutP, jnp.dtype(out_dtype).itemsize, vmem_limit // 2)
    JT = H // TH

    x_specs = [
        # main row tile: padded rows [j*TH, (j+1)*TH)
        pl.BlockSpec((1, TH, Wk, Ck), lambda n, j: (n, j, 0, 0)),
        # two 1-row halo slices below the tile (block size 1 => block index == row)
        pl.BlockSpec((1, 1, Wk, Ck), lambda n, j: (n, (j + 1) * TH, 0, 0)),
        pl.BlockSpec((1, 1, Wk, Ck), lambda n, j: (n, (j + 1) * TH + 1, 0, 0)),
        # TODO(synk): add pipeline_mode=pl.Buffered(3) on the main tile if DMA is exposed.
    ]
    w_spec = pl.BlockSpec(wk.shape, lambda n, j: (0, 0, 0))      # resident weights
    cparams = pltpu.CompilerParams(
        dimension_semantics=("parallel", "parallel"),            # v7x: both TCs usable
        vmem_limit_bytes=vmem_limit)

    # --- pass 1: conv + per-tile partial BN statistics ----------------------------------
    psum, pssq = pl.pallas_call(
        functools.partial(_conv_stats_kernel, fold=fold),
        out_shape=(jax.ShapeDtypeStruct((N, JT, 1, CoutP), jnp.float32),
                   jax.ShapeDtypeStruct((N, JT, 1, CoutP), jnp.float32)),
        grid_spec=pltpu.PrefetchScalarGridSpec(
            num_scalar_prefetch=0, grid=(N, JT),
            in_specs=x_specs + [w_spec],
            out_specs=[pl.BlockSpec((1, 1, 1, CoutP), lambda n, j: (n, j, 0, 0)),
                       pl.BlockSpec((1, 1, 1, CoutP), lambda n, j: (n, j, 0, 0))]),
        compiler_params=cparams,
    )(xp, xp, xp, wk)

    # Finalize global batch statistics (tiny per-channel math, left to XLA).
    m = float(N * H * W)
    mean = jnp.sum(psum, axis=(0, 1, 2)) / m
    var = jnp.maximum(jnp.sum(pssq, axis=(0, 1, 2)) / m - mean * mean, 0.0)
    gp = jnp.pad(gamma.astype(jnp.float32), (0, CoutP - Cout))   # padded channels -> 0
    bp = jnp.pad(beta.astype(jnp.float32), (0, CoutP - Cout))
    inv = gp * lax.rsqrt(var + eps)
    scale = inv.reshape(1, CoutP)
    shift = (bp - mean * inv).reshape(1, CoutP)

    # --- pass 2: recompute conv, normalize + activation, lane-dense store ---------------
    out = pl.pallas_call(
        functools.partial(_conv_apply_kernel, neg_slope=neg_slope, fold=fold),
        out_shape=jax.ShapeDtypeStruct((N, H, W, CoutP), out_dtype),
        grid_spec=pltpu.PrefetchScalarGridSpec(
            num_scalar_prefetch=0, grid=(N, JT),
            in_specs=x_specs + [w_spec,
                                pl.BlockSpec((1, CoutP), lambda n, j: (0, 0)),
                                pl.BlockSpec((1, CoutP), lambda n, j: (0, 0))],
            out_specs=pl.BlockSpec((1, TH, W, CoutP), lambda n, j: (n, j, 0, 0))),
        compiler_params=cparams,
    )(xp, xp, xp, wk, scale, shift)

    # Padded output channels are exactly zero, so they can be handed to the next stage.
    if keep_cpad:
        return out
    return out[..., :Cout]


def double_conv_forward(x_nchw, params):
    """Forward pass of DoubleConv. Input/output are NCHW float32 (PyTorch convention)."""
    x = jnp.transpose(x_nchw, (0, 2, 3, 1))       # NCHW -> NHWC
    mid = params["w1"].shape[0]
    out_c = params["w2"].shape[0]

    # Keep the lane-padded channel dim between the stages only when the padding ratio is
    # small (<= 2x for mid >= 64); always slice back to the true channels at the very end.
    keep_pad = mid >= 64

    # conv1 -> BN1 -> ReLU          (bf16 inter-stage activation: halves HBM traffic)
    a1 = _conv3x3_bn_act(x, params["w1"], params["gamma1"], params["beta1"],
                         neg_slope=0.0, out_dtype=jnp.bfloat16, keep_cpad=keep_pad)
    # conv2 -> BN2 -> LeakyReLU(0.2)   (module's self.activate for activation='relu')
    # TODO(synk): activation='softmax' variant (Softmax over channels) not implemented.
    a2 = _conv3x3_bn_act(a1, params["w2"], params["gamma2"], params["beta2"],
                         neg_slope=0.2, out_dtype=jnp.float32, keep_cpad=False)

    del out_c
    return jnp.transpose(a2, (0, 3, 1, 2))        # NHWC -> NCHW


def init_params(key, in_channels, out_channels, mid_channels=None):
    if not mid_channels:
        mid_channels = out_channels
    k1, k2 = jax.random.split(key)
    # Conv weights (OIHW), no bias (matches nn.Conv2d(..., bias=False)).
    w1 = 0.1 * jax.random.normal(k1, (mid_channels, in_channels, 3, 3), jnp.float32)
    w2 = 0.1 * jax.random.normal(k2, (out_channels, mid_channels, 3, 3), jnp.float32)
    # BatchNorm affine params: PyTorch default init (gamma=1, beta=0).
    return dict(
        w1=w1, gamma1=jnp.ones((mid_channels,), jnp.float32),
        beta1=jnp.zeros((mid_channels,), jnp.float32),
        w2=w2, gamma2=jnp.ones((out_channels,), jnp.float32),
        beta2=jnp.zeros((out_channels,), jnp.float32),
    )


if __name__ == "__main__":
    key = jax.random.PRNGKey(0)
    kx, kp = jax.random.split(key)

    N, Cin, H, W = 2, 4, 16, 16
    Cout = 8

    x = jax.random.normal(kx, (N, Cin, H, W), jnp.float32)
    params = init_params(kp, Cin, Cout)

    fwd = jax.jit(double_conv_forward)
    y = jax.block_until_ready(fwd(x, params))

    assert y.shape == (N, Cout, H, W), y.shape
    assert bool(jnp.isfinite(y).all())
    print("KERNEL_OK")
</pallas_src>

<mosaic_0001>
module attributes {stable_mosaic.version = 11 : i64} {
  func.func @_conv_stats_kernel(%arg0: i32, %arg1: i32, %arg2: memref<1x16x16x12xbf16, #tpu.memory_space<vmem>>, %arg3: memref<1x1x16x12xbf16, #tpu.memory_space<vmem>>, %arg4: memref<1x1x16x12xbf16, #tpu.memory_space<vmem>>, %arg5: memref<3x12x128xbf16, #tpu.memory_space<vmem>>, %arg6: memref<1x1x1x128xf32, #tpu.memory_space<vmem>>, %arg7: memref<1x1x1x128xf32, #tpu.memory_space<vmem>>) attributes {dimension_semantics = [#tpu.dimension_semantics<parallel>, #tpu.dimension_semantics<parallel>], iteration_bounds = array<i64: 2, 1>, scalar_prefetch = 0 : i64, scratch_operands = 0 : i64, tpu.core_type = #tpu.core_type<tc>, window_params = [{transform_indices = @transform_0, window_bounds = array<i64: 1, 16, 16, 12>}, {transform_indices = @transform_1, window_bounds = array<i64: 1, 1, 16, 12>}, {transform_indices = @transform_2, window_bounds = array<i64: 1, 1, 16, 12>}, {pipeline_mode = #tpu.pipeline_mode<synchronous>, transform_indices = @transform_3, window_bounds = array<i64: 3, 12, 128>}, {transform_indices = @transform_4, window_bounds = array<i64: 1, 1, 1, 128>}, {transform_indices = @transform_5, window_bounds = array<i64: 1, 1, 1, 128>}]} {
    %c0 = arith.constant 0 : index
    %c0_0 = arith.constant 0 : index
    %c0_1 = arith.constant 0 : index
    %c0_2 = arith.constant 0 : index
    %0 = vector.load %arg2[%c0, %c0_0, %c0_1, %c0_2] : memref<1x16x16x12xbf16, #tpu.memory_space<vmem>>, vector<1x16x16x12xbf16>
    %1 = vector.shape_cast %0 : vector<1x16x16x12xbf16> to vector<16x16x12xbf16>
    %c0_3 = arith.constant 0 : index
    %c0_4 = arith.constant 0 : index
    %c0_5 = arith.constant 0 : index
    %c0_6 = arith.constant 0 : index
    %2 = vector.load %arg3[%c0_3, %c0_4, %c0_5, %c0_6] : memref<1x1x16x12xbf16, #tpu.memory_space<vmem>>, vector<1x1x16x12xbf16>
    %3 = vector.shape_cast %2 : vector<1x1x16x12xbf16> to vector<1x16x12xbf16>
    %c0_7 = arith.constant 0 : index
    %c0_8 = arith.constant 0 : index
    %c0_9 = arith.constant 0 : index
    %c0_10 = arith.constant 0 : index
    %4 = vector.load %arg4[%c0_7, %c0_8, %c0_9, %c0_10] : memref<1x1x16x12xbf16, #tpu.memory_space<vmem>>, vector<1x1x16x12xbf16>
    %5 = vector.shape_cast %4 : vector<1x1x16x12xbf16> to vector<1x16x12xbf16>
    %6 = tpu.concatenate %1, %3, %5 in 0 : vector<16x16x12xbf16>, vector<1x16x12xbf16>, vector<1x16x12xbf16> -> vector<18x16x12xbf16>
    %cst = arith.constant 0.000000e+00 : f32
    %7 = vector.broadcast %cst : f32 to vector<256x128xf32>
    %8 = vector.extract_strided_slice %6 {offsets = [0, 0, 0], sizes = [16, 16, 12], strides = [1, 1, 1]} : vector<18x16x12xbf16> to vector<16x16x12xbf16>
    %9 = vector.shape_cast %8 : vector<16x16x12xbf16> to vector<256x12xbf16>
    %c0_11 = arith.constant 0 : index
    %c0_12 = arith.constant 0 : index
    %c0_13 = arith.constant 0 : index
    %10 = vector.load %arg5[%c0_11, %c0_12, %c0_13] : memref<3x12x128xbf16, #tpu.memory_space<vmem>>, vector<1x12x128xbf16>
    %11 = vector.shape_cast %10 : vector<1x12x128xbf16> to vector<12x128xbf16>
    %cst_14 = arith.constant dense<0.000000e+00> : vector<256x128xf32>
    %12 = tpu.matmul %9, %11, %cst_14 {dimension_numbers = #tpu.dot_dimension_numbers<[1], [0], [0], [1], [0, 0, 1, 1], [], []>} : vector<256x12xbf16>, vector<12x128xbf16>, vector<256x128xf32> -> vector<256x128xf32>
    %13 = arith.addf %7, %12 : vector<256x128xf32>
    %14 = vector.extract_strided_slice %6 {offsets = [1, 0, 0], sizes = [16, 16, 12], strides = [1, 1, 1]} : vector<18x16x12xbf16> to vector<16x16x12xbf16>
    %15 = vector.shape_cast %14 : vector<16x16x12xbf16> to vector<256x12xbf16>
    %c1 = arith.constant 1 : index
    %c0_15 = arith.constant 0 : index
    %c0_16 = arith.constant 0 : index
    %16 = vector.load %arg5[%c1, %c0_15, %c0_16] : memref<3x12x128xbf16, #tpu.memory_space<vmem>>, vector<1x12x128xbf16>
    %17 = vector.shape_cast %16 : vector<1x12x128xbf16> to vector<12x128xbf16>
    %cst_17 = arith.constant dense<0.000000e+00> : vector<256x128xf32>
    %18 = tpu.matmul %15, %17, %cst_17 {dimension_numbers = #tpu.dot_dimension_numbers<[1], [0], [0], [1], [0, 0, 1, 1], [], []>} : vector<256x12xbf16>, vector<12x128xbf16>, vector<256x128xf32> -> vector<256x128xf32>
    %19 = arith.addf %13, %18 : vector<256x128xf32>
    %20 = vector.extract_strided_slice %6 {offsets = [2, 0, 0], sizes = [16, 16, 12], strides = [1, 1, 1]} : vector<18x16x12xbf16> to vector<16x16x12xbf16>
    %21 = vector.shape_cast %20 : vector<16x16x12xbf16> to vector<256x12xbf16>
    %c2 = arith.constant 2 : index
    %c0_18 = arith.constant 0 : index
    %c0_19 = arith.constant 0 : index
    %22 = vector.load %arg5[%c2, %c0_18, %c0_19] : memref<3x12x128xbf16, #tpu.memory_space<vmem>>, vector<1x12x128xbf16>
    %23 = vector.shape_cast %22 : vector<1x12x128xbf16> to vector<12x128xbf16>
    %cst_20 = arith.constant dense<0.000000e+00> : vector<256x128xf32>
    %24 = tpu.matmul %21, %23, %cst_20 {dimension_numbers = #tpu.dot_dimension_numbers<[1], [0], [0], [1], [0, 0, 1, 1], [], []>} : vector<256x12xbf16>, vector<12x128xbf16>, vector<256x128xf32> -> vector<256x128xf32>
    %25 = arith.addf %19, %24 : vector<256x128xf32>
    %cst_21 = arith.constant dense<0.000000e+00> : vector<128xf32>
    %26 = vector.multi_reduction <add>, %25, %cst_21 [0] : vector<256x128xf32> to vector<128xf32>
    %27 = vector.shape_cast %26 : vector<128xf32> to vector<1x128xf32>
    %c0_22 = arith.constant 0 : index
    %c0_23 = arith.constant 0 : index
    %c0_24 = arith.constant 0 : index
    %c0_25 = arith.constant 0 : index
    %28 = vector.load %arg6[%c0_22, %c0_23, %c0_24, %c0_25] : memref<1x1x1x128xf32, #tpu.memory_space<vmem>>, vector<1x1x1x128xf32>
    %29 = vector.shape_cast %28 : vector<1x1x1x128xf32> to vector<1x128xf32>
    %30 = vector.shape_cast %27 : vector<1x128xf32> to vector<1x1x1x128xf32>
    tpu.vector_store %arg6[%c0_22, %c0_23, %c0_24, %c0_25], %30 {strides = array<i32>} : memref<1x1x1x128xf32, #tpu.memory_space<vmem>>, vector<1x1x1x128xf32>,
    %31 = arith.mulf %25, %25 : vector<256x128xf32>
    %cst_26 = arith.constant dense<0.000000e+00> : vector<128xf32>
    %32 = vector.multi_reduction <add>, %31, %cst_26 [0] : vector<256x128xf32> to vector<128xf32>
    %33 = vector.shape_cast %32 : vector<128xf32> to vector<1x128xf32>
    %c0_27 = arith.constant 0 : index
    %c0_28 = arith.constant 0 : index
    %c0_29 = arith.constant 0 : index
    %c0_30 = arith.constant 0 : index
    %34 = vector.load %arg7[%c0_27, %c0_28, %c0_29, %c0_30] : memref<1x1x1x128xf32, #tpu.memory_space<vmem>>, vector<1x1x1x128xf32>
    %35 = vector.shape_cast %34 : vector<1x1x1x128xf32> to vector<1x128xf32>
    %36 = vector.shape_cast %33 : vector<1x128xf32> to vector<1x1x1x128xf32>
    tpu.vector_store %arg7[%c0_27, %c0_28, %c0_29, %c0_30], %36 {strides = array<i32>} : memref<1x1x1x128xf32, #tpu.memory_space<vmem>>, vector<1x1x1x128xf32>,
    return
  }
  func.func @transform_0(%arg0: i32, %arg1: i32) -> (i32, i32, i32, i32) {
    %c0_i32 = arith.constant 0 : i32
    %c0_i32_0 = arith.constant 0 : i32
    %c0_i32_1 = arith.constant 0 : i32
    return %arg0, %arg1, %c0_i32, %c0_i32_0 : i32, i32, i32, i32
  }
  func.func @transform_1(%arg0: i32, %arg1: i32) -> (i32, i32, i32, i32) {
    %c1_i32 = arith.constant 1 : i32
    %0 = arith.addi %arg1, %c1_i32 : i32
    %c16_i32 = arith.constant 16 : i32
    %1 = arith.muli %0, %c16_i32 : i32
    %c0_i32 = arith.constant 0 : i32
    %c0_i32_0 = arith.constant 0 : i32
    %c0_i32_1 = arith.constant 0 : i32
    return %arg0, %1, %c0_i32, %c0_i32_0 : i32, i32, i32, i32
  }
  func.func @transform_2(%arg0: i32, %arg1: i32) -> (i32, i32, i32, i32) {
    %c1_i32 = arith.constant 1 : i32
    %0 = arith.addi %arg1, %c1_i32 : i32
    %c16_i32 = arith.constant 16 : i32
    %1 = arith.muli %0, %c16_i32 : i32
    %c1_i32_0 = arith.constant 1 : i32
    %2 = arith.addi %1, %c1_i32_0 : i32
    %c0_i32 = arith.constant 0 : i32
    %c0_i32_1 = arith.constant 0 : i32
    %c0_i32_2 = arith.constant 0 : i32
    return %arg0, %2, %c0_i32, %c0_i32_1 : i32, i32, i32, i32
  }
  func.func @transform_3(%arg0: i32, %arg1: i32) -> (i32, i32, i32) {
    %c0_i32 = arith.constant 0 : i32
    %c0_i32_0 = arith.constant 0 : i32
    %c0_i32_1 = arith.constant 0 : i32
    %c0_i32_2 = arith.constant 0 : i32
    return %c0_i32, %c0_i32_0, %c0_i32_1 : i32, i32, i32
  }
  func.func @transform_4(%arg0: i32, %arg1: i32) -> (i32, i32, i32, i32) {
    %c0_i32 = arith.constant 0 : i32
    %c0_i32_0 = arith.constant 0 : i32
    %c0_i32_1 = arith.constant 0 : i32
    return %arg0, %arg1, %c0_i32, %c0_i32_0 : i32, i32, i32, i32
  }
  func.func @transform_5(%arg0: i32, %arg1: i32) -> (i32, i32, i32, i32) {
    %c0_i32 = arith.constant 0 : i32
    %c0_i32_0 = arith.constant 0 : i32
    %c0_i32_1 = arith.constant 0 : i32
    return %arg0, %arg1, %c0_i32, %c0_i32_0 : i32, i32, i32, i32
  }
}

module attributes {stable_mosaic.version = 11 : i64} {
  func.func @_conv_apply_kernel(%arg0: i32, %arg1: i32, %arg2: memref<1x16x16x12xbf16, #tpu.memory_space<vmem>>, %arg3: memref<1x1x16x12xbf16, #tpu.memory_space<vmem>>, %arg4: memref<1x1x16x12xbf16, #tpu.memory_space<vmem>>, %arg5: memref<3x12x128xbf16, #tpu.memory_space<vmem>>, %arg6: memref<1x128xf32, #tpu.memory_space<vmem>>, %arg7: memref<1x128xf32, #tpu.memory_space<vmem>>, %arg8: memref<1x16x16x128xbf16, #tpu.memory_space<vmem>>) attributes {dimension_semantics = [#tpu.dimension_semantics<parallel>, #tpu.dimension_semantics<parallel>], iteration_bounds = array<i64: 2, 1>, scalar_prefetch = 0 : i64, scratch_operands = 0 : i64, tpu.core_type = #tpu.core_type<tc>, window_params = [{transform_indices = @transform_0, window_bounds = array<i64: 1, 16, 16, 12>}, {transform_indices = @transform_1, window_bounds = array<i64: 1, 1, 16, 12>}, {transform_indices = @transform_2, window_bounds = array<i64: 1, 1, 16, 12>}, {pipeline_mode = #tpu.pipeline_mode<synchronous>, transform_indices = @transform_3, window_bounds = array<i64: 3, 12, 128>}, {pipeline_mode = #tpu.pipeline_mode<synchronous>, transform_indices = @transform_4, window_bounds = array<i64: 1, 128>}, {pipeline_mode = #tpu.pipeline_mode<synchronous>, transform_indices = @transform_5, window_bounds = array<i64: 1, 128>}, {transform_indices = @transform_6, window_bounds = array<i64: 1, 16, 16, 128>}]} {
    %c0 = arith.constant 0 : index
    %c0_0 = arith.constant 0 : index
    %c0_1 = arith.constant 0 : index
    %c0_2 = arith.constant 0 : index
    %0 = vector.load %arg2[%c0, %c0_0, %c0_1, %c0_2] : memref<1x16x16x12xbf16, #tpu.memory_space<vmem>>, vector<1x16x16x12xbf16>
    %1 = vector.shape_cast %0 : vector<1x16x16x12xbf16> to vector<16x16x12xbf16>
    %c0_3 = arith.constant 0 : index
    %c0_4 = arith.constant 0 : index
    %c0_5 = arith.constant 0 : index
    %c0_6 = arith.constant 0 : index
    %2 = vector.load %arg3[%c0_3, %c0_4, %c0_5, %c0_6] : memref<1x1x16x12xbf16, #tpu.memory_space<vmem>>, vector<1x1x16x12xbf16>
    %3 = vector.shape_cast %2 : vector<1x1x16x12xbf16> to vector<1x16x12xbf16>
    %c0_7 = arith.constant 0 : index
    %c0_8 = arith.constant 0 : index
    %c0_9 = arith.constant 0 : index
    %c0_10 = arith.constant 0 : index
    %4 = vector.load %arg4[%c0_7, %c0_8, %c0_9, %c0_10] : memref<1x1x16x12xbf16, #tpu.memory_space<vmem>>, vector<1x1x16x12xbf16>
    %5 = vector.shape_cast %4 : vector<1x1x16x12xbf16> to vector<1x16x12xbf16>
    %6 = tpu.concatenate %1, %3, %5 in 0 : vector<16x16x12xbf16>, vector<1x16x12xbf16>, vector<1x16x12xbf16> -> vector<18x16x12xbf16>
    %cst = arith.constant 0.000000e+00 : f32
    %7 = vector.broadcast %cst : f32 to vector<256x128xf32>
    %8 = vector.extract_strided_slice %6 {offsets = [0, 0, 0], sizes = [16, 16, 12], strides = [1, 1, 1]} : vector<18x16x12xbf16> to vector<16x16x12xbf16>
    %9 = vector.shape_cast %8 : vector<16x16x12xbf16> to vector<256x12xbf16>
    %c0_11 = arith.constant 0 : index
    %c0_12 = arith.constant 0 : index
    %c0_13 = arith.constant 0 : index
    %10 = vector.load %arg5[%c0_11, %c0_12, %c0_13] : memref<3x12x128xbf16, #tpu.memory_space<vmem>>, vector<1x12x128xbf16>
    %11 = vector.shape_cast %10 : vector<1x12x128xbf16> to vector<12x128xbf16>
    %cst_14 = arith.constant dense<0.000000e+00> : vector<256x128xf32>
    %12 = tpu.matmul %9, %11, %cst_14 {dimension_numbers = #tpu.dot_dimension_numbers<[1], [0], [0], [1], [0, 0, 1, 1], [], []>} : vector<256x12xbf16>, vector<12x128xbf16>, vector<256x128xf32> -> vector<256x128xf32>
    %13 = arith.addf %7, %12 : vector<256x128xf32>
    %14 = vector.extract_strided_slice %6 {offsets = [1, 0, 0], sizes = [16, 16, 12], strides = [1, 1, 1]} : vector<18x16x12xbf16> to vector<16x16x12xbf16>
    %15 = vector.shape_cast %14 : vector<16x16x12xbf16> to vector<256x12xbf16>
    %c1 = arith.constant 1 : index
    %c0_15 = arith.constant 0 : index
    %c0_16 = arith.constant 0 : index
    %16 = vector.load %arg5[%c1, %c0_15, %c0_16] : memref<3x12x128xbf16, #tpu.memory_space<vmem>>, vector<1x12x128xbf16>
    %17 = vector.shape_cast %16 : vector<1x12x128xbf16> to vector<12x128xbf16>
    %cst_17 = arith.constant dense<0.000000e+00> : vector<256x128xf32>
    %18 = tpu.matmul %15, %17, %cst_17 {dimension_numbers = #tpu.dot_dimension_numbers<[1], [0], [0], [1], [0, 0, 1, 1], [], []>} : vector<256x12xbf16>, vector<12x128xbf16>, vector<256x128xf32> -> vector<256x128xf32>
    %19 = arith.addf %13, %18 : vector<256x128xf32>
    %20 = vector.extract_strided_slice %6 {offsets = [2, 0, 0], sizes = [16, 16, 12], strides = [1, 1, 1]} : vector<18x16x12xbf16> to vector<16x16x12xbf16>
    %21 = vector.shape_cast %20 : vector<16x16x12xbf16> to vector<256x12xbf16>
    %c2 = arith.constant 2 : index
    %c0_18 = arith.constant 0 : index
    %c0_19 = arith.constant 0 : index
    %22 = vector.load %arg5[%c2, %c0_18, %c0_19] : memref<3x12x128xbf16, #tpu.memory_space<vmem>>, vector<1x12x128xbf16>
    %23 = vector.shape_cast %22 : vector<1x12x128xbf16> to vector<12x128xbf16>
    %cst_20 = arith.constant dense<0.000000e+00> : vector<256x128xf32>
    %24 = tpu.matmul %21, %23, %cst_20 {dimension_numbers = #tpu.dot_dimension_numbers<[1], [0], [0], [1], [0, 0, 1, 1], [], []>} : vector<256x12xbf16>, vector<12x128xbf16>, vector<256x128xf32> -> vector<256x128xf32>
    %25 = arith.addf %19, %24 : vector<256x128xf32>
    %c0_21 = arith.constant 0 : index
    %c0_22 = arith.constant 0 : index
    %26 = vector.load %arg6[%c0_21, %c0_22] : memref<1x128xf32, #tpu.memory_space<vmem>>, vector<1x128xf32>
    %27 = vector.broadcast %26 : vector<1x128xf32> to vector<256x128xf32>
    %28 = arith.mulf %25, %27 : vector<256x128xf32>
    %c0_23 = arith.constant 0 : index
    %c0_24 = arith.constant 0 : index
    %29 = vector.load %arg7[%c0_23, %c0_24] : memref<1x128xf32, #tpu.memory_space<vmem>>, vector<1x128xf32>
    %30 = vector.broadcast %29 : vector<1x128xf32> to vector<256x128xf32>
    %31 = arith.addf %28, %30 : vector<256x128xf32>
    %cst_25 = arith.constant 0.000000e+00 : f32
    %32 = vector.broadcast %cst_25 : f32 to vector<256x128xf32>
    %33 = arith.cmpf ogt, %31, %32 : vector<256x128xf32>
    %cst_26 = arith.constant 0.000000e+00 : f32
    %34 = vector.broadcast %cst_26 : f32 to vector<256x128xf32>
    %35 = arith.mulf %31, %34 : vector<256x128xf32>
    %36 = arith.select %33, %31, %35 : vector<256x128xi1>, vector<256x128xf32>
    %37 = vector.shape_cast %36 : vector<256x128xf32> to vector<16x16x128xf32>
    %38 = arith.truncf %37 : vector<16x16x128xf32> to vector<16x16x128xbf16>
    %c0_27 = arith.constant 0 : index
    %c0_28 = arith.constant 0 : index
    %c0_29 = arith.constant 0 : index
    %c0_30 = arith.constant 0 : index
    %39 = vector.load %arg8[%c0_27, %c0_28, %c0_29, %c0_30] : memref<1x16x16x128xbf16, #tpu.memory_space<vmem>>, vector<1x16x16x128xbf16>
    %40 = vector.shape_cast %39 : vector<1x16x16x128xbf16> to vector<16x16x128xbf16>
    %41 = vector.shape_cast %38 : vector<16x16x128xbf16> to vector<1x16x16x128xbf16>
    tpu.vector_store %arg8[%c0_27, %c0_28, %c0_29, %c0_30], %41 {strides = array<i32>} : memref<1x16x16x128xbf16, #tpu.memory_space<vmem>>, vector<1x16x16x128xbf16>,
    return
  }
  func.func @transform_0(%arg0: i32, %arg1: i32) -> (i32, i32, i32, i32) {
    %c0_i32 = arith.constant 0 : i32
    %c0_i32_0 = arith.constant 0 : i32
    %c0_i32_1 = arith.constant 0 : i32
    return %arg0, %arg1, %c0_i32, %c0_i32_0 : i32, i32, i32, i32
  }
  func.func @transform_1(%arg0: i32, %arg1: i32) -> (i32, i32, i32, i32) {
    %c1_i32 = arith.constant 1 : i32
    %0 = arith.addi %arg1, %c1_i32 : i32
    %c16_i32 = arith.constant 16 : i32
    %1 = arith.muli %0, %c16_i32 : i32
    %c0_i32 = arith.constant 0 : i32
    %c0_i32_0 = arith.constant 0 : i32
    %c0_i32_1 = arith.constant 0 : i32
    return %arg0, %1, %c0_i32, %c0_i32_0 : i32, i32, i32, i32
  }
  func.func @transform_2(%arg0: i32, %arg1: i32) -> (i32, i32, i32, i32) {
    %c1_i32 = arith.constant 1 : i32
    %0 = arith.addi %arg1, %c1_i32 : i32
    %c16_i32 = arith.constant 16 : i32
    %1 = arith.muli %0, %c16_i32 : i32
    %c1_i32_0 = arith.constant 1 : i32
    %2 = arith.addi %1, %c1_i32_0 : i32
    %c0_i32 = arith.constant 0 : i32
    %c0_i32_1 = arith.constant 0 : i32
    %c0_i32_2 = arith.constant 0 : i32
    return %arg0, %2, %c0_i32, %c0_i32_1 : i32, i32, i32, i32
  }
  func.func @transform_3(%arg0: i32, %arg1: i32) -> (i32, i32, i32) {
    %c0_i32 = arith.constant 0 : i32
    %c0_i32_0 = arith.constant 0 : i32
    %c0_i32_1 = arith.constant 0 : i32
    %c0_i32_2 = arith.constant 0 : i32
    return %c0_i32, %c0_i32_0, %c0_i32_1 : i32, i32, i32
  }
  func.func @transform_4(%arg0: i32, %arg1: i32) -> (i32, i32) {
    %c0_i32 = arith.constant 0 : i32
    %c0_i32_0 = arith.constant 0 : i32
    %c0_i32_1 = arith.constant 0 : i32
    return %c0_i32, %c0_i32_0 : i32, i32
  }
  func.func @transform_5(%arg0: i32, %arg1: i32) -> (i32, i32) {
    %c0_i32 = arith.constant 0 : i32
    %c0_i32_0 = arith.constant 0 : i32
    %c0_i32_1 = arith.constant 0 : i32
    return %c0_i32, %c0_i32_0 : i32, i32
  }
  func.func @transform_6(%arg0: i32, %arg1: i32) -> (i32, i32, i32, i32) {
    %c0_i32 = arith.constant 0 : i32
    %c0_i32_0 = arith.constant 0 : i32
    %c0_i32_1 = arith.constant 0 : i32
    return %arg0, %arg1, %c0_i32, %c0_i32_0 : i32, i32, i32, i32
  }
}

module attributes {stable_mosaic.version = 11 : i64} {
  func.func @_conv_stats_kernel(%arg0: i32, %arg1: i32, %arg2: memref<1x16x16x24xbf16, #tpu.memory_space<vmem>>, %arg3: memref<1x1x16x24xbf16, #tpu.memory_space<vmem>>, %arg4: memref<1x1x16x24xbf16, #tpu.memory_space<vmem>>, %arg5: memref<3x24x128xbf16, #tpu.memory_space<vmem>>, %arg6: memref<1x1x1x128xf32, #tpu.memory_space<vmem>>, %arg7: memref<1x1x1x128xf32, #tpu.memory_space<vmem>>) attributes {dimension_semantics = [#tpu.dimension_semantics<parallel>, #tpu.dimension_semantics<parallel>], iteration_bounds = array<i64: 2, 1>, scalar_prefetch = 0 : i64, scratch_operands = 0 : i64, tpu.core_type = #tpu.core_type<tc>, window_params = [{transform_indices = @transform_0, window_bounds = array<i64: 1, 16, 16, 24>}, {transform_indices = @transform_1, window_bounds = array<i64: 1, 1, 16, 24>}, {transform_indices = @transform_2, window_bounds = array<i64: 1, 1, 16, 24>}, {pipeline_mode = #tpu.pipeline_mode<synchronous>, transform_indices = @transform_3, window_bounds = array<i64: 3, 24, 128>}, {transform_indices = @transform_4, window_bounds = array<i64: 1, 1, 1, 128>}, {transform_indices = @transform_5, window_bounds = array<i64: 1, 1, 1, 128>}]} {
    %c0 = arith.constant 0 : index
    %c0_0 = arith.constant 0 : index
    %c0_1 = arith.constant 0 : index
    %c0_2 = arith.constant 0 : index
    %0 = vector.load %arg2[%c0, %c0_0, %c0_1, %c0_2] : memref<1x16x16x24xbf16, #tpu.memory_space<vmem>>, vector<1x16x16x24xbf16>
    %1 = vector.shape_cast %0 : vector<1x16x16x24xbf16> to vector<16x16x24xbf16>
    %c0_3 = arith.constant 0 : index
    %c0_4 = arith.constant 0 : index
    %c0_5 = arith.constant 0 : index
    %c0_6 = arith.constant 0 : index
    %2 = vector.load %arg3[%c0_3, %c0_4, %c0_5, %c0_6] : memref<1x1x16x24xbf16, #tpu.memory_space<vmem>>, vector<1x1x16x24xbf16>
    %3 = vector.shape_cast %2 : vector<1x1x16x24xbf16> to vector<1x16x24xbf16>
    %c0_7 = arith.constant 0 : index
    %c0_8 = arith.constant 0 : index
    %c0_9 = arith.constant 0 : index
    %c0_10 = arith.constant 0 : index
    %4 = vector.load %arg4[%c0_7, %c0_8, %c0_9, %c0_10] : memref<1x1x16x24xbf16, #tpu.memory_space<vmem>>, vector<1x1x16x24xbf16>
    %5 = vector.shape_cast %4 : vector<1x1x16x24xbf16> to vector<1x16x24xbf16>
    %6 = tpu.concatenate %1, %3, %5 in 0 : vector<16x16x24xbf16>, vector<1x16x24xbf16>, vector<1x16x24xbf16> -> vector<18x16x24xbf16>
    %cst = arith.constant 0.000000e+00 : f32
    %7 = vector.broadcast %cst : f32 to vector<256x128xf32>
    %8 = vector.extract_strided_slice %6 {offsets = [0, 0, 0], sizes = [16, 16, 24], strides = [1, 1, 1]} : vector<18x16x24xbf16> to vector<16x16x24xbf16>
    %9 = vector.shape_cast %8 : vector<16x16x24xbf16> to vector<256x24xbf16>
    %c0_11 = arith.constant 0 : index
    %c0_12 = arith.constant 0 : index
    %c0_13 = arith.constant 0 : index
    %10 = vector.load %arg5[%c0_11, %c0_12, %c0_13] : memref<3x24x128xbf16, #tpu.memory_space<vmem>>, vector<1x24x128xbf16>
    %11 = vector.shape_cast %10 : vector<1x24x128xbf16> to vector<24x128xbf16>
    %cst_14 = arith.constant dense<0.000000e+00> : vector<256x128xf32>
    %12 = tpu.matmul %9, %11, %cst_14 {dimension_numbers = #tpu.dot_dimension_numbers<[1], [0], [0], [1], [0, 0, 1, 1], [], []>} : vector<256x24xbf16>, vector<24x128xbf16>, vector<256x128xf32> -> vector<256x128xf32>
    %13 = arith.addf %7, %12 : vector<256x128xf32>
    %14 = vector.extract_strided_slice %6 {offsets = [1, 0, 0], sizes = [16, 16, 24], strides = [1, 1, 1]} : vector<18x16x24xbf16> to vector<16x16x24xbf16>
    %15 = vector.shape_cast %14 : vector<16x16x24xbf16> to vector<256x24xbf16>
    %c1 = arith.constant 1 : index
    %c0_15 = arith.constant 0 : index
    %c0_16 = arith.constant 0 : index
    %16 = vector.load %arg5[%c1, %c0_15, %c0_16] : memref<3x24x128xbf16, #tpu.memory_space<vmem>>, vector<1x24x128xbf16>
    %17 = vector.shape_cast %16 : vector<1x24x128xbf16> to vector<24x128xbf16>
    %cst_17 = arith.constant dense<0.000000e+00> : vector<256x128xf32>
    %18 = tpu.matmul %15, %17, %cst_17 {dimension_numbers = #tpu.dot_dimension_numbers<[1], [0], [0], [1], [0, 0, 1, 1], [], []>} : vector<256x24xbf16>, vector<24x128xbf16>, vector<256x128xf32> -> vector<256x128xf32>
    %19 = arith.addf %13, %18 : vector<256x128xf32>
    %20 = vector.extract_strided_slice %6 {offsets = [2, 0, 0], sizes = [16, 16, 24], strides = [1, 1, 1]} : vector<18x16x24xbf16> to vector<16x16x24xbf16>
    %21 = vector.shape_cast %20 : vector<16x16x24xbf16> to vector<256x24xbf16>
    %c2 = arith.constant 2 : index
    %c0_18 = arith.constant 0 : index
    %c0_19 = arith.constant 0 : index
    %22 = vector.load %arg5[%c2, %c0_18, %c0_19] : memref<3x24x128xbf16, #tpu.memory_space<vmem>>, vector<1x24x128xbf16>
    %23 = vector.shape_cast %22 : vector<1x24x128xbf16> to vector<24x128xbf16>
    %cst_20 = arith.constant dense<0.000000e+00> : vector<256x128xf32>
    %24 = tpu.matmul %21, %23, %cst_20 {dimension_numbers = #tpu.dot_dimension_numbers<[1], [0], [0], [1], [0, 0, 1, 1], [], []>} : vector<256x24xbf16>, vector<24x128xbf16>, vector<256x128xf32> -> vector<256x128xf32>
    %25 = arith.addf %19, %24 : vector<256x128xf32>
    %cst_21 = arith.constant dense<0.000000e+00> : vector<128xf32>
    %26 = vector.multi_reduction <add>, %25, %cst_21 [0] : vector<256x128xf32> to vector<128xf32>
    %27 = vector.shape_cast %26 : vector<128xf32> to vector<1x128xf32>
    %c0_22 = arith.constant 0 : index
    %c0_23 = arith.constant 0 : index
    %c0_24 = arith.constant 0 : index
    %c0_25 = arith.constant 0 : index
    %28 = vector.load %arg6[%c0_22, %c0_23, %c0_24, %c0_25] : memref<1x1x1x128xf32, #tpu.memory_space<vmem>>, vector<1x1x1x128xf32>
    %29 = vector.shape_cast %28 : vector<1x1x1x128xf32> to vector<1x128xf32>
    %30 = vector.shape_cast %27 : vector<1x128xf32> to vector<1x1x1x128xf32>
    tpu.vector_store %arg6[%c0_22, %c0_23, %c0_24, %c0_25], %30 {strides = array<i32>} : memref<1x1x1x128xf32, #tpu.memory_space<vmem>>, vector<1x1x1x128xf32>,
    %31 = arith.mulf %25, %25 : vector<256x128xf32>
    %cst_26 = arith.constant dense<0.000000e+00> : vector<128xf32>
    %32 = vector.multi_reduction <add>, %31, %cst_26 [0] : vector<256x128xf32> to vector<128xf32>
    %33 = vector.shape_cast %32 : vector<128xf32> to vector<1x128xf32>
    %c0_27 = arith.constant 0 : index
    %c0_28 = arith.constant 0 : index
    %c0_29 = arith.constant 0 : index
    %c0_30 = arith.constant 0 : index
    %34 = vector.load %arg7[%c0_27, %c0_28, %c0_29, %c0_30] : memref<1x1x1x128xf32, #tpu.memory_space<vmem>>, vector<1x1x1x128xf32>
    %35 = vector.shape_cast %34 : vector<1x1x1x128xf32> to vector<1x128xf32>
    %36 = vector.shape_cast %33 : vector<1x128xf32> to vector<1x1x1x128xf32>
    tpu.vector_store %arg7[%c0_27, %c0_28, %c0_29, %c0_30], %36 {strides = array<i32>} : memref<1x1x1x128xf32, #tpu.memory_space<vmem>>, vector<1x1x1x128xf32>,
    return
  }
  func.func @transform_0(%arg0: i32, %arg1: i32) -> (i32, i32, i32, i32) {
    %c0_i32 = arith.constant 0 : i32
    %c0_i32_0 = arith.constant 0 : i32
    %c0_i32_1 = arith.constant 0 : i32
    return %arg0, %arg1, %c0_i32, %c0_i32_0 : i32, i32, i32, i32
  }
  func.func @transform_1(%arg0: i32, %arg1: i32) -> (i32, i32, i32, i32) {
    %c1_i32 = arith.constant 1 : i32
    %0 = arith.addi %arg1, %c1_i32 : i32
    %c16_i32 = arith.constant 16 : i32
    %1 = arith.muli %0, %c16_i32 : i32
    %c0_i32 = arith.constant 0 : i32
    %c0_i32_0 = arith.constant 0 : i32
    %c0_i32_1 = arith.constant 0 : i32
    return %arg0, %1, %c0_i32, %c0_i32_0 : i32, i32, i32, i32
  }
  func.func @transform_2(%arg0: i32, %arg1: i32) -> (i32, i32, i32, i32) {
    %c1_i32 = arith.constant 1 : i32
    %0 = arith.addi %arg1, %c1_i32 : i32
    %c16_i32 = arith.constant 16 : i32
    %1 = arith.muli %0, %c16_i32 : i32
    %c1_i32_0 = arith.constant 1 : i32
    %2 = arith.addi %1, %c1_i32_0 : i32
    %c0_i32 = arith.constant 0 : i32
    %c0_i32_1 = arith.constant 0 : i32
    %c0_i32_2 = arith.constant 0 : i32
    return %arg0, %2, %c0_i32, %c0_i32_1 : i32, i32, i32, i32
  }
  func.func @transform_3(%arg0: i32, %arg1: i32) -> (i32, i32, i32) {
    %c0_i32 = arith.constant 0 : i32
    %c0_i32_0 = arith.constant 0 : i32
    %c0_i32_1 = arith.constant 0 : i32
    %c0_i32_2 = arith.constant 0 : i32
    return %c0_i32, %c0_i32_0, %c0_i32_1 : i32, i32, i32
  }
  func.func @transform_4(%arg0: i32, %arg1: i32) -> (i32, i32, i32, i32) {
    %c0_i32 = arith.constant 0 : i32
    %c0_i32_0 = arith.constant 0 : i32
    %c0_i32_1 = arith.constant 0 : i32
    return %arg0, %arg1, %c0_i32, %c0_i32_0 : i32, i32, i32, i32
  }
  func.func @transform_5(%arg0: i32, %arg1: i32) -> (i32, i32, i32, i32) {
    %c0_i32 = arith.constant 0 : i32
    %c0_i32_0 = arith.constant 0 : i32
    %c0_i32_1 = arith.constant 0 : i32
    return %arg0, %arg1, %c0_i32, %c0_i32_0 : i32, i32, i32, i32
  }
}

module attributes {stable_mosaic.version = 11 : i64} {
  func.func @_conv_apply_kernel(%arg0: i32, %arg1: i32, %arg2: memref<1x16x16x24xbf16, #tpu.memory_space<vmem>>, %arg3: memref<1x1x16x24xbf16, #tpu.memory_space<vmem>>, %arg4: memref<1x1x16x24xbf16, #tpu.memory_space<vmem>>, %arg5: memref<3x24x128xbf16, #tpu.memory_space<vmem>>, %arg6: memref<1x128xf32, #tpu.memory_space<vmem>>, %arg7: memref<1x128xf32, #tpu.memory_space<vmem>>, %arg8: memref<1x16x16x128xf32, #tpu.memory_space<vmem>>) attributes {dimension_semantics = [#tpu.dimension_semantics<parallel>, #tpu.dimension_semantics<parallel>], iteration_bounds = array<i64: 2, 1>, scalar_prefetch = 0 : i64, scratch_operands = 0 : i64, tpu.core_type = #tpu.core_type<tc>, window_params = [{transform_indices = @transform_0, window_bounds = array<i64: 1, 16, 16, 24>}, {transform_indices = @transform_1, window_bounds = array<i64: 1, 1, 16, 24>}, {transform_indices = @transform_2, window_bounds = array<i64: 1, 1, 16, 24>}, {pipeline_mode = #tpu.pipeline_mode<synchronous>, transform_indices = @transform_3, window_bounds = array<i64: 3, 24, 128>}, {pipeline_mode = #tpu.pipeline_mode<synchronous>, transform_indices = @transform_4, window_bounds = array<i64: 1, 128>}, {pipeline_mode = #tpu.pipeline_mode<synchronous>, transform_indices = @transform_5, window_bounds = array<i64: 1, 128>}, {transform_indices = @transform_6, window_bounds = array<i64: 1, 16, 16, 128>}]} {
    %c0 = arith.constant 0 : index
    %c0_0 = arith.constant 0 : index
    %c0_1 = arith.constant 0 : index
    %c0_2 = arith.constant 0 : index
    %0 = vector.load %arg2[%c0, %c0_0, %c0_1, %c0_2] : memref<1x16x16x24xbf16, #tpu.memory_space<vmem>>, vector<1x16x16x24xbf16>
    %1 = vector.shape_cast %0 : vector<1x16x16x24xbf16> to vector<16x16x24xbf16>
    %c0_3 = arith.constant 0 : index
    %c0_4 = arith.constant 0 : index
    %c0_5 = arith.constant 0 : index
    %c0_6 = arith.constant 0 : index
    %2 = vector.load %arg3[%c0_3, %c0_4, %c0_5, %c0_6] : memref<1x1x16x24xbf16, #tpu.memory_space<vmem>>, vector<1x1x16x24xbf16>
    %3 = vector.shape_cast %2 : vector<1x1x16x24xbf16> to vector<1x16x24xbf16>
    %c0_7 = arith.constant 0 : index
    %c0_8 = arith.constant 0 : index
    %c0_9 = arith.constant 0 : index
    %c0_10 = arith.constant 0 : index
    %4 = vector.load %arg4[%c0_7, %c0_8, %c0_9, %c0_10] : memref<1x1x16x24xbf16, #tpu.memory_space<vmem>>, vector<1x1x16x24xbf16>
    %5 = vector.shape_cast %4 : vector<1x1x16x24xbf16> to vector<1x16x24xbf16>
    %6 = tpu.concatenate %1, %3, %5 in 0 : vector<16x16x24xbf16>, vector<1x16x24xbf16>, vector<1x16x24xbf16> -> vector<18x16x24xbf16>
    %cst = arith.constant 0.000000e+00 : f32
    %7 = vector.broadcast %cst : f32 to vector<256x128xf32>
    %8 = vector.extract_strided_slice %6 {offsets = [0, 0, 0], sizes = [16, 16, 24], strides = [1, 1, 1]} : vector<18x16x24xbf16> to vector<16x16x24xbf16>
    %9 = vector.shape_cast %8 : vector<16x16x24xbf16> to vector<256x24xbf16>
    %c0_11 = arith.constant 0 : index
    %c0_12 = arith.constant 0 : index
    %c0_13 = arith.constant 0 : index
    %10 = vector.load %arg5[%c0_11, %c0_12, %c0_13] : memref<3x24x128xbf16, #tpu.memory_space<vmem>>, vector<1x24x128xbf16>
    %11 = vector.shape_cast %10 : vector<1x24x128xbf16> to vector<24x128xbf16>
    %cst_14 = arith.constant dense<0.000000e+00> : vector<256x128xf32>
    %12 = tpu.matmul %9, %11, %cst_14 {dimension_numbers = #tpu.dot_dimension_numbers<[1], [0], [0], [1], [0, 0, 1, 1], [], []>} : vector<256x24xbf16>, vector<24x128xbf16>, vector<256x128xf32> -> vector<256x128xf32>
    %13 = arith.addf %7, %12 : vector<256x128xf32>
    %14 = vector.extract_strided_slice %6 {offsets = [1, 0, 0], sizes = [16, 16, 24], strides = [1, 1, 1]} : vector<18x16x24xbf16> to vector<16x16x24xbf16>
    %15 = vector.shape_cast %14 : vector<16x16x24xbf16> to vector<256x24xbf16>
    %c1 = arith.constant 1 : index
    %c0_15 = arith.constant 0 : index
    %c0_16 = arith.constant 0 : index
    %16 = vector.load %arg5[%c1, %c0_15, %c0_16] : memref<3x24x128xbf16, #tpu.memory_space<vmem>>, vector<1x24x128xbf16>
    %17 = vector.shape_cast %16 : vector<1x24x128xbf16> to vector<24x128xbf16>
    %cst_17 = arith.constant dense<0.000000e+00> : vector<256x128xf32>
    %18 = tpu.matmul %15, %17, %cst_17 {dimension_numbers = #tpu.dot_dimension_numbers<[1], [0], [0], [1], [0, 0, 1, 1], [], []>} : vector<256x24xbf16>, vector<24x128xbf16>, vector<256x128xf32> -> vector<256x128xf32>
    %19 = arith.addf %13, %18 : vector<256x128xf32>
    %20 = vector.extract_strided_slice %6 {offsets = [2, 0, 0], sizes = [16, 16, 24], strides = [1, 1, 1]} : vector<18x16x24xbf16> to vector<16x16x24xbf16>
    %21 = vector.shape_cast %20 : vector<16x16x24xbf16> to vector<256x24xbf16>
    %c2 = arith.constant 2 : index
    %c0_18 = arith.constant 0 : index
    %c0_19 = arith.constant 0 : index
    %22 = vector.load %arg5[%c2, %c0_18, %c0_19] : memref<3x24x128xbf16, #tpu.memory_space<vmem>>, vector<1x24x128xbf16>
    %23 = vector.shape_cast %22 : vector<1x24x128xbf16> to vector<24x128xbf16>
    %cst_20 = arith.constant dense<0.000000e+00> : vector<256x128xf32>
    %24 = tpu.matmul %21, %23, %cst_20 {dimension_numbers = #tpu.dot_dimension_numbers<[1], [0], [0], [1], [0, 0, 1, 1], [], []>} : vector<256x24xbf16>, vector<24x128xbf16>, vector<256x128xf32> -> vector<256x128xf32>
    %25 = arith.addf %19, %24 : vector<256x128xf32>
    %c0_21 = arith.constant 0 : index
    %c0_22 = arith.constant 0 : index
    %26 = vector.load %arg6[%c0_21, %c0_22] : memref<1x128xf32, #tpu.memory_space<vmem>>, vector<1x128xf32>
    %27 = vector.broadcast %26 : vector<1x128xf32> to vector<256x128xf32>
    %28 = arith.mulf %25, %27 : vector<256x128xf32>
    %c0_23 = arith.constant 0 : index
    %c0_24 = arith.constant 0 : index
    %29 = vector.load %arg7[%c0_23, %c0_24] : memref<1x128xf32, #tpu.memory_space<vmem>>, vector<1x128xf32>
    %30 = vector.broadcast %29 : vector<1x128xf32> to vector<256x128xf32>
    %31 = arith.addf %28, %30 : vector<256x128xf32>
    %cst_25 = arith.constant 0.000000e+00 : f32
    %32 = vector.broadcast %cst_25 : f32 to vector<256x128xf32>
    %33 = arith.cmpf ogt, %31, %32 : vector<256x128xf32>
    %cst_26 = arith.constant 2.000000e-01 : f32
    %34 = vector.broadcast %cst_26 : f32 to vector<256x128xf32>
    %35 = arith.mulf %31, %34 : vector<256x128xf32>
    %36 = arith.select %33, %31, %35 : vector<256x128xi1>, vector<256x128xf32>
    %37 = vector.shape_cast %36 : vector<256x128xf32> to vector<16x16x128xf32>
    %c0_27 = arith.constant 0 : index
    %c0_28 = arith.constant 0 : index
    %c0_29 = arith.constant 0 : index
    %c0_30 = arith.constant 0 : index
    %38 = vector.load %arg8[%c0_27, %c0_28, %c0_29, %c0_30] : memref<1x16x16x128xf32, #tpu.memory_space<vmem>>, vector<1x16x16x128xf32>
    %39 = vector.shape_cast %38 : vector<1x16x16x128xf32> to vector<16x16x128xf32>
    %40 = vector.shape_cast %37 : vector<16x16x128xf32> to vector<1x16x16x128xf32>
    tpu.vector_store %arg8[%c0_27, %c0_28, %c0_29, %c0_30], %40 {strides = array<i32>} : memref<1x16x16x128xf32, #tpu.memory_space<vmem>>, vector<1x16x16x128xf32>,
    return
  }
  func.func @transform_0(%arg0: i32, %arg1: i32) -> (i32, i32, i32, i32) {
    %c0_i32 = arith.constant 0 : i32
    %c0_i32_0 = arith.constant 0 : i32
    %c0_i32_1 = arith.constant 0 : i32
    return %arg0, %arg1, %c0_i32, %c0_i32_0 : i32, i32, i32, i32
  }
  func.func @transform_1(%arg0: i32, %arg1: i32) -> (i32, i32, i32, i32) {
    %c1_i32 = arith.constant 1 : i32
    %0 = arith.addi %arg1, %c1_i32 : i32
    %c16_i32 = arith.constant 16 : i32
    %1 = arith.muli %0, %c16_i32 : i32
    %c0_i32 = arith.constant 0 : i32
    %c0_i32_0 = arith.constant 0 : i32
    %c0_i32_1 = arith.constant 0 : i32
    return %arg0, %1, %c0_i32, %c0_i32_0 : i32, i32, i32, i32
  }
  func.func @transform_2(%arg0: i32, %arg1: i32) -> (i32, i32, i32, i32) {
    %c1_i32 = arith.constant 1 : i32
    %0 = arith.addi %arg1, %c1_i32 : i32
    %c16_i32 = arith.constant 16 : i32
    %1 = arith.muli %0, %c16_i32 : i32
    %c1_i32_0 = arith.constant 1 : i32
    %2 = arith.addi %1, %c1_i32_0 : i32
    %c0_i32 = arith.constant 0 : i32
    %c0_i32_1 = arith.constant 0 : i32
    %c0_i32_2 = arith.constant 0 : i32
    return %arg0, %2, %c0_i32, %c0_i32_1 : i32, i32, i32, i32
  }
  func.func @transform_3(%arg0: i32, %arg1: i32) -> (i32, i32, i32) {
    %c0_i32 = arith.constant 0 : i32
    %c0_i32_0 = arith.constant 0 : i32
    %c0_i32_1 = arith.constant 0 : i32
    %c0_i32_2 = arith.constant 0 : i32
    return %c0_i32, %c0_i32_0, %c0_i32_1 : i32, i32, i32
  }
  func.func @transform_4(%arg0: i32, %arg1: i32) -> (i32, i32) {
    %c0_i32 = arith.constant 0 : i32
    %c0_i32_0 = arith.constant 0 : i32
    %c0_i32_1 = arith.constant 0 : i32
    return %c0_i32, %c0_i32_0 : i32, i32
  }
  func.func @transform_5(%arg0: i32, %arg1: i32) -> (i32, i32) {
    %c0_i32 = arith.constant 0 : i32
    %c0_i32_0 = arith.constant 0 : i32
    %c0_i32_1 = arith.constant 0 : i32
    return %c0_i32, %c0_i32_0 : i32, i32
  }
  func.func @transform_6(%arg0: i32, %arg1: i32) -> (i32, i32, i32, i32) {
    %c0_i32 = arith.constant 0 : i32
    %c0_i32_0 = arith.constant 0 : i32
    %c0_i32_1 = arith.constant 0 : i32
    return %arg0, %arg1, %c0_i32, %c0_i32_0 : i32, i32, i32, i32
  }
}

</mosaic_0001>

<bundles_post_ra>
// kernel: double_conv_forward.4
= control target key start
LH: loop header
LB: loop body
LE: loop exit
PB: predicated region body
PF: predicated region fallthrough
CT: control target
= control target key end

     0   :  { %s1433_s18 = smov 0   ;;  %s1435_s19 = smov 0   ;;  %s1649_s0 = inlined_call_operand.vmem [shape: bf16[2,18,16,12], index: 0, kind: input, shape index: {}, may-alias: {0,1,2}]   ;;  %s1650_s1 = inlined_call_operand.vmem [shape: bf16[2,18,16,12], index: 1, kind: input, shape index: {}, may-alias: {0,1,2}]   ;;  %s1651_s2 = inlined_call_operand.vmem [shape: bf16[2,18,16,12], index: 2, kind: input, shape index: {}, may-alias: {0,1,2}]   ;;  %s1652_s3 = inlined_call_operand.vmem [shape: bf16[3,12,128], index: 3, kind: input, shape index: {}]   ;;  %s1653_s4 = inlined_call_operand.vmem [shape: f32[2,1,1,128], index: 4, kind: output, shape index: {0}]   ;;  %s1654_s5 = inlined_call_operand.vmem [shape: f32[2,1,1,128], index: 5, kind: output, shape index: {1}]  }
   0x1   :  { %s1437_s20 = smov 0  }
   0x2 LB: > { %s28_s21 = sadd.s32 1, %s1397_s19  ;;  %p1182_p0 = scmp.ge.s32.totalorder %s1401_s20, 1  ;;  %s1401_s20 = sphi %s1437_s20, %s16_s20   ;;  %s1397_s19 = sphi %s1435_s19, %s1656_s19   ;;  %s1393_s18 = sphi %s1433_s18, %s1655_s18  }
   0x3   : > { %p30_p1 = scmp.ge.s32.totalorder %s28_s21, 2  ;;  %p276_p2 = scmp.lt.s32.totalorder %s1401_s20, 3 }
   0x5   : > { %s1658_s21 = smov (%p30_p1, %s28_s21), 0  ;;  %p277_p3 = pnand %p1182_p0, %p276_p2 }
   0x6   : > { %p350_p4 = scmp.lt.s32.totalorder (!%p277_p3), %s1393_s18, 1 }
   0x7   : > { %280 = sbr.rel (%p277_p3) target bundleno = 372 (0x174), region = 36 }
   0xc   : > { %v1254_v0 = vld [vmem:[%s1652_s3 + $0x8] sm:$0xf]  ;;  %v1347_v1 = vld [vmem:[%s1652_s3 + $0x8] sm:$0x30]  ;;  %vm581_vm0 = vcmask 1045504   ;;  %s1660_s18 = smov (!%p350_p4, %s1393_s18), 1 }
   0xd   : > { %v1255_v2 = vor.u32 %v1347_v1, %v1254_v0  ;;  %v1278_v3 = vld [vmem:[%s1652_s3] sm:$0xf]  ;;  %v1346_v4 = vld [vmem:[%s1652_s3] sm:$0x30]  ;;  %v1304_v5 = vld [vmem:[%s1652_s3 + $0x10] sm:$0xf]  ;;  %s398_s27 = scalar_lea.vmem %s1653_s4, %s1660_s18  ;;  %s404_s30 = scalar_lea.vmem %s1654_s5, %s1660_s18 }
   0xe   : > { %v1279_v6 = vor.u32 %v1346_v4, %v1278_v3  ;;  %v1348_v7 = vld [vmem:[%s1652_s3 + $0x10] sm:$0x30]  ;;  %s1474_s9 = smul.u32 144, %s1660_s18  ;;  %vm532_vm1 = vcmask 97280  }
   0xf   : > { %v583_v8 = vsel %vm581_vm0, %v1255_v2, 0  ;;  %v1305_v9 = vor.u32 %v1348_v7, %v1304_v5 }
  0x10   : > { %592 = vmatpush.bf16.msra.mxu0 %v583_v8  ;;  %1349 = vmatpush.bf16.msra.mxu3 %v583_v8  ;;  %v688_v10 = vsel %vm581_vm0, %v1279_v6, 0  ;;  %s1481_s12 = scalar_lea.vmem %s1649_s0, %s1474_s9  ;;  %s1325_s13 = sadd.s32 128, %s1474_s9 }
  0x11   : > { %697 = vmatpush.bf16.msra.mxu1 %v688_v10  ;;  %v796_v11 = vsel %vm581_vm0, %v1305_v9, 0  ;;  %v1329_v12 = vld [vmem:[%s1481_s12 + $0x8] sm:$0xff]  ;;  %v1328_v14 = vld [vmem:[%s1481_s12] sm:$0xff]  ;;  %v1330_v15 = vld [vmem:[%s1481_s12 + $0x10] sm:$0xff]  ;;  %s375_s16 = scalar_lea.vmem %s1650_s1, %s1325_s13  ;;  %s1327_s17 = sadd.s32 136, %s1474_s9 }
  0x12   : > { %805 = vmatpush.bf16.msra.mxu2 %v796_v11  ;;  %v1485_v13 = vld [vmem:[%s1481_s12 + $0x68] sm:$0xff]  ;;  %v1342_v16 = vld [vmem:[%s1481_s12 + $0x70] sm:$0xff]  ;;  %v1331_v17 = vld [vmem:[%s1481_s12 + $0x18] sm:$0xff]  ;;  %s389_s24 = scalar_lea.vmem %s1651_s2, %s1327_s17 }
  0x13   : > { %1256 = vmatmul.msk.bf16.vlgmr.msra.gmra.mxu0 %vm532_vm1, %v1329_v12  ;;  %1268 = vmatmul.msk.bf16.vlgmr.msra.gmra.mxu3 %vm532_vm1, %v1485_v13  ;;  %v1343_v18 = vld [vmem:[%s1481_s12 + $0x78] sm:$0xff]  ;;  %v1332_v19 = vld [vmem:[%s1481_s12 + $0x20] sm:$0xff]  ;;  %v1333_v21 = vld [vmem:[%s1481_s12 + $0x28] sm:$0xff] }
  0x14   : > { %1350 = vmatpush.bf16.msrb.mxu3 %v688_v10  ;;  %1280 = vmatmul.msk.bf16.vlgmr.msra.gmra.mxu1 %vm532_vm1, %v1328_v14  ;;  %v1510_v20 = vld [vmem:[%s375_s16] sm:$0xff]  ;;  %v1334_v23 = vld [vmem:[%s1481_s12 + $0x30] sm:$0xff]  ;;  %v1335_v24 = vld [vmem:[%s1481_s12 + $0x38] sm:$0xff] }
  0x15   : > { %1306 = vmatmul.msk.bf16.vlgmr.msra.gmra.mxu2 %vm532_vm1, %v1330_v15  ;;  %v1519_v22 = vld [vmem:[%s1481_s12 + $0x60] sm:$0xff]  ;;  %v1337_v26 = vld [vmem:[%s1481_s12 + $0x48] sm:$0xff]  ;;  %v1338_v28 = vld [vmem:[%s1481_s12 + $0x50] sm:$0xff] }
  0x16   : > { %v1336_v25 = vld [vmem:[%s1481_s12 + $0x40] sm:$0xff]  ;;  %v1339_v41 = vld [vmem:[%s1481_s12 + $0x58] sm:$0xff] }
  0x17   : > { %v1345_v14 = vld [vmem:[%s389_s24] sm:$0xff] }
  0x18   : > { %1351 = vmatpush.bf16.msra.mxu3 %v796_v11 }
  0x23   : > { %1257 = vmatmul.msk.bf16.gmra.mxu0 %vm532_vm1, %v1330_v15  ;;  %1269 = vmatmul.msk.bf16.gmra.mxu3 %vm532_vm1, %v1342_v16 }
  0x24   : > { %1281 = vmatmul.msk.bf16.gmra.mxu1 %vm532_vm1, %v1329_v12 }
  0x25   : > { %1307 = vmatmul.msk.bf16.gmra.mxu2 %vm532_vm1, %v1331_v17 }
  0x33   : > { %1258 = vmatmul.msk.bf16.gmra.mxu0 %vm532_vm1, %v1331_v17  ;;  %1270 = vmatmul.msk.bf16.gmra.mxu3 %vm532_vm1, %v1343_v18 }
  0x34   : > { %1282 = vmatmul.msk.bf16.gmra.mxu1 %vm532_vm1, %v1330_v15 }
  0x35   : > { %1308 = vmatmul.msk.bf16.gmra.mxu2 %vm532_vm1, %v1332_v19 }
  0x43   : > { %1259 = vmatmul.msk.bf16.gmra.mxu0 %vm532_vm1, %v1332_v19  ;;  %1271 = vmatmul.msk.bf16.gmra.mxu3 %vm532_vm1, %v1510_v20 }
  0x44   : > { %1283 = vmatmul.msk.bf16.gmra.mxu1 %vm532_vm1, %v1331_v17 }
  0x45   : > { %1309 = vmatmul.msk.bf16.gmra.mxu2 %vm532_vm1, %v1333_v21 }
  0x53   : > { %1260 = vmatmul.msk.bf16.gmra.mxu0 %vm532_vm1, %v1333_v21  ;;  %1292 = vmatmul.msk.bf16.vlgmr.msrb.gmra.mxu3 %vm532_vm1, %v1519_v22 }
  0x54   : > { %1284 = vmatmul.msk.bf16.gmra.mxu1 %vm532_vm1, %v1332_v19 }
  0x55   : > { %1310 = vmatmul.msk.bf16.gmra.mxu2 %vm532_vm1, %v1334_v23 }
  0x63   : > { %1261 = vmatmul.msk.bf16.gmra.mxu0 %vm532_vm1, %v1334_v23  ;;  %1293 = vmatmul.msk.bf16.gmra.mxu3 %vm532_vm1, %v1485_v13 }
  0x64   : > { %1285 = vmatmul.msk.bf16.gmra.mxu1 %vm532_vm1, %v1333_v21 }
  0x65   : > { %1311 = vmatmul.msk.bf16.gmra.mxu2 %vm532_vm1, %v1335_v24 }
  0x73   : > { %1262 = vmatmul.msk.bf16.gmra.mxu0 %vm532_vm1, %v1335_v24  ;;  %1294 = vmatmul.msk.bf16.gmra.mxu3 %vm532_vm1, %v1342_v16 }
  0x74   : > { %1286 = vmatmul.msk.bf16.gmra.mxu1 %vm532_vm1, %v1334_v23 }
  0x75   : > { %1312 = vmatmul.msk.bf16.gmra.mxu2 %vm532_vm1, %v1336_v25 }
  0x83   : > { %1263 = vmatmul.msk.bf16.gmra.mxu0 %vm532_vm1, %v1336_v25  ;;  %1295 = vmatmul.msk.bf16.gmra.mxu3 %vm532_vm1, %v1343_v18 }
  0x84   : > { %1287 = vmatmul.msk.bf16.gmra.mxu1 %vm532_vm1, %v1335_v24 }
  0x85   : > { %1313 = vmatmul.msk.bf16.gmra.mxu2 %vm532_vm1, %v1337_v26 }
  0x90   : > { %v594_v27 = vpop.f32.mrf.mxu0 }
  0x91   : > { %v699_v29 = vpop.f32.mrf.mxu1 }
  0x92   : > { %v700_v30 = vadd.f32 %v699_v29, %v594_v27 }
  0x93   : > { %1264 = vmatmul.msk.bf16.gmra.mxu0 %vm532_vm1, %v1337_v26  ;;  %1318 = vmatmul.msk.bf16.vlgmr.msra.gmra.mxu3 %vm532_vm1, %v1342_v16 }
  0x94   : > { %1288 = vmatmul.msk.bf16.gmra.mxu1 %vm532_vm1, %v1336_v25 }
  0x95   : > { %1314 = vmatmul.msk.bf16.gmra.mxu2 %vm532_vm1, %v1338_v28 }
  0x96   : > { %v1548_v31 = vpop.f32.mrf.mxu3 }
  0x98   : > { %v807_v32 = vpop.f32.mrf.mxu2  ;;  %v596_v34 = vpop.f32.mrf.mxu0 }
  0x99   : > { %v887_v33 = vadd.f32 %v807_v32, %v700_v30  ;;  %v701_v35 = vpop.f32.mrf.mxu1 }
  0x9a   : > { %v702_v36 = vadd.f32 %v701_v35, %v596_v34 }
  0x9b   : > { %v957_v43 = vmul.f32 %v887_v33, %v887_v33 }
  0x9e   : > { %v1550_v37 = vpop.f32.mrf.mxu3 }
  0xa0   : > { %v809_v38 = vpop.f32.mrf.mxu2  ;;  %v599_v40 = vpop.f32.mrf.mxu0 }
  0xa1   : > { %v888_v39 = vadd.f32 %v809_v38, %v702_v36  ;;  %v704_v42 = vpop.f32.mrf.mxu1 }
  0xa2   : > { %v705_v46 = vadd.f32 %v704_v42, %v599_v40 }
  0xa3   : > { %v919_v44 = vadd.f32 %v888_v39, %v887_v33  ;;  %v958_v45 = vmul.f32 %v888_v39, %v888_v39  ;;  %1265 = vmatmul.msk.bf16.gmra.mxu0 %vm532_vm1, %v1338_v28  ;;  %1319 = vmatmul.msk.bf16.gmra.mxu3 %vm532_vm1, %v1343_v18 }
  0xa4   : > { %1289 = vmatmul.msk.bf16.gmra.mxu1 %vm532_vm1, %v1337_v26 }
  0xa5   : > { %v989_v47 = vadd.f32 %v958_v45, %v957_v43  ;;  %1315 = vmatmul.msk.bf16.gmra.mxu2 %vm532_vm1, %v1339_v41 }
  0xa6   : > { %v1557_v48 = vpop.f32.mrf.mxu3 }
  0xa8   : > { %v812_v49 = vpop.f32.mrf.mxu2  ;;  %v601_v51 = vpop.f32.mrf.mxu0 }
  0xa9   : > { %v889_v50 = vadd.f32 %v812_v49, %v705_v46  ;;  %v706_v52 = vpop.f32.mrf.mxu1 }
  0xaa   : > { %v707_v55 = vadd.f32 %v706_v52, %v601_v51 }
  0xab   : > { %v920_v53 = vadd.f32 %v919_v44, %v889_v50  ;;  %v959_v54 = vmul.f32 %v889_v50, %v889_v50 }
  0xad   : > { %v990_v56 = vadd.f32 %v989_v47, %v959_v54 }
  0xae   : > { %v1559_v57 = vpop.f32.mrf.mxu3 }
  0xb0   : > { %v814_v58 = vpop.f32.mrf.mxu2  ;;  %v604_v60 = vpop.f32.mrf.mxu0 }
  0xb1   : > { %v890_v59 = vadd.f32 %v814_v58, %v707_v55  ;;  %v709_v61 = vpop.f32.mrf.mxu1 }
  0xb2   : > { %v710_v0 = vadd.f32 %v709_v61, %v604_v60 }
  0xb3   : > { %v921_v62 = vadd.f32 %v920_v53, %v890_v59  ;;  %v960_v63 = vmul.f32 %v890_v59, %v890_v59  ;;  %1266 = vmatmul.msk.bf16.gmra.mxu0 %vm532_vm1, %v1339_v41  ;;  %1320 = vmatmul.msk.bf16.gmra.mxu3 %vm532_vm1, %v1510_v20 }
  0xb4   : > { %1290 = vmatmul.msk.bf16.gmra.mxu1 %vm532_vm1, %v1338_v28 }
  0xb5   : > { %v991_v1 = vadd.f32 %v990_v56, %v960_v63  ;;  %1316 = vmatmul.msk.bf16.gmra.mxu2 %vm532_vm1, %v1519_v22 }
  0xb6   : > { %v1567_v2 = vpop.f32.mrf.mxu3 }
  0xb8   : > { %v817_v3 = vpop.f32.mrf.mxu2  ;;  %v606_v5 = vpop.f32.mrf.mxu0 }
  0xb9   : > { %v891_v4 = vadd.f32 %v817_v3, %v710_v0  ;;  %v711_v6 = vpop.f32.mrf.mxu1 }
  0xba   : > { %v712_v9 = vadd.f32 %v711_v6, %v606_v5 }
  0xbb   : > { %v922_v7 = vadd.f32 %v921_v62, %v891_v4  ;;  %v961_v8 = vmul.f32 %v891_v4, %v891_v4 }
  0xbd   : > { %v992_v10 = vadd.f32 %v991_v1, %v961_v8 }
  0xbe   : > { %v1573_v11 = vpop.f32.mrf.mxu3 }
  0xc0   : > { %v819_v12 = vpop.f32.mrf.mxu2  ;;  %v609_v16 = vpop.f32.mrf.mxu0 }
  0xc1   : > { %v892_v15 = vadd.f32 %v819_v12, %v712_v9  ;;  %v714_v17 = vpop.f32.mrf.mxu1 }
  0xc2   : > { %v715_v20 = vadd.f32 %v714_v17, %v609_v16 }
  0xc3   : > { %v923_v18 = vadd.f32 %v922_v7, %v892_v15  ;;  %v962_v19 = vmul.f32 %v892_v15, %v892_v15  ;;  %1267 = vmatmul.msk.bf16.gmra.mxu0 %vm532_vm1, %v1519_v22  ;;  %1321 = vmatmul.msk.bf16.gmra.mxu3 %vm532_vm1, %v1345_v14 }
  0xc4   : > { %1291 = vmatmul.msk.bf16.gmra.mxu1 %vm532_vm1, %v1339_v41 }
  0xc5   : > { %v993_v21 = vadd.f32 %v992_v10, %v962_v19  ;;  %1317 = vmatmul.msk.bf16.gmra.mxu2 %vm532_vm1, %v1485_v13 }
  0xc6   : > { %v1581_v23 = vpop.f32.mrf.mxu3 }
  0xc8   : > { %v822_v24 = vpop.f32.mrf.mxu2  ;;  %v611_v26 = vpop.f32.mrf.mxu0 }
  0xc9   : > { %v893_v25 = vadd.f32 %v822_v24, %v715_v20  ;;  %v716_v27 = vpop.f32.mrf.mxu1 }
  0xca   : > { %v717_v30 = vadd.f32 %v716_v27, %v611_v26 }
  0xcb   : > { %v924_v28 = vadd.f32 %v923_v18, %v893_v25  ;;  %v963_v29 = vmul.f32 %v893_v25, %v893_v25 }
  0xcd   : > { %v994_v32 = vadd.f32 %v993_v21, %v963_v29 }
  0xce   : > { %v1583_v33 = vpop.f32.mrf.mxu3 }
  0xd0   : > { %v824_v22 = vpop.f32.mrf.mxu2  ;;  %v614_v35 = vpop.f32.mrf.mxu0 }
  0xd1   : > { %v894_v34 = vadd.f32 %v824_v22, %v717_v30  ;;  %v719_v36 = vpop.f32.mrf.mxu1 }
  0xd2   : > { %v720_v40 = vadd.f32 %v719_v36, %v614_v35 }
  0xd3   : > { %v925_v38 = vadd.f32 %v924_v28, %v894_v34  ;;  %v964_v39 = vmul.f32 %v894_v34, %v894_v34 }
  0xd5   : > { %v995_v13 = vadd.f32 %v994_v32, %v964_v39 }
  0xd6   : > { %v759_v41 = vpop.f32.mrf.mxu3 }
  0xd7   : > { %v1586_v42 = vadd.f32 %v759_v41, %v1548_v31 }
  0xd8   : > { %v827_v43 = vpop.f32.mrf.mxu2  ;;  %v616_v45 = vpop.f32.mrf.mxu0 }
  0xd9   : > { %v895_v44 = vadd.f32 %v827_v43, %v720_v40  ;;  %v721_v46 = vpop.f32.mrf.mxu1 }
  0xda   : > { %v722_v50 = vadd.f32 %v721_v46, %v616_v45 }
  0xdb   : > { %v926_v47 = vadd.f32 %v925_v38, %v895_v44  ;;  %v965_v49 = vmul.f32 %v895_v44, %v895_v44 }
  0xdd   : > { %v996_v51 = vadd.f32 %v995_v13, %v965_v49 }
  0xde   : > { %v761_v52 = vpop.f32.mrf.mxu3 }
  0xdf   : > { %v1589_v53 = vadd.f32 %v761_v52, %v1550_v37 }
  0xe0   : > { %v829_v54 = vpop.f32.mrf.mxu2  ;;  %v619_v56 = vpop.f32.mrf.mxu0 }
  0xe1   : > { %v896_v55 = vadd.f32 %v829_v54, %v722_v50  ;;  %v724_v58 = vpop.f32.mrf.mxu1 }
  0xe2   : > { %v725_v31 = vadd.f32 %v724_v58, %v619_v56 }
  0xe3   : > { %v927_v59 = vadd.f32 %v926_v47, %v896_v55  ;;  %v966_v60 = vmul.f32 %v896_v55, %v896_v55 }
  0xe5   : > { %v997_v61 = vadd.f32 %v996_v51, %v966_v60 }
  0xe6   : > { %v764_v62 = vpop.f32.mrf.mxu3 }
  0xe7   : > { %v1592_v63 = vadd.f32 %v764_v62, %v1557_v48 }
  0xe8   : > { %v832_v0 = vpop.f32.mrf.mxu2  ;;  %v621_v3 = vpop.f32.mrf.mxu0 }
  0xe9   : > { %v897_v1 = vadd.f32 %v832_v0, %v725_v31  ;;  %v726_v4 = vpop.f32.mrf.mxu1 }
  0xea   : > { %v727_v37 = vadd.f32 %v726_v4, %v621_v3 }
  0xeb   : > { %v928_v5 = vadd.f32 %v927_v59, %v897_v1  ;;  %v967_v6 = vmul.f32 %v897_v1, %v897_v1 }
  0xed   : > { %v998_v7 = vadd.f32 %v997_v61, %v967_v6 }
  0xee   : > { %v766_v8 = vpop.f32.mrf.mxu3 }
  0xef   : > { %v1595_v9 = vadd.f32 %v766_v8, %v1559_v57 }
  0xf0   : > { %v834_v10 = vpop.f32.mrf.mxu2  ;;  %v624_v14 = vpop.f32.mrf.mxu0 }
  0xf1   : > { %v898_v12 = vadd.f32 %v834_v10, %v727_v37  ;;  %v729_v15 = vpop.f32.mrf.mxu1 }
  0xf2   : > { %v730_v48 = vadd.f32 %v729_v15, %v624_v14 }
  0xf3   : > { %v929_v16 = vadd.f32 %v928_v5, %v898_v12  ;;  %v968_v17 = vmul.f32 %v898_v12, %v898_v12 }
  0xf5   : > { %v999_v18 = vadd.f32 %v998_v7, %v968_v17 }
  0xf6   : > { %v769_v19 = vpop.f32.mrf.mxu3 }
  0xf7   : > { %v1598_v20 = vadd.f32 %v769_v19, %v1567_v2 }
  0xf8   : > { %v837_v21 = vpop.f32.mrf.mxu2  ;;  %v626_v25 = vpop.f32.mrf.mxu0 }
  0xf9   : > { %v899_v24 = vadd.f32 %v837_v21, %v730_v48  ;;  %v731_v26 = vpop.f32.mrf.mxu1 }
  0xfa   : > { %v732_v31 = vadd.f32 %v731_v26, %v626_v25 }
  0xfb   : > { %v930_v27 = vadd.f32 %v929_v16, %v899_v24  ;;  %v969_v28 = vmul.f32 %v899_v24, %v899_v24 }
  0xfd   : > { %v1000_v57 = vadd.f32 %v999_v18, %v969_v28 }
  0xfe   : > { %v771_v29 = vpop.f32.mrf.mxu3 }
  0xff   : > { %v1601_v30 = vadd.f32 %v771_v29, %v1573_v11 }
 0x100   : > { %v839_v32 = vpop.f32.mrf.mxu2  ;;  %v629_v22 = vpop.f32.mrf.mxu0 }
 0x101   : > { %v734_v34 = vpop.f32.mrf.mxu1  ;;  %v900_v62 = vadd.f32 %v839_v32, %v732_v31 }
 0x102   : > { %v735_v61 = vadd.f32 %v734_v34, %v629_v22 }
 0x103   : > { %v970_v37 = vmul.f32 %v900_v62, %v900_v62  ;;  %v931_v8 = vadd.f32 %v930_v27, %v900_v62 }
 0x105   : > { %v1001_v17 = vadd.f32 %v1000_v57, %v970_v37 }
 0x106   : > { %v774_v35 = vpop.f32.mrf.mxu3 }
 0x107   : > { %v1604_v36 = vadd.f32 %v774_v35, %v1581_v23 }
 0x108   : > { %v842_v2 = vpop.f32.mrf.mxu2  ;;  %v631_v38 = vpop.f32.mrf.mxu0 }
 0x109   : > { %v736_v39 = vpop.f32.mrf.mxu1  ;;  %v901_v3 = vadd.f32 %v842_v2, %v735_v61 }
 0x10a   : > { %v737_v4 = vadd.f32 %v736_v39, %v631_v38 }
 0x10b   : > { %v971_v10 = vmul.f32 %v901_v3, %v901_v3  ;;  %v932_v48 = vadd.f32 %v931_v8, %v901_v3 }
 0x10d   : > { %v1002_v24 = vadd.f32 %v1001_v17, %v971_v10 }
 0x10e   : > { %v1606_v40 = vpop.f32.mrf.mxu3 }
 0x110   : > { %v844_v13 = vpop.f32.mrf.mxu2  ;;  %v634_v41 = vpop.f32.mrf.mxu0 }
 0x111   : > { %v739_v43 = vpop.f32.mrf.mxu1  ;;  %v902_v7 = vadd.f32 %v844_v13, %v737_v4 }
 0x112   : > { %v740_v5 = vadd.f32 %v739_v43, %v634_v41 }
 0x113   : > { %v972_v18 = vmul.f32 %v902_v7, %v902_v7  ;;  %v933_v25 = vadd.f32 %v932_v48, %v902_v7 }
 0x115   : > { %v1003_v27 = vadd.f32 %v1002_v24, %v972_v18 }
 0x116   : > { %v1608_v44 = vpop.f32.mrf.mxu3 }
 0x117   : > { %v911_v37 = vadd.f32 %v1608_v44, %v1586_v42 }
 0x118   : > { %v847_v45 = vpop.f32.mrf.mxu2  ;;  %v636_v11 = vpop.f32.mrf.mxu0 }
 0x119   : > { %v741_v46 = vpop.f32.mrf.mxu1  ;;  %v903_v12 = vadd.f32 %v847_v45, %v740_v5  ;;  %v981_v18 = vmul.f32 %v911_v37, %v911_v37 }
 0x11a   : > { %v742_v15 = vadd.f32 %v741_v46, %v636_v11 }
 0x11b   : > { %v973_v26 = vmul.f32 %v903_v12, %v903_v12  ;;  %v934_v35 = vadd.f32 %v933_v25, %v903_v12 }
 0x11d   : > { %v1004_v39 = vadd.f32 %v1003_v27, %v973_v26 }
 0x11e   : > { %v1610_v49 = vpop.f32.mrf.mxu3 }
 0x120   : > { %v849_v47 = vpop.f32.mrf.mxu2  ;;  %v639_v50 = vpop.f32.mrf.mxu0 }
 0x121   : > { %v744_v51 = vpop.f32.mrf.mxu1  ;;  %v904_v21 = vadd.f32 %v849_v47, %v742_v15  ;;  %v912_v15 = vadd.f32 %v1610_v49, %v1589_v53 }
 0x122   : > { %v745_v16 = vadd.f32 %v744_v51, %v639_v50 }
 0x123   : > { %v974_v2 = vmul.f32 %v904_v21, %v904_v21  ;;  %v935_v13 = vadd.f32 %v934_v35, %v904_v21  ;;  %v982_v25 = vmul.f32 %v912_v15, %v912_v15 }
 0x125   : > { %v1005_v47 = vadd.f32 %v1004_v39, %v974_v2 }
 0x126   : > { %v1612_v54 = vpop.f32.mrf.mxu3 }
 0x128   : > { %v852_v23 = vpop.f32.mrf.mxu2  ;;  %v641_v52 = vpop.f32.mrf.mxu0 }
 0x129   : > { %v746_v55 = vpop.f32.mrf.mxu1  ;;  %v905_v32 = vadd.f32 %v852_v23, %v745_v16 }
 0x12a   : > { %v747_v22 = vadd.f32 %v746_v55, %v641_v52 }
 0x12b   : > { %v975_v41 = vmul.f32 %v905_v32, %v905_v32  ;;  %v936_v50 = vadd.f32 %v935_v13, %v905_v32 }
 0x12d   : > { %v1006_v61 = vadd.f32 %v1005_v47, %v975_v41 }
 0x12e   : > { %v1614_v60 = vpop.f32.mrf.mxu3 }
 0x12f   : > { %v914_v42 = vadd.f32 %v1614_v60, %v1595_v9 }
 0x130   : > { %v854_v56 = vpop.f32.mrf.mxu2  ;;  %v644_v58 = vpop.f32.mrf.mxu0 }
 0x131   : > { %v749_v59 = vpop.f32.mrf.mxu1  ;;  %v906_v38 = vadd.f32 %v854_v56, %v747_v22  ;;  %v984_v32 = vmul.f32 %v914_v42, %v914_v42 }
 0x132   : > { %v750_v34 = vadd.f32 %v749_v59, %v644_v58 }
 0x133   : > { %v976_v51 = vmul.f32 %v906_v38, %v906_v38  ;;  %v937_v23 = vadd.f32 %v936_v50, %v906_v38 }
 0x135   : > { %v1007_v62 = vadd.f32 %v1006_v61, %v976_v51 }
 0x136   : > { %v1616_v14 = vpop.f32.mrf.mxu3 }
 0x138   : > { %v857_v0 = vpop.f32.mrf.mxu2  ;;  %v646_v1 = vpop.f32.mrf.mxu0 }
 0x139   : > { %v751_v6 = vpop.f32.mrf.mxu1  ;;  %v907_v57 = vadd.f32 %v857_v0, %v750_v34 }
 0x13a   : > { %v752_v43 = vadd.f32 %v751_v6, %v646_v1 }
 0x13b   : > { %v977_v52 = vmul.f32 %v907_v57, %v907_v57  ;;  %v938_v56 = vadd.f32 %v937_v23, %v907_v57 }
 0x13d   : > { %v1008_v4 = vadd.f32 %v1007_v62, %v977_v52 }
 0x13e   : > { %v879_v11 = vpop.f32.mrf.mxu3 }
 0x13f   : > { %v916_v22 = vadd.f32 %v879_v11, %v1601_v30 }
 0x140   : > { %v859_v19 = vpop.f32.mrf.mxu2  ;;  %v649_v28 = vpop.f32.mrf.mxu0 }
 0x141   : > { %v754_v29 = vpop.f32.mrf.mxu1  ;;  %v908_v31 = vadd.f32 %v859_v19, %v752_v43  ;;  %v913_v19 = vadd.f32 %v1612_v54, %v1592_v63  ;;  %v777_v63 = vadd.f32 %v1606_v40, %v1583_v33  ;;  %v986_v38 = vmul.f32 %v916_v22, %v916_v22 }
 0x142   : > { %v755_v45 = vadd.f32 %v754_v29, %v649_v28  ;;  %v915_v29 = vadd.f32 %v1616_v14, %v1598_v20 }
 0x143   : > { %v978_v3 = vmul.f32 %v908_v31, %v908_v31  ;;  %v939_v5 = vadd.f32 %v938_v56, %v908_v31  ;;  %v983_v28 = vmul.f32 %v913_v19, %v913_v19 }
 0x144   : > { %v985_v35 = vmul.f32 %v915_v29, %v915_v29 }
 0x145   : > { %v1009_v7 = vadd.f32 %v1008_v4, %v978_v3 }
 0x146   : > { %v882_v12 = vpop.f32.mrf.mxu3 }
 0x147   : > { %v917_v9 = vadd.f32 %v882_v12, %v1604_v36 }
 0x148   : > { %v862_v46 = vpop.f32.mrf.mxu2  ;;  %v651_v58 = vpop.f32.mrf.mxu0 }
 0x149   : > { %v909_v55 = vadd.f32 %v862_v46, %v755_v45  ;;  %v756_v59 = vpop.f32.mrf.mxu1  ;;  %v987_v14 = vmul.f32 %v917_v9, %v917_v9 }
 0x14a   : > { %v757_v1 = vadd.f32 %v756_v59, %v651_v58 }
 0x14b   : > { %v979_v0 = vmul.f32 %v909_v55, %v909_v55  ;;  %v940_v8 = vadd.f32 %v939_v5, %v909_v55 }
 0x14d   : > { %v1010_v16 = vadd.f32 %v1009_v7, %v979_v0 }
 0x14e   : > { %v884_v54 = vpop.f32.mrf.mxu3 }
 0x14f   : > { %v918_v39 = vadd.f32 %v884_v54, %v777_v63 }
 0x150   : > { %v864_v6 = vpop.f32.mrf.mxu2 }
 0x151   : > { %v910_v10 = vadd.f32 %v864_v6, %v757_v1  ;;  %v988_v43 = vmul.f32 %v918_v39, %v918_v39 }
 0x153   : > { %v941_v17 = vadd.f32 %v940_v8, %v910_v10  ;;  %v980_v48 = vmul.f32 %v910_v10, %v910_v10 }
 0x155   : > { %v942_v21 = vadd.f32 %v941_v17, %v911_v37  ;;  %v1011_v24 = vadd.f32 %v1010_v16, %v980_v48 }
 0x157   : > { %v943_v44 = vadd.f32 %v942_v21, %v912_v15  ;;  %v1012_v26 = vadd.f32 %v1011_v24, %v981_v18 }
 0x159   : > { %v944_v53 = vadd.f32 %v943_v44, %v913_v19  ;;  %v1013_v49 = vadd.f32 %v1012_v26, %v982_v25 }
 0x15b   : > { %v1014_v34 = vadd.f32 %v1013_v49, %v983_v28  ;;  %v945_v27 = vadd.f32 %v944_v53, %v914_v42 }
 0x15d   : > { %v946_v60 = vadd.f32 %v945_v27, %v915_v29  ;;  %v1015_v2 = vadd.f32 %v1014_v34, %v984_v32 }
 0x15f   : > { %v947_v13 = vadd.f32 %v946_v60, %v916_v22  ;;  %v1016_v20 = vadd.f32 %v1015_v2, %v985_v35 }
 0x161   : > { %v948_v41 = vadd.f32 %v947_v13, %v917_v9  ;;  %v1017_v57 = vadd.f32 %v1016_v20, %v986_v38 }
 0x163   : > { %v949_v30 = vadd.f32 %v948_v41, %v918_v39  ;;  %v1018_v45 = vadd.f32 %v1017_v57, %v987_v14 }
 0x165   : > { %v950_v11 = vrot.slane %v949_v30, 4  ;;  %v1019_v33 = vadd.f32 %v1018_v45, %v988_v43 }
 0x167   : > { %v951_v40 = vadd.f32 %v950_v11, %v949_v30  ;;  %v1020_v46 = vrot.slane %v1019_v33, 4 }
 0x169   : > { %v952_v47 = vrot.slane %v951_v40, 2  ;;  %v1021_v36 = vadd.f32 %v1020_v46, %v1019_v33 }
 0x16b   : > { %v953_v50 = vadd.f32 %v952_v47, %v951_v40  ;;  %v1022_v51 = vrot.slane %v1021_v36, 2 }
 0x16d   : > { %v954_v31 = vrot.slane %v953_v50, 1  ;;  %v1023_v61 = vadd.f32 %v1022_v51, %v1021_v36 }
 0x16f   : > { %v955_v23 = vadd.f32 %v954_v31, %v953_v50  ;;  %v1024_v52 = vrot.slane %v1023_v61, 1 }
 0x171   : > { %956 = vst [vmem:[%s398_s27] sm:$0x1] %v955_v23  ;;  %v1025_v55 = vadd.f32 %v1024_v52, %v1023_v61 }
 0x173   : > { %1026 = vst [vmem:[%s404_s30] sm:$0x1] %v1025_v55 }
 0x174 PF: > { %s16_s20 = sadd.s32 1, %s1401_s20   ;;  %s1655_s18 = smov %s1397_s19 }
 0x175   : > { %p13_p5 = scmp.ge.s32.totalorder %s16_s20, 4   ;;  %s1656_s19 = smov %s1658_s21 }
 0x177   :  { %15 = sbr.rel (!%p13_p5) target bundleno = 2 (0x2), region = 86 }

// kernel: double_conv_forward.5
= control target key start
LH: loop header
LB: loop body
LE: loop exit
PB: predicated region body
PF: predicated region fallthrough
CT: control target
= control target key end

     0   :  { %s1668_s21 = smov 0   ;;  %s1670_s22 = smov 0   ;;  %s1962_s0 = inlined_call_operand.vmem [shape: bf16[2,18,16,12], index: 0, kind: input, shape index: {}, may-alias: {0,1,2}]   ;;  %s1963_s1 = inlined_call_operand.vmem [shape: bf16[2,18,16,12], index: 1, kind: input, shape index: {}, may-alias: {0,1,2}]   ;;  %s1964_s2 = inlined_call_operand.vmem [shape: bf16[2,18,16,12], index: 2, kind: input, shape index: {}, may-alias: {0,1,2}]   ;;  %s1965_s3 = inlined_call_operand.vmem [shape: bf16[3,12,128], index: 3, kind: input, shape index: {}]   ;;  %s1966_s4 = inlined_call_operand.vmem [shape: f32[1,128], index: 4, kind: input, shape index: {}]   ;;  %s1967_s5 = inlined_call_operand.vmem [shape: f32[1,128], index: 5, kind: input, shape index: {}]   ;;  %s1968_s6 = inlined_call_operand.vmem [shape: bf16[2,16,16,128], index: 6, kind: output, shape index: {}]  }
   0x1   :  { %s1672_s23 = smov 0  }
   0x2 LB: > { %s28_s24 = sadd.s32 1, %s1627_s22  ;;  %p1312_p0 = scmp.ge.s32.totalorder %s1631_s23, 1  ;;  %s1631_s23 = sphi %s1672_s23, %s16_s23   ;;  %s1627_s22 = sphi %s1670_s22, %s1970_s22   ;;  %s1623_s21 = sphi %s1668_s21, %s1969_s21  }
   0x3   : > { %p30_p1 = scmp.ge.s32.totalorder %s28_s24, 2  ;;  %p296_p2 = scmp.lt.s32.totalorder %s1631_s23, 3 }
   0x5   : > { %s1972_s24 = smov (%p30_p1, %s28_s24), 0  ;;  %p297_p3 = pnand %p1312_p0, %p296_p2 }
   0x6   : > { %p370_p4 = scmp.lt.s32.totalorder (!%p297_p3), %s1623_s21, 1 }
   0x7   : > { %300 = sbr.rel (%p297_p3) target bundleno = 349 (0x15d), region = 44 }
   0xc   : > { %v1386_v0 = vld [vmem:[%s1965_s3 + $0x8] sm:$0xf]  ;;  %v1480_v1 = vld [vmem:[%s1965_s3 + $0x8] sm:$0x30]  ;;  %vm600_vm0 = vcmask 1045504   ;;  %s1974_s21 = smov (!%p370_p4, %s1623_s21), 1 }
   0xd   : > { %v1387_v2 = vor.u32 %v1480_v1, %v1386_v0  ;;  %v1410_v3 = vld [vmem:[%s1965_s3] sm:$0xf]  ;;  %v1479_v4 = vld [vmem:[%s1965_s3] sm:$0x30]  ;;  %v1436_v5 = vld [vmem:[%s1965_s3 + $0x10] sm:$0xf] }
   0xe   : > { %v1411_v6 = vor.u32 %v1479_v4, %v1410_v3  ;;  %v1481_v7 = vld [vmem:[%s1965_s3 + $0x10] sm:$0x30]  ;;  %s1709_s13 = smul.u32 144, %s1974_s21  ;;  %vm551_vm1 = vcmask 97280   ;;  %v1788_v34 = vld [vmem:[%s1966_s4] ss:$0 sm:$0xff] }
   0xf   : > { %v602_v8 = vsel %vm600_vm0, %v1387_v2, 0  ;;  %v1437_v9 = vor.u32 %v1481_v7, %v1436_v5  ;;  %v1794_v38 = vld [vmem:[%s1967_s5] ss:$0 sm:$0xff]  ;;  %s1460_s29 = sshll.u32 %s1974_s21, 7 }
  0x10   : > { %611 = vmatpush.bf16.msra.mxu0 %v602_v8  ;;  %1577 = vmatpush.bf16.msra.mxu3 %v602_v8  ;;  %v707_v10 = vsel %vm600_vm0, %v1411_v6, 0  ;;  %s1716_s16 = scalar_lea.vmem %s1962_s0, %s1709_s13  ;;  %s1457_s17 = sadd.s32 128, %s1709_s13 }
  0x11   : > { %716 = vmatpush.bf16.msra.mxu1 %v707_v10  ;;  %v815_v11 = vsel %vm600_vm0, %v1437_v9, 0  ;;  %v1462_v12 = vld [vmem:[%s1716_s16 + $0x8] sm:$0xff]  ;;  %v1461_v14 = vld [vmem:[%s1716_s16] sm:$0xff]  ;;  %v1463_v15 = vld [vmem:[%s1716_s16 + $0x10] sm:$0xff]  ;;  %s395_s20 = scalar_lea.vmem %s1963_s1, %s1457_s17  ;;  %s1815_s8 = scalar_lea.vmem %s1968_s6, %s1460_s29 }
  0x12   : > { %824 = vmatpush.bf16.msra.mxu2 %v815_v11  ;;  %v1720_v13 = vld [vmem:[%s1716_s16 + $0x68] sm:$0xff]  ;;  %v1475_v16 = vld [vmem:[%s1716_s16 + $0x70] sm:$0xff]  ;;  %v1464_v17 = vld [vmem:[%s1716_s16 + $0x18] sm:$0xff]  ;;  %s1459_s21 = sadd.s32 136, %s1709_s13 }
  0x13   : > { %1388 = vmatmul.msk.bf16.vlgmr.msra.gmra.mxu0 %vm551_vm1, %v1462_v12  ;;  %1400 = vmatmul.msk.bf16.vlgmr.msra.gmra.mxu3 %vm551_vm1, %v1720_v13  ;;  %v1476_v18 = vld [vmem:[%s1716_s16 + $0x78] sm:$0xff]  ;;  %v1465_v19 = vld [vmem:[%s1716_s16 + $0x20] sm:$0xff]  ;;  %v1466_v21 = vld [vmem:[%s1716_s16 + $0x28] sm:$0xff]  ;;  %s409_s11 = scalar_lea.vmem %s1964_s2, %s1459_s21 }
  0x14   : > { %1578 = vmatpush.bf16.msrb.mxu3 %v707_v10  ;;  %1412 = vmatmul.msk.bf16.vlgmr.msra.gmra.mxu1 %vm551_vm1, %v1461_v14  ;;  %v1745_v20 = vld [vmem:[%s395_s20] sm:$0xff]  ;;  %v1467_v23 = vld [vmem:[%s1716_s16 + $0x30] sm:$0xff]  ;;  %v1468_v24 = vld [vmem:[%s1716_s16 + $0x38] sm:$0xff] }
  0x15   : > { %1438 = vmatmul.msk.bf16.vlgmr.msra.gmra.mxu2 %vm551_vm1, %v1463_v15  ;;  %v1754_v22 = vld [vmem:[%s1716_s16 + $0x60] sm:$0xff]  ;;  %v1470_v26 = vld [vmem:[%s1716_s16 + $0x48] sm:$0xff]  ;;  %v1471_v28 = vld [vmem:[%s1716_s16 + $0x50] sm:$0xff] }
  0x16   : > { %v1469_v25 = vld [vmem:[%s1716_s16 + $0x40] sm:$0xff]  ;;  %v1800_v45 = vld [vmem:[%s1716_s16 + $0x58] sm:$0xff] }
  0x18   : > { %1579 = vmatpush.bf16.msra.mxu3 %v815_v11 }
  0x23   : > { %1389 = vmatmul.msk.bf16.gmra.mxu0 %vm551_vm1, %v1463_v15  ;;  %1401 = vmatmul.msk.bf16.gmra.mxu3 %vm551_vm1, %v1475_v16 }
  0x24   : > { %1413 = vmatmul.msk.bf16.gmra.mxu1 %vm551_vm1, %v1462_v12 }
  0x25   : > { %1439 = vmatmul.msk.bf16.gmra.mxu2 %vm551_vm1, %v1464_v17 }
  0x33   : > { %1390 = vmatmul.msk.bf16.gmra.mxu0 %vm551_vm1, %v1464_v17  ;;  %1402 = vmatmul.msk.bf16.gmra.mxu3 %vm551_vm1, %v1476_v18 }
  0x34   : > { %1414 = vmatmul.msk.bf16.gmra.mxu1 %vm551_vm1, %v1463_v15 }
  0x35   : > { %1440 = vmatmul.msk.bf16.gmra.mxu2 %vm551_vm1, %v1465_v19 }
  0x43   : > { %1391 = vmatmul.msk.bf16.gmra.mxu0 %vm551_vm1, %v1465_v19  ;;  %1403 = vmatmul.msk.bf16.gmra.mxu3 %vm551_vm1, %v1745_v20 }
  0x44   : > { %1415 = vmatmul.msk.bf16.gmra.mxu1 %vm551_vm1, %v1464_v17 }
  0x45   : > { %1441 = vmatmul.msk.bf16.gmra.mxu2 %vm551_vm1, %v1466_v21 }
  0x53   : > { %1392 = vmatmul.msk.bf16.gmra.mxu0 %vm551_vm1, %v1466_v21  ;;  %1424 = vmatmul.msk.bf16.vlgmr.msrb.gmra.mxu3 %vm551_vm1, %v1754_v22 }
  0x54   : > { %1416 = vmatmul.msk.bf16.gmra.mxu1 %vm551_vm1, %v1465_v19 }
  0x55   : > { %1442 = vmatmul.msk.bf16.gmra.mxu2 %vm551_vm1, %v1467_v23 }
  0x63   : > { %1393 = vmatmul.msk.bf16.gmra.mxu0 %vm551_vm1, %v1467_v23  ;;  %1425 = vmatmul.msk.bf16.gmra.mxu3 %vm551_vm1, %v1720_v13 }
  0x64   : > { %1417 = vmatmul.msk.bf16.gmra.mxu1 %vm551_vm1, %v1466_v21 }
  0x65   : > { %1443 = vmatmul.msk.bf16.gmra.mxu2 %vm551_vm1, %v1468_v24 }
  0x73   : > { %1394 = vmatmul.msk.bf16.gmra.mxu0 %vm551_vm1, %v1468_v24  ;;  %1426 = vmatmul.msk.bf16.gmra.mxu3 %vm551_vm1, %v1475_v16 }
  0x74   : > { %1418 = vmatmul.msk.bf16.gmra.mxu1 %vm551_vm1, %v1467_v23  ;;  %v1478_v23 = vld [vmem:[%s409_s11] sm:$0xff] }
  0x75   : > { %1444 = vmatmul.msk.bf16.gmra.mxu2 %vm551_vm1, %v1469_v25 }
  0x83   : > { %1395 = vmatmul.msk.bf16.gmra.mxu0 %vm551_vm1, %v1469_v25  ;;  %1427 = vmatmul.msk.bf16.gmra.mxu3 %vm551_vm1, %v1476_v18 }
  0x84   : > { %1419 = vmatmul.msk.bf16.gmra.mxu1 %vm551_vm1, %v1468_v24 }
  0x85   : > { %1445 = vmatmul.msk.bf16.gmra.mxu2 %vm551_vm1, %v1470_v26 }
  0x90   : > { %v613_v27 = vpop.f32.mrf.mxu0 }
  0x91   : > { %v718_v29 = vpop.f32.mrf.mxu1 }
  0x92   : > { %v719_v30 = vadd.f32 %v718_v29, %v613_v27 }
  0x93   : > { %1396 = vmatmul.msk.bf16.gmra.mxu0 %vm551_vm1, %v1470_v26  ;;  %1450 = vmatmul.msk.bf16.vlgmr.msra.gmra.mxu3 %vm551_vm1, %v1475_v16 }
  0x94   : > { %1420 = vmatmul.msk.bf16.gmra.mxu1 %vm551_vm1, %v1469_v25 }
  0x95   : > { %1446 = vmatmul.msk.bf16.gmra.mxu2 %vm551_vm1, %v1471_v28 }
  0x96   : > { %v1783_v31 = vpop.f32.mrf.mxu3 }
  0x98   : > { %v826_v32 = vpop.f32.mrf.mxu2  ;;  %v615_v35 = vpop.f32.mrf.mxu0 }
  0x99   : > { %v906_v33 = vadd.f32 %v826_v32, %v719_v30  ;;  %v720_v36 = vpop.f32.mrf.mxu1 }
  0x9a   : > { %v721_v39 = vadd.f32 %v720_v36, %v615_v35 }
  0x9b   : > { %v942_v37 = vmul.f32 %v1788_v34, %v906_v33 }
  0x9d   : > { %v978_v42 = vadd.f32 %v1794_v38, %v942_v37 }
  0x9e   : > { %v1796_v40 = vpop.f32.mrf.mxu3 }
  0x9f   : > { %v1042_v48 = vmul.f32 0.0, %v978_v42  ;;  %vm1010_vm2 = vcmp.gt.f32.partialorder %v978_v42, 0.0 }
  0xa0   : > { %v828_v41 = vpop.f32.mrf.mxu2  ;;  %v618_v44 = vpop.f32.mrf.mxu0 }
  0xa1   : > { %v907_v43 = vadd.f32 %v828_v41, %v721_v39  ;;  %v723_v46 = vpop.f32.mrf.mxu1  ;;  %v1074_v54 = vsel %vm1010_vm2, %v978_v42, %v1042_v48 }
  0xa2   : > { %v724_v50 = vadd.f32 %v723_v46, %v618_v44 }
  0xa3   : > { %v943_v47 = vmul.f32 %v1788_v34, %v907_v43  ;;  %1397 = vmatmul.msk.bf16.gmra.mxu0 %vm551_vm1, %v1471_v28  ;;  %1451 = vmatmul.msk.bf16.gmra.mxu3 %vm551_vm1, %v1476_v18 }
  0xa4   : > { %1421 = vmatmul.msk.bf16.gmra.mxu1 %vm551_vm1, %v1470_v26 }
  0xa5   : > { %v979_v49 = vadd.f32 %v1794_v38, %v943_v47  ;;  %1447 = vmatmul.msk.bf16.gmra.mxu2 %vm551_vm1, %v1800_v45 }
  0xa6   : > { %v1810_v52 = vpop.f32.mrf.mxu3 }
  0xa7   : > { %vm1011_vm3 = vcmp.gt.f32.partialorder %v979_v49, 0.0  ;;  %v1043_v51 = vmul.f32 0.0, %v979_v49 }
  0xa8   : > { %v831_v53 = vpop.f32.mrf.mxu2  ;;  %v620_v57 = vpop.f32.mrf.mxu0 }
  0xa9   : > { %v1075_v55 = vsel %vm1011_vm3, %v979_v49, %v1043_v51  ;;  %v908_v56 = vadd.f32 %v831_v53, %v724_v50  ;;  %v725_v59 = vpop.f32.mrf.mxu1 }
  0xaa   : > { %v1485_v58 = vpack.c.bf16 %v1075_v55, %v1074_v54  ;;  %v726_v61 = vadd.f32 %v725_v59, %v620_v57 }
  0xab   : > { %v944_v60 = vmul.f32 %v1788_v34, %v908_v56 }
  0xac   : > { %1486 = vst [vmem:[%s1815_s8] sm:$0xff] %v1485_v58  }
  0xad   : > { %v980_v0 = vadd.f32 %v1794_v38, %v944_v60 }
  0xae   : > { %v1819_v62 = vpop.f32.mrf.mxu3 }
  0xaf   : > { %v1044_v5 = vmul.f32 0.0, %v980_v0  ;;  %vm1012_vm4 = vcmp.gt.f32.partialorder %v980_v0, 0.0 }
  0xb0   : > { %v833_v63 = vpop.f32.mrf.mxu2  ;;  %v623_v2 = vpop.f32.mrf.mxu0 }
  0xb1   : > { %v909_v1 = vadd.f32 %v833_v63, %v726_v61  ;;  %v728_v3 = vpop.f32.mrf.mxu1  ;;  %v1076_v11 = vsel %vm1012_vm4, %v980_v0, %v1044_v5 }
  0xb2   : > { %v729_v7 = vadd.f32 %v728_v3, %v623_v2 }
  0xb3   : > { %v945_v4 = vmul.f32 %v1788_v34, %v909_v1  ;;  %1398 = vmatmul.msk.bf16.gmra.mxu0 %vm551_vm1, %v1800_v45  ;;  %1452 = vmatmul.msk.bf16.gmra.mxu3 %vm551_vm1, %v1745_v20 }
  0xb4   : > { %1422 = vmatmul.msk.bf16.gmra.mxu1 %vm551_vm1, %v1471_v28 }
  0xb5   : > { %v981_v6 = vadd.f32 %v1794_v38, %v945_v4  ;;  %1448 = vmatmul.msk.bf16.gmra.mxu2 %vm551_vm1, %v1754_v22 }
  0xb6   : > { %v1831_v9 = vpop.f32.mrf.mxu3 }
  0xb7   : > { %vm1013_vm5 = vcmp.gt.f32.partialorder %v981_v6, 0.0  ;;  %v1045_v8 = vmul.f32 0.0, %v981_v6 }
  0xb8   : > { %v836_v10 = vpop.f32.mrf.mxu2  ;;  %v625_v15 = vpop.f32.mrf.mxu0 }
  0xb9   : > { %v1077_v12 = vsel %vm1013_vm5, %v981_v6, %v1045_v8  ;;  %v910_v14 = vadd.f32 %v836_v10, %v729_v7  ;;  %v730_v17 = vpop.f32.mrf.mxu1 }
  0xba   : > { %v1490_v16 = vpack.c.bf16 %v1077_v12, %v1076_v11  ;;  %v731_v19 = vadd.f32 %v730_v17, %v625_v15 }
  0xbb   : > { %v946_v18 = vmul.f32 %v1788_v34, %v910_v14 }
  0xbc   : > { %1562 = vst [vmem:[%s1815_s8 + $0x8] sm:$0xff] %v1490_v16  }
  0xbd   : > { %v982_v24 = vadd.f32 %v1794_v38, %v946_v18 }
  0xbe   : > { %v1839_v20 = vpop.f32.mrf.mxu3 }
  0xbf   : > { %v1046_v29 = vmul.f32 0.0, %v982_v24  ;;  %vm1014_vm6 = vcmp.gt.f32.partialorder %v982_v24, 0.0 }
  0xc0   : > { %v838_v21 = vpop.f32.mrf.mxu2  ;;  %v628_v26 = vpop.f32.mrf.mxu0 }
  0xc1   : > { %v911_v25 = vadd.f32 %v838_v21, %v731_v19  ;;  %v733_v27 = vpop.f32.mrf.mxu1 }
  0xc2   : > { %v734_v32 = vadd.f32 %v733_v27, %v628_v26 }
  0xc3   : > { %v947_v28 = vmul.f32 %v1788_v34, %v911_v25  ;;  %1399 = vmatmul.msk.bf16.gmra.mxu0 %vm551_vm1, %v1754_v22  ;;  %1453 = vmatmul.msk.bf16.gmra.mxu3 %vm551_vm1, %v1478_v23  ;;  %v1078_v22 = vsel %vm1014_vm6, %v982_v24, %v1046_v29 }
  0xc4   : > { %1423 = vmatmul.msk.bf16.gmra.mxu1 %vm551_vm1, %v1800_v45 }
  0xc5   : > { %v983_v30 = vadd.f32 %v1794_v38, %v947_v28  ;;  %1449 = vmatmul.msk.bf16.gmra.mxu2 %vm551_vm1, %v1720_v13 }
  0xc6   : > { %v1851_v35 = vpop.f32.mrf.mxu3 }
  0xc7   : > { %vm1015_vm7 = vcmp.gt.f32.partialorder %v983_v30, 0.0  ;;  %v1047_v33 = vmul.f32 0.0, %v983_v30 }
  0xc8   : > { %v841_v36 = vpop.f32.mrf.mxu2  ;;  %v630_v41 = vpop.f32.mrf.mxu0 }
  0xc9   : > { %v1079_v37 = vsel %vm1015_vm7, %v983_v30, %v1047_v33  ;;  %v912_v39 = vadd.f32 %v841_v36, %v734_v32  ;;  %v735_v43 = vpop.f32.mrf.mxu1 }
  0xca   : > { %v1495_v42 = vpack.c.bf16 %v1079_v37, %v1078_v22  ;;  %v736_v46 = vadd.f32 %v735_v43, %v630_v41 }
  0xcb   : > { %v948_v44 = vmul.f32 %v1788_v34, %v912_v39 }
  0xcc   : > { %1563 = vst [vmem:[%s1815_s8 + $0x10] sm:$0xff] %v1495_v42  }
  0xcd   : > { %v984_v13 = vadd.f32 %v1794_v38, %v948_v44 }
  0xce   : > { %v1855_v45 = vpop.f32.mrf.mxu3 }
  0xcf   : > { %v1048_v53 = vmul.f32 0.0, %v984_v13  ;;  %vm1016_vm8 = vcmp.gt.f32.partialorder %v984_v13, 0.0 }
  0xd0   : > { %v843_v47 = vpop.f32.mrf.mxu2  ;;  %v633_v49 = vpop.f32.mrf.mxu0 }
  0xd1   : > { %v913_v48 = vadd.f32 %v843_v47, %v736_v46  ;;  %v738_v50 = vpop.f32.mrf.mxu1  ;;  %v1080_v60 = vsel %vm1016_vm8, %v984_v13, %v1048_v53 }
  0xd2   : > { %v739_v55 = vadd.f32 %v738_v50, %v633_v49 }
  0xd3   : > { %v949_v51 = vmul.f32 %v1788_v34, %v913_v48 }
  0xd5   : > { %v985_v54 = vadd.f32 %v1794_v38, %v949_v51 }
  0xd6   : > { %v778_v57 = vpop.f32.mrf.mxu3 }
  0xd7   : > { %vm1017_vm9 = vcmp.gt.f32.partialorder %v985_v54, 0.0  ;;  %v1049_v56 = vmul.f32 0.0, %v985_v54  ;;  %v1861_v58 = vadd.f32 %v778_v57, %v1783_v31 }
  0xd8   : > { %v846_v59 = vpop.f32.mrf.mxu2  ;;  %v635_v0 = vpop.f32.mrf.mxu0 }
  0xd9   : > { %v1081_v61 = vsel %vm1017_vm9, %v985_v54, %v1049_v56  ;;  %v914_v63 = vadd.f32 %v846_v59, %v739_v55  ;;  %v740_v2 = vpop.f32.mrf.mxu1 }
  0xda   : > { %v1500_v1 = vpack.c.bf16 %v1081_v61, %v1080_v60  ;;  %v741_v4 = vadd.f32 %v740_v2, %v635_v0 }
  0xdb   : > { %v950_v3 = vmul.f32 %v1788_v34, %v914_v63 }
  0xdc   : > { %1564 = vst [vmem:[%s1815_s8 + $0x18] sm:$0xff] %v1500_v1  }
  0xdd   : > { %v986_v7 = vadd.f32 %v1794_v38, %v950_v3 }
  0xde   : > { %v1865_v5 = vpop.f32.mrf.mxu3 }
  0xdf   : > { %v1050_v12 = vmul.f32 0.0, %v986_v7  ;;  %vm1018_vm10 = vcmp.gt.f32.partialorder %v986_v7, 0.0 }
  0xe0   : > { %v848_v6 = vpop.f32.mrf.mxu2  ;;  %v638_v10 = vpop.f32.mrf.mxu0 }
  0xe1   : > { %v915_v8 = vadd.f32 %v848_v6, %v741_v4  ;;  %v743_v31 = vpop.f32.mrf.mxu1  ;;  %v1082_v21 = vsel %vm1018_vm10, %v986_v7, %v1050_v12 }
  0xe2   : > { %v744_v15 = vadd.f32 %v743_v31, %v638_v10 }
  0xe3   : > { %v951_v11 = vmul.f32 %v1788_v34, %v915_v8 }
  0xe5   : > { %v987_v14 = vadd.f32 %v1794_v38, %v951_v11 }
  0xe6   : > { %v783_v17 = vpop.f32.mrf.mxu3 }
  0xe7   : > { %vm1019_vm11 = vcmp.gt.f32.partialorder %v987_v14, 0.0  ;;  %v1051_v16 = vmul.f32 0.0, %v987_v14  ;;  %v1871_v18 = vadd.f32 %v783_v17, %v1810_v52 }
  0xe8   : > { %v851_v19 = vpop.f32.mrf.mxu2  ;;  %v640_v25 = vpop.f32.mrf.mxu0 }
  0xe9   : > { %v1083_v23 = vsel %vm1019_vm11, %v987_v14, %v1051_v16  ;;  %v916_v24 = vadd.f32 %v851_v19, %v744_v15  ;;  %v745_v27 = vpop.f32.mrf.mxu1 }
  0xea   : > { %v1505_v26 = vpack.c.bf16 %v1083_v23, %v1082_v21  ;;  %v746_v29 = vadd.f32 %v745_v27, %v640_v25 }
  0xeb   : > { %v952_v28 = vmul.f32 %v1788_v34, %v916_v24 }
  0xec   : > { %1565 = vst [vmem:[%s1815_s8 + $0x20] sm:$0xff] %v1505_v26  }
  0xed   : > { %v988_v33 = vadd.f32 %v1794_v38, %v952_v28 }
  0xee   : > { %v1875_v30 = vpop.f32.mrf.mxu3 }
  0xef   : > { %v1052_v39 = vmul.f32 0.0, %v988_v33  ;;  %vm1020_vm12 = vcmp.gt.f32.partialorder %v988_v33, 0.0 }
  0xf0   : > { %v853_v32 = vpop.f32.mrf.mxu2  ;;  %v643_v22 = vpop.f32.mrf.mxu0 }
  0xf1   : > { %v917_v36 = vadd.f32 %v853_v32, %v746_v29  ;;  %v748_v52 = vpop.f32.mrf.mxu1  ;;  %v1084_v13 = vsel %vm1020_vm12, %v988_v33, %v1052_v39 }
  0xf2   : > { %v749_v42 = vadd.f32 %v748_v52, %v643_v22 }
  0xf3   : > { %v953_v37 = vmul.f32 %v1788_v34, %v917_v36 }
  0xf5   : > { %v989_v41 = vadd.f32 %v1794_v38, %v953_v37 }
  0xf6   : > { %v788_v44 = vpop.f32.mrf.mxu3 }
  0xf7   : > { %vm1021_vm13 = vcmp.gt.f32.partialorder %v989_v41, 0.0  ;;  %v1053_v43 = vmul.f32 0.0, %v989_v41  ;;  %v1881_v46 = vadd.f32 %v788_v44, %v1831_v9 }
  0xf8   : > { %v856_v47 = vpop.f32.mrf.mxu2  ;;  %v645_v50 = vpop.f32.mrf.mxu0 }
  0xf9   : > { %v1085_v48 = vsel %vm1021_vm13, %v989_v41, %v1053_v43  ;;  %v918_v49 = vadd.f32 %v856_v47, %v749_v42  ;;  %v750_v53 = vpop.f32.mrf.mxu1  ;;  %v781_v47 = vadd.f32 %v1865_v5, %v1796_v40 }
  0xfa   : > { %v1510_v51 = vpack.c.bf16 %v1085_v48, %v1084_v13  ;;  %v751_v55 = vadd.f32 %v750_v53, %v645_v50 }
  0xfb   : > { %v954_v54 = vmul.f32 %v1788_v34, %v918_v49 }
  0xfc   : > { %1566 = vst [vmem:[%s1815_s8 + $0x28] sm:$0xff] %v1510_v51  }
  0xfd   : > { %v990_v59 = vadd.f32 %v1794_v38, %v954_v54 }
  0xfe   : > { %v1885_v56 = vpop.f32.mrf.mxu3 }
  0xff   : > { %v1054_v0 = vmul.f32 0.0, %v990_v59  ;;  %vm1022_vm14 = vcmp.gt.f32.partialorder %v990_v59, 0.0 }
 0x100   : > { %v858_v57 = vpop.f32.mrf.mxu2  ;;  %v648_v61 = vpop.f32.mrf.mxu0 }
 0x101   : > { %v919_v60 = vadd.f32 %v858_v57, %v751_v55  ;;  %v753_v9 = vpop.f32.mrf.mxu1  ;;  %v1086_v8 = vsel %vm1022_vm14, %v990_v59, %v1054_v0 }
 0x102   : > { %v754_v2 = vadd.f32 %v753_v9, %v648_v61 }
 0x103   : > { %v955_v63 = vmul.f32 %v1788_v34, %v919_v60 }
 0x105   : > { %v991_v1 = vadd.f32 %v1794_v38, %v955_v63 }
 0x106   : > { %v793_v4 = vpop.f32.mrf.mxu3 }
 0x107   : > { %vm1023_vm15 = vcmp.gt.f32.partialorder %v991_v1, 0.0  ;;  %v1055_v3 = vmul.f32 0.0, %v991_v1  ;;  %v1891_v6 = vadd.f32 %v793_v4, %v1851_v35 }
 0x108   : > { %v861_v7 = vpop.f32.mrf.mxu2  ;;  %v650_v11 = vpop.f32.mrf.mxu0 }
 0x109   : > { %v1087_v10 = vsel %vm1023_vm15, %v991_v1, %v1055_v3  ;;  %v920_v31 = vadd.f32 %v861_v7, %v754_v2  ;;  %v755_v14 = vpop.f32.mrf.mxu1 }
 0x10a   : > { %v1515_v12 = vpack.c.bf16 %v1087_v10, %v1086_v8  ;;  %v756_v16 = vadd.f32 %v755_v14, %v650_v11 }
 0x10b   : > { %v956_v15 = vmul.f32 %v1788_v34, %v920_v31 }
 0x10c   : > { %1567 = vst [vmem:[%s1815_s8 + $0x30] sm:$0xff] %v1515_v12  }
 0x10d   : > { %v992_v21 = vadd.f32 %v1794_v38, %v956_v15 }
 0x10e   : > { %v1895_v17 = vpop.f32.mrf.mxu3 }
 0x10f   : > { %v1056_v26 = vmul.f32 0.0, %v992_v21  ;;  %vm1024_vm0 = vcmp.gt.f32.partialorder %v992_v21, 0.0 }
 0x110   : > { %v863_v19 = vpop.f32.mrf.mxu2  ;;  %v653_v24 = vpop.f32.mrf.mxu0 }
 0x111   : > { %v921_v23 = vadd.f32 %v863_v19, %v756_v16  ;;  %v758_v35 = vpop.f32.mrf.mxu1  ;;  %v1088_v22 = vsel %vm1024_vm0, %v992_v21, %v1056_v26  ;;  %v786_v21 = vadd.f32 %v1875_v30, %v1819_v62 }
 0x112   : > { %v759_v28 = vadd.f32 %v758_v35, %v653_v24 }
 0x113   : > { %v957_v25 = vmul.f32 %v1788_v34, %v921_v23 }
 0x115   : > { %v993_v27 = vadd.f32 %v1794_v38, %v957_v25 }
 0x116   : > { %v886_v32 = vpop.f32.mrf.mxu3 }
 0x117   : > { %vm1025_vm1 = vcmp.gt.f32.partialorder %v993_v27, 0.0  ;;  %v1057_v29 = vmul.f32 0.0, %v993_v27  ;;  %v930_v36 = vadd.f32 %v886_v32, %v1861_v58 }
 0x118   : > { %v866_v33 = vpop.f32.mrf.mxu2  ;;  %v655_v39 = vpop.f32.mrf.mxu0 }
 0x119   : > { %v1089_v52 = vsel %vm1025_vm1, %v993_v27, %v1057_v29  ;;  %v922_v37 = vadd.f32 %v866_v33, %v759_v28  ;;  %v760_v42 = vpop.f32.mrf.mxu1  ;;  %v966_v43 = vmul.f32 %v1788_v34, %v930_v36 }
 0x11a   : > { %v1520_v41 = vpack.c.bf16 %v1089_v52, %v1088_v22  ;;  %v761_v13 = vadd.f32 %v760_v42, %v655_v39 }
 0x11b   : > { %v958_v44 = vmul.f32 %v1788_v34, %v922_v37  ;;  %v1002_v49 = vadd.f32 %v1794_v38, %v966_v43 }
 0x11c   : > { %1568 = vst [vmem:[%s1815_s8 + $0x38] sm:$0xff] %v1520_v41  }
 0x11d   : > { %v994_v51 = vadd.f32 %v1794_v38, %v958_v44  ;;  %v1066_v60 = vmul.f32 0.0, %v1002_v49  ;;  %vm1034_vm2 = vcmp.gt.f32.partialorder %v1002_v49, 0.0 }
 0x11e   : > { %v888_v48 = vpop.f32.mrf.mxu3 }
 0x11f   : > { %v931_v58 = vadd.f32 %v888_v48, %v781_v47  ;;  %v1058_v9 = vmul.f32 0.0, %v994_v51  ;;  %vm1026_vm3 = vcmp.gt.f32.partialorder %v994_v51, 0.0  ;;  %v1098_v2 = vsel %vm1034_vm2, %v1002_v49, %v1066_v60 }
 0x120   : > { %v868_v50 = vpop.f32.mrf.mxu2  ;;  %v658_v54 = vpop.f32.mrf.mxu0 }
 0x121   : > { %v923_v53 = vadd.f32 %v868_v50, %v761_v13  ;;  %v967_v55 = vmul.f32 %v1788_v34, %v931_v58  ;;  %v763_v57 = vpop.f32.mrf.mxu1  ;;  %v1090_v8 = vsel %vm1026_vm3, %v994_v51, %v1058_v9 }
 0x122   : > { %v764_v5 = vadd.f32 %v763_v57, %v658_v54  ;;  %v791_v57 = vadd.f32 %v1885_v56, %v1839_v20 }
 0x123   : > { %v959_v59 = vmul.f32 %v1788_v34, %v923_v53  ;;  %v1003_v61 = vadd.f32 %v1794_v38, %v967_v55 }
 0x125   : > { %v995_v40 = vadd.f32 %v1794_v38, %v959_v59  ;;  %vm1035_vm4 = vcmp.gt.f32.partialorder %v1003_v61, 0.0  ;;  %v1067_v63 = vmul.f32 0.0, %v1003_v61 }
 0x126   : > { %v891_v1 = vpop.f32.mrf.mxu3 }
 0x127   : > { %vm1027_vm5 = vcmp.gt.f32.partialorder %v995_v40, 0.0  ;;  %v1059_v0 = vmul.f32 0.0, %v995_v40  ;;  %v1099_v3 = vsel %vm1035_vm4, %v1003_v61, %v1067_v63  ;;  %v932_v7 = vadd.f32 %v891_v1, %v1871_v18 }
 0x128   : > { %v871_v4 = vpop.f32.mrf.mxu2  ;;  %v1545_v31 = vpack.c.bf16 %v1099_v3, %v1098_v2  ;;  %v660_v12 = vpop.f32.mrf.mxu0 }
 0x129   : > { %v1091_v10 = vsel %vm1027_vm5, %v995_v40, %v1059_v0  ;;  %v924_v11 = vadd.f32 %v871_v4, %v764_v5  ;;  %v765_v15 = vpop.f32.mrf.mxu1  ;;  %v968_v16 = vmul.f32 %v1788_v34, %v932_v7 }
 0x12a   : > { %v1525_v14 = vpack.c.bf16 %v1091_v10, %v1090_v8  ;;  %1573 = vst [vmem:[%s1815_s8 + $0x60] sm:$0xff] %v1545_v31   ;;  %v766_v23 = vadd.f32 %v765_v15, %v660_v12 }
 0x12b   : > { %v960_v19 = vmul.f32 %v1788_v34, %v924_v11  ;;  %v1004_v18 = vadd.f32 %v1794_v38, %v968_v16 }
 0x12c   : > { %1569 = vst [vmem:[%s1815_s8 + $0x40] sm:$0xff] %v1525_v14  }
 0x12d   : > { %v996_v26 = vadd.f32 %v1794_v38, %v960_v19  ;;  %v1068_v36 = vmul.f32 0.0, %v1004_v18  ;;  %vm1036_vm6 = vcmp.gt.f32.partialorder %v1004_v18, 0.0 }
 0x12e   : > { %v893_v24 = vpop.f32.mrf.mxu3 }
 0x12f   : > { %v933_v25 = vadd.f32 %v893_v24, %v786_v21  ;;  %v1060_v52 = vmul.f32 0.0, %v996_v26  ;;  %vm1028_vm7 = vcmp.gt.f32.partialorder %v996_v26, 0.0  ;;  %v1100_v42 = vsel %vm1036_vm6, %v1004_v18, %v1068_v36 }
 0x130   : > { %v873_v35 = vpop.f32.mrf.mxu2  ;;  %v663_v28 = vpop.f32.mrf.mxu0 }
 0x131   : > { %v925_v27 = vadd.f32 %v873_v35, %v766_v23  ;;  %v969_v29 = vmul.f32 %v1788_v34, %v933_v25  ;;  %v768_v32 = vpop.f32.mrf.mxu1  ;;  %v1092_v13 = vsel %vm1028_vm7, %v996_v26, %v1060_v52 }
 0x132   : > { %v769_v30 = vadd.f32 %v768_v32, %v663_v28 }
 0x133   : > { %v961_v33 = vmul.f32 %v1788_v34, %v925_v27  ;;  %v1005_v22 = vadd.f32 %v1794_v38, %v969_v29  ;;  %v796_v27 = vadd.f32 %v1895_v17, %v1855_v45 }
 0x135   : > { %v997_v62 = vadd.f32 %v1794_v38, %v961_v33  ;;  %vm1037_vm8 = vcmp.gt.f32.partialorder %v1005_v22, 0.0  ;;  %v1069_v37 = vmul.f32 0.0, %v1005_v22 }
 0x136   : > { %v896_v41 = vpop.f32.mrf.mxu3 }
 0x137   : > { %vm1029_vm9 = vcmp.gt.f32.partialorder %v997_v62, 0.0  ;;  %v1061_v39 = vmul.f32 0.0, %v997_v62  ;;  %v1101_v43 = vsel %vm1037_vm8, %v1005_v22, %v1069_v37  ;;  %v934_v47 = vadd.f32 %v896_v41, %v1881_v46 }
 0x138   : > { %v876_v44 = vpop.f32.mrf.mxu2  ;;  %v1550_v49 = vpack.c.bf16 %v1101_v43, %v1100_v42  ;;  %v665_v58 = vpop.f32.mrf.mxu0 }
 0x139   : > { %v1093_v48 = vsel %vm1029_vm9, %v997_v62, %v1061_v39  ;;  %v926_v50 = vadd.f32 %v876_v44, %v769_v30  ;;  %v770_v53 = vpop.f32.mrf.mxu1  ;;  %v970_v54 = vmul.f32 %v1788_v34, %v934_v47 }
 0x13a   : > { %v1530_v51 = vpack.c.bf16 %v1093_v48, %v1092_v13  ;;  %1574 = vst [vmem:[%s1815_s8 + $0x68] sm:$0xff] %v1550_v49   ;;  %v771_v59 = vadd.f32 %v770_v53, %v665_v58 }
 0x13b   : > { %v962_v55 = vmul.f32 %v1788_v34, %v926_v50  ;;  %v1006_v46 = vadd.f32 %v1794_v38, %v970_v54 }
 0x13c   : > { %1570 = vst [vmem:[%s1815_s8 + $0x48] sm:$0xff] %v1530_v51  }
 0x13d   : > { %v998_v40 = vadd.f32 %v1794_v38, %v962_v55  ;;  %v1070_v3 = vmul.f32 0.0, %v1006_v46  ;;  %vm1038_vm10 = vcmp.gt.f32.partialorder %v1006_v46, 0.0 }
 0x13e   : > { %v898_v60 = vpop.f32.mrf.mxu3 }
 0x13f   : > { %v935_v9 = vadd.f32 %v898_v60, %v791_v57  ;;  %v1062_v7 = vmul.f32 0.0, %v998_v40  ;;  %vm1030_vm11 = vcmp.gt.f32.partialorder %v998_v40, 0.0  ;;  %v1102_v11 = vsel %vm1038_vm10, %v1006_v46, %v1070_v3 }
 0x140   : > { %v878_v61 = vpop.f32.mrf.mxu2  ;;  %v668_v0 = vpop.f32.mrf.mxu0 }
 0x141   : > { %v927_v5 = vadd.f32 %v878_v61, %v771_v59  ;;  %v971_v63 = vmul.f32 %v1788_v34, %v935_v9  ;;  %v773_v1 = vpop.f32.mrf.mxu1  ;;  %v1094_v16 = vsel %vm1030_vm11, %v998_v40, %v1062_v7 }
 0x142   : > { %v774_v56 = vadd.f32 %v773_v1, %v668_v0 }
 0x143   : > { %v963_v2 = vmul.f32 %v1788_v34, %v927_v5  ;;  %v1007_v4 = vadd.f32 %v1794_v38, %v971_v63 }
 0x145   : > { %v999_v20 = vadd.f32 %v1794_v38, %v963_v2  ;;  %vm1039_vm12 = vcmp.gt.f32.partialorder %v1007_v4, 0.0  ;;  %v1071_v8 = vmul.f32 0.0, %v1007_v4 }
 0x146   : > { %v901_v31 = vpop.f32.mrf.mxu3 }
 0x147   : > { %vm1031_vm13 = vcmp.gt.f32.partialorder %v999_v20, 0.0  ;;  %v1063_v10 = vmul.f32 0.0, %v999_v20  ;;  %v1103_v12 = vsel %vm1039_vm12, %v1007_v4, %v1071_v8  ;;  %v936_v15 = vadd.f32 %v901_v31, %v1891_v6 }
 0x148   : > { %v881_v14 = vpop.f32.mrf.mxu2  ;;  %v1555_v21 = vpack.c.bf16 %v1103_v12, %v1102_v11  ;;  %v670_v35 = vpop.f32.mrf.mxu0 }
 0x149   : > { %v1095_v19 = vsel %vm1031_vm13, %v999_v20, %v1063_v10  ;;  %v928_v23 = vadd.f32 %v881_v14, %v774_v56  ;;  %v972_v18 = vmul.f32 %v1788_v34, %v936_v15  ;;  %v775_v25 = vpop.f32.mrf.mxu1 }
 0x14a   : > { %v1535_v24 = vpack.c.bf16 %v1095_v19, %v1094_v16  ;;  %1575 = vst [vmem:[%s1815_s8 + $0x70] sm:$0xff] %v1555_v21   ;;  %v776_v28 = vadd.f32 %v775_v25, %v670_v35 }
 0x14b   : > { %v964_v26 = vmul.f32 %v1788_v34, %v928_v23  ;;  %v1008_v6 = vadd.f32 %v1794_v38, %v972_v18 }
 0x14c   : > { %1571 = vst [vmem:[%s1815_s8 + $0x50] sm:$0xff] %v1535_v24  }
 0x14d   : > { %v1000_v36 = vadd.f32 %v1794_v38, %v964_v26  ;;  %v1072_v30 = vmul.f32 0.0, %v1008_v6  ;;  %vm1040_vm14 = vcmp.gt.f32.partialorder %v1008_v6, 0.0 }
 0x14e   : > { %v903_v29 = vpop.f32.mrf.mxu3 }
 0x14f   : > { %v937_v33 = vadd.f32 %v903_v29, %v796_v27  ;;  %v1064_v39 = vmul.f32 0.0, %v1000_v36  ;;  %vm1032_vm15 = vcmp.gt.f32.partialorder %v1000_v36, 0.0  ;;  %v1104_v42 = vsel %vm1040_vm14, %v1008_v6, %v1072_v30 }
 0x150   : > { %v883_v32 = vpop.f32.mrf.mxu2 }
 0x151   : > { %v929_v22 = vadd.f32 %v883_v32, %v776_v28  ;;  %v973_v52 = vmul.f32 %v1788_v34, %v937_v33  ;;  %v1096_v44 = vsel %vm1032_vm15, %v1000_v36, %v1064_v39 }
 0x153   : > { %v965_v62 = vmul.f32 %v1788_v34, %v929_v22  ;;  %v1009_v37 = vadd.f32 %v1794_v38, %v973_v52 }
 0x155   : > { %v1001_v45 = vadd.f32 %v1794_v38, %v965_v62  ;;  %vm1041_vm0 = vcmp.gt.f32.partialorder %v1009_v37, 0.0  ;;  %v1073_v17 = vmul.f32 0.0, %v1009_v37 }
 0x157   : > { %vm1033_vm1 = vcmp.gt.f32.partialorder %v1001_v45, 0.0  ;;  %v1065_v41 = vmul.f32 0.0, %v1001_v45  ;;  %v1105_v43 = vsel %vm1041_vm0, %v1009_v37, %v1073_v17 }
 0x158   : > { %v1560_v13 = vpack.c.bf16 %v1105_v43, %v1104_v42 }
 0x159   : > { %v1097_v47 = vsel %vm1033_vm1, %v1001_v45, %v1065_v41 }
 0x15a   : > { %v1540_v34 = vpack.c.bf16 %v1097_v47, %v1096_v44  ;;  %1576 = vst [vmem:[%s1815_s8 + $0x78] sm:$0xff] %v1560_v13  }
 0x15c   : > { %1572 = vst [vmem:[%s1815_s8 + $0x58] sm:$0xff] %v1540_v34  }
 0x15d PF: > { %s16_s23 = sadd.s32 1, %s1631_s23   ;;  %s1969_s21 = smov %s1627_s22 }
 0x15e   : > { %p13_p5 = scmp.ge.s32.totalorder %s16_s23, 4   ;;  %s1970_s22 = smov %s1972_s24 }
 0x160   :  { %15 = sbr.rel (!%p13_p5) target bundleno = 2 (0x2), region = 82 }

// kernel: double_conv_forward.6
= control target key start
LH: loop header
LB: loop body
LE: loop exit
PB: predicated region body
PF: predicated region fallthrough
CT: control target
= control target key end

     0   :  { %s1453_s18 = smov 0   ;;  %s1455_s19 = smov 0   ;;  %s1666_s0 = inlined_call_operand.vmem [shape: bf16[2,18,16,24], index: 0, kind: input, shape index: {}, may-alias: {0,1,2}]   ;;  %s1667_s1 = inlined_call_operand.vmem [shape: bf16[2,18,16,24], index: 1, kind: input, shape index: {}, may-alias: {0,1,2}]   ;;  %s1668_s2 = inlined_call_operand.vmem [shape: bf16[2,18,16,24], index: 2, kind: input, shape index: {}, may-alias: {0,1,2}]   ;;  %s1669_s3 = inlined_call_operand.vmem [shape: bf16[3,24,128], index: 3, kind: input, shape index: {}]   ;;  %s1670_s4 = inlined_call_operand.vmem [shape: f32[2,1,1,128], index: 4, kind: output, shape index: {0}]   ;;  %s1671_s5 = inlined_call_operand.vmem [shape: f32[2,1,1,128], index: 5, kind: output, shape index: {1}]  }
   0x1   :  { %s1457_s20 = smov 0  }
   0x2 LB: > { %s28_s21 = sadd.s32 1, %s1417_s19  ;;  %p1197_p0 = scmp.ge.s32.totalorder %s1421_s20, 1  ;;  %s1421_s20 = sphi %s1457_s20, %s16_s20   ;;  %s1417_s19 = sphi %s1455_s19, %s1673_s19   ;;  %s1413_s18 = sphi %s1453_s18, %s1672_s18  }
   0x3   : > { %p30_p1 = scmp.ge.s32.totalorder %s28_s21, 2  ;;  %p276_p2 = scmp.lt.s32.totalorder %s1421_s20, 3 }
   0x5   : > { %s1675_s21 = smov (%p30_p1, %s28_s21), 0  ;;  %p277_p3 = pnand %p1197_p0, %p276_p2 }
   0x6   : > { %p350_p4 = scmp.lt.s32.totalorder (!%p277_p3), %s1413_s18, 1 }
   0x7   : > { %280 = sbr.rel (%p277_p3) target bundleno = 378 (0x17a), region = 36 }
   0xc   : > { %v1203_v0 = vld [vmem:[%s1669_s3 + $0x14] sm:$0xf]  ;;  %v444_v1 = vld [vmem:[%s1669_s3 + $0x8] sm:$0xf]  ;;  %v1314_v4 = vld [vmem:[%s1669_s3 + $0x20] sm:$0xf] }
   0xd   : > { %v534_v2 = vunpack.c.l.b16 %v1203_v0  ;;  %v690_v3 = vunpack.c.l.b16 %v444_v1  ;;  %vm587_vm0 = vcmask 1043456   ;;  %v803_v5 = vunpack.c.l.b16 %v1314_v4  ;;  %s1677_s18 = smov (!%p350_p4, %s1413_s18), 1  ;;  %v1364_v12 = vld [vmem:[%s1669_s3 + $0xc] sm:$0xff]  ;;  %v1363_v13 = vld [vmem:[%s1669_s3] sm:$0xff]  ;;  %v1365_v14 = vld [vmem:[%s1669_s3 + $0x18] sm:$0xff] }
   0xe   : > { %s1483_s28 = smul.u32 144, %s1677_s18  ;;  %vm538_vm1 = vcmask 195584   ;;  %s398_s27 = scalar_lea.vmem %s1670_s4, %s1677_s18 }
   0xf   : > { %v536_v6 = vpack.c.b16 %v534_v2, %v534_v2  ;;  %v692_v7 = vpack.c.b16 %v690_v3, %v690_v3  ;;  %v805_v8 = vpack.c.b16 %v803_v5, %v803_v5  ;;  %s404_s30 = scalar_lea.vmem %s1671_s5, %s1677_s18 }
  0x10   : > { %s1498_s12 = scalar_lea.vmem %s1666_s0, %s1483_s28  ;;  %s1342_s13 = sadd.s32 128, %s1483_s28 }
  0x11   : > { %v589_v9 = vsel %vm587_vm0, %v536_v6, 0  ;;  %v698_v10 = vsel %vm587_vm0, %v692_v7, 0  ;;  %v811_v11 = vsel %vm587_vm0, %v805_v8, 0  ;;  %v1346_v15 = vld [vmem:[%s1498_s12 + $0x8] sm:$0xff]  ;;  %v1345_v17 = vld [vmem:[%s1498_s12] sm:$0xff]  ;;  %v1347_v18 = vld [vmem:[%s1498_s12 + $0x10] sm:$0xff]  ;;  %s375_s16 = scalar_lea.vmem %s1667_s1, %s1342_s13 }
  0x12   : > { %597 = vmatpush.bf16.msra.mxu0 %v589_v9  ;;  %1366 = vmatpush.bf16.msra.mxu3 %v589_v9  ;;  %v1502_v16 = vld [vmem:[%s1498_s12 + $0x68] sm:$0xff]  ;;  %v1359_v19 = vld [vmem:[%s1498_s12 + $0x70] sm:$0xff]  ;;  %v1348_v20 = vld [vmem:[%s1498_s12 + $0x18] sm:$0xff]  ;;  %s1344_s17 = sadd.s32 136, %s1483_s28 }
  0x13   : > { %706 = vmatpush.bf16.msra.mxu1 %v698_v10  ;;  %819 = vmatpush.bf16.msra.mxu2 %v811_v11  ;;  %v1360_v21 = vld [vmem:[%s1498_s12 + $0x78] sm:$0xff]  ;;  %v1349_v22 = vld [vmem:[%s1498_s12 + $0x20] sm:$0xff]  ;;  %v1350_v24 = vld [vmem:[%s1498_s12 + $0x28] sm:$0xff]  ;;  %s389_s24 = scalar_lea.vmem %s1668_s2, %s1344_s17 }
  0x14   : > { %v1527_v23 = vld [vmem:[%s375_s16] sm:$0xff]  ;;  %v1351_v26 = vld [vmem:[%s1498_s12 + $0x30] sm:$0xff]  ;;  %v1352_v27 = vld [vmem:[%s1498_s12 + $0x38] sm:$0xff] }
  0x15   : > { %v1536_v25 = vld [vmem:[%s1498_s12 + $0x60] sm:$0xff]  ;;  %v1354_v29 = vld [vmem:[%s1498_s12 + $0x48] sm:$0xff]  ;;  %v1355_v31 = vld [vmem:[%s1498_s12 + $0x50] sm:$0xff] }
  0x16   : > { %598 = vmatpush.bf16.msra.mxu0 %v1364_v12  ;;  %1367 = vmatpush.bf16.msra.mxu3 %v1364_v12  ;;  %v1353_v28 = vld [vmem:[%s1498_s12 + $0x40] sm:$0xff]  ;;  %v1356_v44 = vld [vmem:[%s1498_s12 + $0x58] sm:$0xff] }
  0x17   : > { %707 = vmatpush.bf16.msra.mxu1 %v1363_v13  ;;  %820 = vmatpush.bf16.msra.mxu2 %v1365_v14 }
  0x19   : > { %1272 = vmatmul.msk.bf16.vlgmr.msra.gmra.mxu0 %vm538_vm1, %v1346_v15  ;;  %1284 = vmatmul.msk.bf16.vlgmr.msra.gmra.mxu3 %vm538_vm1, %v1502_v16 }
  0x1a   : > { %1368 = vmatpush.bf16.msrb.mxu3 %v698_v10  ;;  %1296 = vmatmul.msk.bf16.vlgmr.msra.gmra.mxu1 %vm538_vm1, %v1345_v17  ;;  %v1362_v17 = vld [vmem:[%s389_s24] sm:$0xff] }
  0x1b   : > { %1323 = vmatmul.msk.bf16.vlgmr.msra.gmra.mxu2 %vm538_vm1, %v1347_v18 }
  0x1e   : > { %1369 = vmatpush.bf16.msrb.mxu3 %v1363_v13 }
  0x22   : > { %1370 = vmatpush.bf16.msra.mxu3 %v811_v11 }
  0x26   : > { %1371 = vmatpush.bf16.msra.mxu3 %v1365_v14 }
  0x29   : > { %1273 = vmatmul.msk.bf16.gmra.mxu0 %vm538_vm1, %v1347_v18  ;;  %1285 = vmatmul.msk.bf16.gmra.mxu3 %vm538_vm1, %v1359_v19 }
  0x2a   : > { %1297 = vmatmul.msk.bf16.gmra.mxu1 %vm538_vm1, %v1346_v15 }
  0x2b   : > { %1324 = vmatmul.msk.bf16.gmra.mxu2 %vm538_vm1, %v1348_v20 }
  0x39   : > { %1274 = vmatmul.msk.bf16.gmra.mxu0 %vm538_vm1, %v1348_v20  ;;  %1286 = vmatmul.msk.bf16.gmra.mxu3 %vm538_vm1, %v1360_v21 }
  0x3a   : > { %1298 = vmatmul.msk.bf16.gmra.mxu1 %vm538_vm1, %v1347_v18 }
  0x3b   : > { %1325 = vmatmul.msk.bf16.gmra.mxu2 %vm538_vm1, %v1349_v22 }
  0x49   : > { %1275 = vmatmul.msk.bf16.gmra.mxu0 %vm538_vm1, %v1349_v22  ;;  %1287 = vmatmul.msk.bf16.gmra.mxu3 %vm538_vm1, %v1527_v23 }
  0x4a   : > { %1299 = vmatmul.msk.bf16.gmra.mxu1 %vm538_vm1, %v1348_v20 }
  0x4b   : > { %1326 = vmatmul.msk.bf16.gmra.mxu2 %vm538_vm1, %v1350_v24 }
  0x59   : > { %1276 = vmatmul.msk.bf16.gmra.mxu0 %vm538_vm1, %v1350_v24  ;;  %1308 = vmatmul.msk.bf16.vlgmr.msrb.gmra.mxu3 %vm538_vm1, %v1536_v25 }
  0x5a   : > { %1300 = vmatmul.msk.bf16.gmra.mxu1 %vm538_vm1, %v1349_v22 }
  0x5b   : > { %1327 = vmatmul.msk.bf16.gmra.mxu2 %vm538_vm1, %v1351_v26 }
  0x69   : > { %1277 = vmatmul.msk.bf16.gmra.mxu0 %vm538_vm1, %v1351_v26  ;;  %1309 = vmatmul.msk.bf16.gmra.mxu3 %vm538_vm1, %v1502_v16 }
  0x6a   : > { %1301 = vmatmul.msk.bf16.gmra.mxu1 %vm538_vm1, %v1350_v24 }
  0x6b   : > { %1328 = vmatmul.msk.bf16.gmra.mxu2 %vm538_vm1, %v1352_v27 }
  0x79   : > { %1278 = vmatmul.msk.bf16.gmra.mxu0 %vm538_vm1, %v1352_v27  ;;  %1310 = vmatmul.msk.bf16.gmra.mxu3 %vm538_vm1, %v1359_v19 }
  0x7a   : > { %1302 = vmatmul.msk.bf16.gmra.mxu1 %vm538_vm1, %v1351_v26 }
  0x7b   : > { %1329 = vmatmul.msk.bf16.gmra.mxu2 %vm538_vm1, %v1353_v28 }
  0x89   : > { %1279 = vmatmul.msk.bf16.gmra.mxu0 %vm538_vm1, %v1353_v28  ;;  %1311 = vmatmul.msk.bf16.gmra.mxu3 %vm538_vm1, %v1360_v21 }
  0x8a   : > { %1303 = vmatmul.msk.bf16.gmra.mxu1 %vm538_vm1, %v1352_v27 }
  0x8b   : > { %1330 = vmatmul.msk.bf16.gmra.mxu2 %vm538_vm1, %v1354_v29 }
  0x96   : > { %v600_v30 = vpop.f32.mrf.mxu0 }
  0x97   : > { %v709_v32 = vpop.f32.mrf.mxu1 }
  0x98   : > { %v710_v33 = vadd.f32 %v709_v32, %v600_v30 }
  0x99   : > { %1280 = vmatmul.msk.bf16.gmra.mxu0 %vm538_vm1, %v1354_v29  ;;  %1335 = vmatmul.msk.bf16.vlgmr.msra.gmra.mxu3 %vm538_vm1, %v1359_v19 }
  0x9a   : > { %1304 = vmatmul.msk.bf16.gmra.mxu1 %vm538_vm1, %v1353_v28 }
  0x9b   : > { %1331 = vmatmul.msk.bf16.gmra.mxu2 %vm538_vm1, %v1355_v31 }
  0x9c   : > { %v1565_v34 = vpop.f32.mrf.mxu3 }
  0x9e   : > { %v822_v35 = vpop.f32.mrf.mxu2  ;;  %v602_v37 = vpop.f32.mrf.mxu0 }
  0x9f   : > { %v902_v36 = vadd.f32 %v822_v35, %v710_v33  ;;  %v711_v38 = vpop.f32.mrf.mxu1 }
  0xa0   : > { %v712_v39 = vadd.f32 %v711_v38, %v602_v37 }
  0xa1   : > { %v972_v46 = vmul.f32 %v902_v36, %v902_v36 }
  0xa4   : > { %v1567_v40 = vpop.f32.mrf.mxu3 }
  0xa6   : > { %v824_v41 = vpop.f32.mrf.mxu2  ;;  %v605_v43 = vpop.f32.mrf.mxu0 }
  0xa7   : > { %v903_v42 = vadd.f32 %v824_v41, %v712_v39  ;;  %v714_v45 = vpop.f32.mrf.mxu1 }
  0xa8   : > { %v715_v49 = vadd.f32 %v714_v45, %v605_v43 }
  0xa9   : > { %v934_v47 = vadd.f32 %v903_v42, %v902_v36  ;;  %v973_v48 = vmul.f32 %v903_v42, %v903_v42  ;;  %1281 = vmatmul.msk.bf16.gmra.mxu0 %vm538_vm1, %v1355_v31  ;;  %1336 = vmatmul.msk.bf16.gmra.mxu3 %vm538_vm1, %v1360_v21 }
  0xaa   : > { %1305 = vmatmul.msk.bf16.gmra.mxu1 %vm538_vm1, %v1354_v29 }
  0xab   : > { %v1004_v50 = vadd.f32 %v973_v48, %v972_v46  ;;  %1332 = vmatmul.msk.bf16.gmra.mxu2 %vm538_vm1, %v1356_v44 }
  0xac   : > { %v1574_v51 = vpop.f32.mrf.mxu3 }
  0xae   : > { %v827_v52 = vpop.f32.mrf.mxu2  ;;  %v607_v54 = vpop.f32.mrf.mxu0 }
  0xaf   : > { %v904_v53 = vadd.f32 %v827_v52, %v715_v49  ;;  %v716_v55 = vpop.f32.mrf.mxu1 }
  0xb0   : > { %v717_v58 = vadd.f32 %v716_v55, %v607_v54 }
  0xb1   : > { %v935_v56 = vadd.f32 %v934_v47, %v904_v53  ;;  %v974_v57 = vmul.f32 %v904_v53, %v904_v53 }
  0xb3   : > { %v1005_v59 = vadd.f32 %v1004_v50, %v974_v57 }
  0xb4   : > { %v1576_v60 = vpop.f32.mrf.mxu3 }
  0xb6   : > { %v829_v61 = vpop.f32.mrf.mxu2  ;;  %v610_v63 = vpop.f32.mrf.mxu0 }
  0xb7   : > { %v905_v62 = vadd.f32 %v829_v61, %v717_v58  ;;  %v719_v0 = vpop.f32.mrf.mxu1 }
  0xb8   : > { %v720_v3 = vadd.f32 %v719_v0, %v610_v63 }
  0xb9   : > { %v936_v1 = vadd.f32 %v935_v56, %v905_v62  ;;  %v975_v2 = vmul.f32 %v905_v62, %v905_v62  ;;  %1282 = vmatmul.msk.bf16.gmra.mxu0 %vm538_vm1, %v1356_v44  ;;  %1337 = vmatmul.msk.bf16.gmra.mxu3 %vm538_vm1, %v1527_v23 }
  0xba   : > { %1306 = vmatmul.msk.bf16.gmra.mxu1 %vm538_vm1, %v1355_v31 }
  0xbb   : > { %v1006_v4 = vadd.f32 %v1005_v59, %v975_v2  ;;  %1333 = vmatmul.msk.bf16.gmra.mxu2 %vm538_vm1, %v1536_v25 }
  0xbc   : > { %v1584_v5 = vpop.f32.mrf.mxu3 }
  0xbe   : > { %v832_v6 = vpop.f32.mrf.mxu2  ;;  %v612_v8 = vpop.f32.mrf.mxu0 }
  0xbf   : > { %v906_v7 = vadd.f32 %v832_v6, %v720_v3  ;;  %v721_v9 = vpop.f32.mrf.mxu1 }
  0xc0   : > { %v722_v12 = vadd.f32 %v721_v9, %v612_v8 }
  0xc1   : > { %v937_v10 = vadd.f32 %v936_v1, %v906_v7  ;;  %v976_v11 = vmul.f32 %v906_v7, %v906_v7 }
  0xc3   : > { %v1007_v13 = vadd.f32 %v1006_v4, %v976_v11 }
  0xc4   : > { %v1590_v14 = vpop.f32.mrf.mxu3 }
  0xc6   : > { %v834_v15 = vpop.f32.mrf.mxu2  ;;  %v615_v19 = vpop.f32.mrf.mxu0 }
  0xc7   : > { %v907_v18 = vadd.f32 %v834_v15, %v722_v12  ;;  %v724_v20 = vpop.f32.mrf.mxu1 }
  0xc8   : > { %v725_v23 = vadd.f32 %v724_v20, %v615_v19 }
  0xc9   : > { %v938_v21 = vadd.f32 %v937_v10, %v907_v18  ;;  %v977_v22 = vmul.f32 %v907_v18, %v907_v18  ;;  %1283 = vmatmul.msk.bf16.gmra.mxu0 %vm538_vm1, %v1536_v25  ;;  %1338 = vmatmul.msk.bf16.gmra.mxu3 %vm538_vm1, %v1362_v17 }
  0xca   : > { %1307 = vmatmul.msk.bf16.gmra.mxu1 %vm538_vm1, %v1356_v44 }
  0xcb   : > { %v1008_v24 = vadd.f32 %v1007_v13, %v977_v22  ;;  %1334 = vmatmul.msk.bf16.gmra.mxu2 %vm538_vm1, %v1502_v16 }
  0xcc   : > { %v1598_v26 = vpop.f32.mrf.mxu3 }
  0xce   : > { %v837_v27 = vpop.f32.mrf.mxu2  ;;  %v617_v29 = vpop.f32.mrf.mxu0 }
  0xcf   : > { %v908_v28 = vadd.f32 %v837_v27, %v725_v23  ;;  %v726_v30 = vpop.f32.mrf.mxu1 }
  0xd0   : > { %v727_v33 = vadd.f32 %v726_v30, %v617_v29 }
  0xd1   : > { %v939_v31 = vadd.f32 %v938_v21, %v908_v28  ;;  %v978_v32 = vmul.f32 %v908_v28, %v908_v28 }
  0xd3   : > { %v1009_v35 = vadd.f32 %v1008_v24, %v978_v32 }
  0xd4   : > { %v1600_v36 = vpop.f32.mrf.mxu3 }
  0xd6   : > { %v839_v25 = vpop.f32.mrf.mxu2  ;;  %v620_v38 = vpop.f32.mrf.mxu0 }
  0xd7   : > { %v909_v37 = vadd.f32 %v839_v25, %v727_v33  ;;  %v729_v39 = vpop.f32.mrf.mxu1 }
  0xd8   : > { %v730_v43 = vadd.f32 %v729_v39, %v620_v38 }
  0xd9   : > { %v940_v41 = vadd.f32 %v939_v31, %v909_v37  ;;  %v979_v42 = vmul.f32 %v909_v37, %v909_v37 }
  0xdb   : > { %v1010_v16 = vadd.f32 %v1009_v35, %v979_v42 }
  0xdc   : > { %v769_v44 = vpop.f32.mrf.mxu3 }
  0xdd   : > { %v1603_v45 = vadd.f32 %v769_v44, %v1565_v34 }
  0xde   : > { %v842_v46 = vpop.f32.mrf.mxu2  ;;  %v622_v48 = vpop.f32.mrf.mxu0 }
  0xdf   : > { %v910_v47 = vadd.f32 %v842_v46, %v730_v43  ;;  %v731_v49 = vpop.f32.mrf.mxu1 }
  0xe0   : > { %v732_v53 = vadd.f32 %v731_v49, %v622_v48 }
  0xe1   : > { %v941_v50 = vadd.f32 %v940_v41, %v910_v47  ;;  %v980_v52 = vmul.f32 %v910_v47, %v910_v47 }
  0xe3   : > { %v1011_v54 = vadd.f32 %v1010_v16, %v980_v52 }
  0xe4   : > { %v771_v55 = vpop.f32.mrf.mxu3 }
  0xe5   : > { %v1606_v56 = vadd.f32 %v771_v55, %v1567_v40 }
  0xe6   : > { %v844_v57 = vpop.f32.mrf.mxu2  ;;  %v625_v59 = vpop.f32.mrf.mxu0 }
  0xe7   : > { %v911_v58 = vadd.f32 %v844_v57, %v732_v53  ;;  %v734_v61 = vpop.f32.mrf.mxu1 }
  0xe8   : > { %v735_v34 = vadd.f32 %v734_v61, %v625_v59 }
  0xe9   : > { %v942_v62 = vadd.f32 %v941_v50, %v911_v58  ;;  %v981_v63 = vmul.f32 %v911_v58, %v911_v58 }
  0xeb   : > { %v1012_v0 = vadd.f32 %v1011_v54, %v981_v63 }
  0xec   : > { %v774_v1 = vpop.f32.mrf.mxu3 }
  0xed   : > { %v1609_v2 = vadd.f32 %v774_v1, %v1574_v51 }
  0xee   : > { %v847_v3 = vpop.f32.mrf.mxu2  ;;  %v627_v6 = vpop.f32.mrf.mxu0 }
  0xef   : > { %v912_v4 = vadd.f32 %v847_v3, %v735_v34  ;;  %v736_v7 = vpop.f32.mrf.mxu1 }
  0xf0   : > { %v737_v40 = vadd.f32 %v736_v7, %v627_v6 }
  0xf1   : > { %v943_v8 = vadd.f32 %v942_v62, %v912_v4  ;;  %v982_v9 = vmul.f32 %v912_v4, %v912_v4 }
  0xf3   : > { %v1013_v10 = vadd.f32 %v1012_v0, %v982_v9 }
  0xf4   : > { %v776_v11 = vpop.f32.mrf.mxu3 }
  0xf5   : > { %v1612_v12 = vadd.f32 %v776_v11, %v1576_v60 }
  0xf6   : > { %v849_v13 = vpop.f32.mrf.mxu2  ;;  %v630_v17 = vpop.f32.mrf.mxu0 }
  0xf7   : > { %v913_v15 = vadd.f32 %v849_v13, %v737_v40  ;;  %v739_v18 = vpop.f32.mrf.mxu1 }
  0xf8   : > { %v740_v51 = vadd.f32 %v739_v18, %v630_v17 }
  0xf9   : > { %v944_v19 = vadd.f32 %v943_v8, %v913_v15  ;;  %v983_v20 = vmul.f32 %v913_v15, %v913_v15 }
  0xfb   : > { %v1014_v21 = vadd.f32 %v1013_v10, %v983_v20 }
  0xfc   : > { %v779_v22 = vpop.f32.mrf.mxu3 }
  0xfd   : > { %v1615_v23 = vadd.f32 %v779_v22, %v1584_v5 }
  0xfe   : > { %v852_v24 = vpop.f32.mrf.mxu2  ;;  %v632_v28 = vpop.f32.mrf.mxu0 }
  0xff   : > { %v914_v27 = vadd.f32 %v852_v24, %v740_v51  ;;  %v741_v29 = vpop.f32.mrf.mxu1 }
 0x100   : > { %v742_v34 = vadd.f32 %v741_v29, %v632_v28 }
 0x101   : > { %v945_v30 = vadd.f32 %v944_v19, %v914_v27  ;;  %v984_v31 = vmul.f32 %v914_v27, %v914_v27 }
 0x103   : > { %v1015_v60 = vadd.f32 %v1014_v21, %v984_v31 }
 0x104   : > { %v781_v32 = vpop.f32.mrf.mxu3 }
 0x105   : > { %v1618_v33 = vadd.f32 %v781_v32, %v1590_v14 }
 0x106   : > { %v854_v35 = vpop.f32.mrf.mxu2  ;;  %v635_v25 = vpop.f32.mrf.mxu0 }
 0x107   : > { %v744_v37 = vpop.f32.mrf.mxu1  ;;  %v915_v1 = vadd.f32 %v854_v35, %v742_v34 }
 0x108   : > { %v745_v0 = vadd.f32 %v744_v37, %v635_v25 }
 0x109   : > { %v985_v40 = vmul.f32 %v915_v1, %v915_v1  ;;  %v946_v11 = vadd.f32 %v945_v30, %v915_v1 }
 0x10b   : > { %v1016_v20 = vadd.f32 %v1015_v60, %v985_v40 }
 0x10c   : > { %v784_v38 = vpop.f32.mrf.mxu3 }
 0x10d   : > { %v1621_v39 = vadd.f32 %v784_v38, %v1598_v26 }
 0x10e   : > { %v857_v5 = vpop.f32.mrf.mxu2  ;;  %v637_v41 = vpop.f32.mrf.mxu0 }
 0x10f   : > { %v746_v42 = vpop.f32.mrf.mxu1  ;;  %v916_v6 = vadd.f32 %v857_v5, %v745_v0 }
 0x110   : > { %v747_v7 = vadd.f32 %v746_v42, %v637_v41 }
 0x111   : > { %v986_v13 = vmul.f32 %v916_v6, %v916_v6  ;;  %v947_v51 = vadd.f32 %v946_v11, %v916_v6 }
 0x113   : > { %v1017_v27 = vadd.f32 %v1016_v20, %v986_v13 }
 0x114   : > { %v1623_v43 = vpop.f32.mrf.mxu3 }
 0x116   : > { %v859_v16 = vpop.f32.mrf.mxu2  ;;  %v640_v44 = vpop.f32.mrf.mxu0 }
 0x117   : > { %v749_v46 = vpop.f32.mrf.mxu1  ;;  %v917_v10 = vadd.f32 %v859_v16, %v747_v7 }
 0x118   : > { %v750_v8 = vadd.f32 %v749_v46, %v640_v44 }
 0x119   : > { %v987_v21 = vmul.f32 %v917_v10, %v917_v10  ;;  %v948_v28 = vadd.f32 %v947_v51, %v917_v10 }
 0x11b   : > { %v1018_v30 = vadd.f32 %v1017_v27, %v987_v21 }
 0x11c   : > { %v1625_v47 = vpop.f32.mrf.mxu3 }
 0x11d   : > { %v926_v40 = vadd.f32 %v1625_v47, %v1603_v45 }
 0x11e   : > { %v862_v48 = vpop.f32.mrf.mxu2  ;;  %v642_v14 = vpop.f32.mrf.mxu0 }
 0x11f   : > { %v751_v49 = vpop.f32.mrf.mxu1  ;;  %v918_v15 = vadd.f32 %v862_v48, %v750_v8  ;;  %v996_v21 = vmul.f32 %v926_v40, %v926_v40 }
 0x120   : > { %v752_v18 = vadd.f32 %v751_v49, %v642_v14 }
 0x121   : > { %v988_v29 = vmul.f32 %v918_v15, %v918_v15  ;;  %v949_v38 = vadd.f32 %v948_v28, %v918_v15 }
 0x123   : > { %v1019_v42 = vadd.f32 %v1018_v30, %v988_v29 }
 0x124   : > { %v1627_v52 = vpop.f32.mrf.mxu3 }
 0x126   : > { %v864_v50 = vpop.f32.mrf.mxu2  ;;  %v645_v53 = vpop.f32.mrf.mxu0 }
 0x127   : > { %v754_v54 = vpop.f32.mrf.mxu1  ;;  %v919_v24 = vadd.f32 %v864_v50, %v752_v18  ;;  %v927_v18 = vadd.f32 %v1627_v52, %v1606_v56 }
 0x128   : > { %v755_v19 = vadd.f32 %v754_v54, %v645_v53 }
 0x129   : > { %v989_v5 = vmul.f32 %v919_v24, %v919_v24  ;;  %v950_v16 = vadd.f32 %v949_v38, %v919_v24  ;;  %v997_v28 = vmul.f32 %v927_v18, %v927_v18 }
 0x12b   : > { %v1020_v50 = vadd.f32 %v1019_v42, %v989_v5 }
 0x12c   : > { %v1629_v57 = vpop.f32.mrf.mxu3 }
 0x12e   : > { %v867_v26 = vpop.f32.mrf.mxu2  ;;  %v647_v55 = vpop.f32.mrf.mxu0 }
 0x12f   : > { %v756_v58 = vpop.f32.mrf.mxu1  ;;  %v920_v35 = vadd.f32 %v867_v26, %v755_v19 }
 0x130   : > { %v757_v25 = vadd.f32 %v756_v58, %v647_v55 }
 0x131   : > { %v990_v44 = vmul.f32 %v920_v35, %v920_v35  ;;  %v951_v53 = vadd.f32 %v950_v16, %v920_v35 }
 0x133   : > { %v1021_v0 = vadd.f32 %v1020_v50, %v990_v44 }
 0x134   : > { %v1631_v63 = vpop.f32.mrf.mxu3 }
 0x135   : > { %v929_v45 = vadd.f32 %v1631_v63, %v1612_v12 }
 0x136   : > { %v869_v59 = vpop.f32.mrf.mxu2  ;;  %v650_v61 = vpop.f32.mrf.mxu0 }
 0x137   : > { %v759_v62 = vpop.f32.mrf.mxu1  ;;  %v921_v41 = vadd.f32 %v869_v59, %v757_v25  ;;  %v999_v35 = vmul.f32 %v929_v45, %v929_v45 }
 0x138   : > { %v760_v37 = vadd.f32 %v759_v62, %v650_v61 }
 0x139   : > { %v991_v54 = vmul.f32 %v921_v41, %v921_v41  ;;  %v952_v26 = vadd.f32 %v951_v53, %v921_v41 }
 0x13b   : > { %v1022_v1 = vadd.f32 %v1021_v0, %v991_v54 }
 0x13c   : > { %v1633_v17 = vpop.f32.mrf.mxu3 }
 0x13e   : > { %v872_v3 = vpop.f32.mrf.mxu2  ;;  %v652_v4 = vpop.f32.mrf.mxu0 }
 0x13f   : > { %v761_v9 = vpop.f32.mrf.mxu1  ;;  %v922_v60 = vadd.f32 %v872_v3, %v760_v37 }
 0x140   : > { %v762_v46 = vadd.f32 %v761_v9, %v652_v4 }
 0x141   : > { %v992_v55 = vmul.f32 %v922_v60, %v922_v60  ;;  %v953_v59 = vadd.f32 %v952_v26, %v922_v60 }
 0x143   : > { %v1023_v7 = vadd.f32 %v1022_v1, %v992_v55 }
 0x144   : > { %v894_v14 = vpop.f32.mrf.mxu3 }
 0x145   : > { %v931_v25 = vadd.f32 %v894_v14, %v1618_v33 }
 0x146   : > { %v874_v22 = vpop.f32.mrf.mxu2  ;;  %v655_v31 = vpop.f32.mrf.mxu0 }
 0x147   : > { %v764_v32 = vpop.f32.mrf.mxu1  ;;  %v923_v34 = vadd.f32 %v874_v22, %v762_v46  ;;  %v928_v22 = vadd.f32 %v1629_v57, %v1609_v2  ;;  %v787_v2 = vadd.f32 %v1623_v43, %v1600_v36  ;;  %v1001_v41 = vmul.f32 %v931_v25, %v931_v25 }
 0x148   : > { %v765_v48 = vadd.f32 %v764_v32, %v655_v31  ;;  %v930_v32 = vadd.f32 %v1633_v17, %v1615_v23 }
 0x149   : > { %v993_v6 = vmul.f32 %v923_v34, %v923_v34  ;;  %v954_v8 = vadd.f32 %v953_v59, %v923_v34  ;;  %v998_v31 = vmul.f32 %v928_v22, %v928_v22 }
 0x14a   : > { %v1000_v38 = vmul.f32 %v930_v32, %v930_v32 }
 0x14b   : > { %v1024_v10 = vadd.f32 %v1023_v7, %v993_v6 }
 0x14c   : > { %v897_v15 = vpop.f32.mrf.mxu3 }
 0x14d   : > { %v932_v12 = vadd.f32 %v897_v15, %v1621_v39 }
 0x14e   : > { %v877_v49 = vpop.f32.mrf.mxu2  ;;  %v657_v61 = vpop.f32.mrf.mxu0 }
 0x14f   : > { %v924_v58 = vadd.f32 %v877_v49, %v765_v48  ;;  %v766_v62 = vpop.f32.mrf.mxu1  ;;  %v1002_v17 = vmul.f32 %v932_v12, %v932_v12 }
 0x150   : > { %v767_v4 = vadd.f32 %v766_v62, %v657_v61 }
 0x151   : > { %v994_v3 = vmul.f32 %v924_v58, %v924_v58  ;;  %v955_v11 = vadd.f32 %v954_v8, %v924_v58 }
 0x153   : > { %v1025_v19 = vadd.f32 %v1024_v10, %v994_v3 }
 0x154   : > { %v899_v57 = vpop.f32.mrf.mxu3 }
 0x155   : > { %v933_v42 = vadd.f32 %v899_v57, %v787_v2 }
 0x156   : > { %v879_v9 = vpop.f32.mrf.mxu2 }
 0x157   : > { %v925_v13 = vadd.f32 %v879_v9, %v767_v4  ;;  %v1003_v46 = vmul.f32 %v933_v42, %v933_v42 }
 0x159   : > { %v956_v20 = vadd.f32 %v955_v11, %v925_v13  ;;  %v995_v51 = vmul.f32 %v925_v13, %v925_v13 }
 0x15b   : > { %v957_v24 = vadd.f32 %v956_v20, %v926_v40  ;;  %v1026_v27 = vadd.f32 %v1025_v19, %v995_v51 }
 0x15d   : > { %v958_v47 = vadd.f32 %v957_v24, %v927_v18  ;;  %v1027_v29 = vadd.f32 %v1026_v27, %v996_v21 }
 0x15f   : > { %v959_v56 = vadd.f32 %v958_v47, %v928_v22  ;;  %v1028_v52 = vadd.f32 %v1027_v29, %v997_v28 }
 0x161   : > { %v1029_v37 = vadd.f32 %v1028_v52, %v998_v31  ;;  %v960_v30 = vadd.f32 %v959_v56, %v929_v45 }
 0x163   : > { %v961_v63 = vadd.f32 %v960_v30, %v930_v32  ;;  %v1030_v5 = vadd.f32 %v1029_v37, %v999_v35 }
 0x165   : > { %v962_v16 = vadd.f32 %v961_v63, %v931_v25  ;;  %v1031_v23 = vadd.f32 %v1030_v5, %v1000_v38 }
 0x167   : > { %v963_v44 = vadd.f32 %v962_v16, %v932_v12  ;;  %v1032_v60 = vadd.f32 %v1031_v23, %v1001_v41 }
 0x169   : > { %v964_v33 = vadd.f32 %v963_v44, %v933_v42  ;;  %v1033_v48 = vadd.f32 %v1032_v60, %v1002_v17 }
 0x16b   : > { %v965_v14 = vrot.slane %v964_v33, 4  ;;  %v1034_v36 = vadd.f32 %v1033_v48, %v1003_v46 }
 0x16d   : > { %v966_v43 = vadd.f32 %v965_v14, %v964_v33  ;;  %v1035_v49 = vrot.slane %v1034_v36, 4 }
 0x16f   : > { %v967_v50 = vrot.slane %v966_v43, 2  ;;  %v1036_v39 = vadd.f32 %v1035_v49, %v1034_v36 }
 0x171   : > { %v968_v53 = vadd.f32 %v967_v50, %v966_v43  ;;  %v1037_v54 = vrot.slane %v1036_v39, 2 }
 0x173   : > { %v969_v34 = vrot.slane %v968_v53, 1  ;;  %v1038_v0 = vadd.f32 %v1037_v54, %v1036_v39 }
 0x175   : > { %v970_v26 = vadd.f32 %v969_v34, %v968_v53  ;;  %v1039_v55 = vrot.slane %v1038_v0, 1 }
 0x177   : > { %971 = vst [vmem:[%s398_s27] sm:$0x1] %v970_v26  ;;  %v1040_v58 = vadd.f32 %v1039_v55, %v1038_v0 }
 0x179   : > { %1041 = vst [vmem:[%s404_s30] sm:$0x1] %v1040_v58 }
 0x17a PF: > { %s16_s20 = sadd.s32 1, %s1421_s20   ;;  %s1672_s18 = smov %s1417_s19 }
 0x17b   : > { %p13_p5 = scmp.ge.s32.totalorder %s16_s20, 4   ;;  %s1673_s19 = smov %s1675_s21 }
 0x17d   :  { %15 = sbr.rel (!%p13_p5) target bundleno = 2 (0x2), region = 86 }

// kernel: double_conv_forward.7
= control target key start
LH: loop header
LB: loop body
LE: loop exit
PB: predicated region body
PF: predicated region fallthrough
CT: control target
= control target key end

     0   :  { %s1561_s21 = smov 0   ;;  %s1563_s22 = smov 0   ;;  %s1873_s0 = inlined_call_operand.vmem [shape: bf16[2,18,16,24], index: 0, kind: input, shape index: {}, may-alias: {0,1,2}]   ;;  %s1874_s1 = inlined_call_operand.vmem [shape: bf16[2,18,16,24], index: 1, kind: input, shape index: {}, may-alias: {0,1,2}]   ;;  %s1875_s2 = inlined_call_operand.vmem [shape: bf16[2,18,16,24], index: 2, kind: input, shape index: {}, may-alias: {0,1,2}]   ;;  %s1876_s3 = inlined_call_operand.vmem [shape: bf16[3,24,128], index: 3, kind: input, shape index: {}]   ;;  %s1877_s4 = inlined_call_operand.vmem [shape: f32[1,128], index: 4, kind: input, shape index: {}]   ;;  %s1878_s5 = inlined_call_operand.vmem [shape: f32[1,128], index: 5, kind: input, shape index: {}]   ;;  %s1879_s6 = inlined_call_operand.vmem [shape: f32[2,16,16,128], index: 6, kind: output, shape index: {}]  }
   0x1   :  { %s1565_s23 = smov 0  }
   0x2 LB: > { %s28_s24 = sadd.s32 1, %s1520_s22  ;;  %p1295_p0 = scmp.ge.s32.totalorder %s1524_s23, 1  ;;  %s1524_s23 = sphi %s1565_s23, %s16_s23   ;;  %s1520_s22 = sphi %s1563_s22, %s1881_s22   ;;  %s1516_s21 = sphi %s1561_s21, %s1880_s21  }
   0x3   : > { %p30_p1 = scmp.ge.s32.totalorder %s28_s24, 2  ;;  %p296_p2 = scmp.lt.s32.totalorder %s1524_s23, 3 }
   0x5   : > { %s1883_s24 = smov (%p30_p1, %s28_s24), 0  ;;  %p297_p3 = pnand %p1295_p0, %p296_p2 }
   0x6   : > { %p370_p4 = scmp.lt.s32.totalorder (!%p297_p3), %s1516_s21, 1 }
   0x7   : > { %300 = sbr.rel (%p297_p3) target bundleno = 353 (0x161), region = 44 }
   0xc   : > { %v1303_v0 = vld [vmem:[%s1876_s3 + $0x14] sm:$0xf]  ;;  %v463_v1 = vld [vmem:[%s1876_s3 + $0x8] sm:$0xf]  ;;  %v1414_v4 = vld [vmem:[%s1876_s3 + $0x20] sm:$0xf] }
   0xd   : > { %v553_v2 = vunpack.c.l.b16 %v1303_v0  ;;  %v709_v3 = vunpack.c.l.b16 %v463_v1  ;;  %vm606_vm0 = vcmask 1043456   ;;  %v822_v5 = vunpack.c.l.b16 %v1414_v4  ;;  %s1885_s21 = smov (!%p370_p4, %s1516_s21), 1  ;;  %v1465_v12 = vld [vmem:[%s1876_s3 + $0xc] sm:$0xff]  ;;  %v1464_v13 = vld [vmem:[%s1876_s3] sm:$0xff]  ;;  %v1466_v14 = vld [vmem:[%s1876_s3 + $0x18] sm:$0xff] }
   0xe   : > { %s1591_s7 = smul.u32 144, %s1885_s21  ;;  %vm557_vm1 = vcmask 195584   ;;  %v1682_v35 = vld [vmem:[%s1877_s4] ss:$0 sm:$0xff]  ;;  %s1445_s29 = sshll.u32 %s1885_s21, 8 }
   0xf   : > { %v555_v6 = vpack.c.b16 %v553_v2, %v553_v2  ;;  %v711_v7 = vpack.c.b16 %v709_v3, %v709_v3  ;;  %v824_v8 = vpack.c.b16 %v822_v5, %v822_v5  ;;  %v1687_v38 = vld [vmem:[%s1878_s5] ss:$0 sm:$0xff]  ;;  %s1695_s9 = scalar_lea.vmem %s1879_s6, %s1445_s29 }
  0x10   : > { %s1606_s16 = scalar_lea.vmem %s1873_s0, %s1591_s7  ;;  %s1442_s17 = sadd.s32 128, %s1591_s7 }
  0x11   : > { %v608_v9 = vsel %vm606_vm0, %v555_v6, 0  ;;  %v717_v10 = vsel %vm606_vm0, %v711_v7, 0  ;;  %v830_v11 = vsel %vm606_vm0, %v824_v8, 0  ;;  %v1447_v15 = vld [vmem:[%s1606_s16 + $0x8] sm:$0xff]  ;;  %v1446_v17 = vld [vmem:[%s1606_s16] sm:$0xff]  ;;  %v1448_v18 = vld [vmem:[%s1606_s16 + $0x10] sm:$0xff]  ;;  %s395_s20 = scalar_lea.vmem %s1874_s1, %s1442_s17 }
  0x12   : > { %616 = vmatpush.bf16.msra.mxu0 %v608_v9  ;;  %1467 = vmatpush.bf16.msra.mxu3 %v608_v9  ;;  %v1610_v16 = vld [vmem:[%s1606_s16 + $0x68] sm:$0xff]  ;;  %v1460_v19 = vld [vmem:[%s1606_s16 + $0x70] sm:$0xff]  ;;  %v1449_v20 = vld [vmem:[%s1606_s16 + $0x18] sm:$0xff]  ;;  %s1444_s21 = sadd.s32 136, %s1591_s7 }
  0x13   : > { %725 = vmatpush.bf16.msra.mxu1 %v717_v10  ;;  %838 = vmatpush.bf16.msra.mxu2 %v830_v11  ;;  %v1626_v21 = vld [vmem:[%s1606_s16 + $0x78] sm:$0xff]  ;;  %v1450_v22 = vld [vmem:[%s1606_s16 + $0x20] sm:$0xff]  ;;  %v1451_v24 = vld [vmem:[%s1606_s16 + $0x28] sm:$0xff]  ;;  %s409_s12 = scalar_lea.vmem %s1875_s2, %s1444_s21 }
  0x14   : > { %v1638_v23 = vld [vmem:[%s395_s20] sm:$0xff]  ;;  %v1452_v26 = vld [vmem:[%s1606_s16 + $0x30] sm:$0xff]  ;;  %v1453_v27 = vld [vmem:[%s1606_s16 + $0x38] sm:$0xff] }
  0x15   : > { %v1647_v25 = vld [vmem:[%s1606_s16 + $0x60] sm:$0xff]  ;;  %v1455_v29 = vld [vmem:[%s1606_s16 + $0x48] sm:$0xff]  ;;  %v1456_v31 = vld [vmem:[%s1606_s16 + $0x50] sm:$0xff] }
  0x16   : > { %617 = vmatpush.bf16.msra.mxu0 %v1465_v12  ;;  %1468 = vmatpush.bf16.msra.mxu3 %v1465_v12  ;;  %v1454_v28 = vld [vmem:[%s1606_s16 + $0x40] sm:$0xff]  ;;  %v1700_v50 = vld [vmem:[%s1606_s16 + $0x58] sm:$0xff] }
  0x17   : > { %726 = vmatpush.bf16.msra.mxu1 %v1464_v13  ;;  %839 = vmatpush.bf16.msra.mxu2 %v1466_v14 }
  0x19   : > { %1372 = vmatmul.msk.bf16.vlgmr.msra.gmra.mxu0 %vm557_vm1, %v1447_v15  ;;  %1384 = vmatmul.msk.bf16.vlgmr.msra.gmra.mxu3 %vm557_vm1, %v1610_v16 }
  0x1a   : > { %1469 = vmatpush.bf16.msrb.mxu3 %v717_v10  ;;  %1396 = vmatmul.msk.bf16.vlgmr.msra.gmra.mxu1 %vm557_vm1, %v1446_v17 }
  0x1b   : > { %1423 = vmatmul.msk.bf16.vlgmr.msra.gmra.mxu2 %vm557_vm1, %v1448_v18 }
  0x1e   : > { %1470 = vmatpush.bf16.msrb.mxu3 %v1464_v13 }
  0x22   : > { %1471 = vmatpush.bf16.msra.mxu3 %v830_v11 }
  0x26   : > { %1472 = vmatpush.bf16.msra.mxu3 %v1466_v14 }
  0x29   : > { %1373 = vmatmul.msk.bf16.gmra.mxu0 %vm557_vm1, %v1448_v18  ;;  %1385 = vmatmul.msk.bf16.gmra.mxu3 %vm557_vm1, %v1460_v19 }
  0x2a   : > { %1397 = vmatmul.msk.bf16.gmra.mxu1 %vm557_vm1, %v1447_v15 }
  0x2b   : > { %1424 = vmatmul.msk.bf16.gmra.mxu2 %vm557_vm1, %v1449_v20 }
  0x39   : > { %1374 = vmatmul.msk.bf16.gmra.mxu0 %vm557_vm1, %v1449_v20  ;;  %1386 = vmatmul.msk.bf16.gmra.mxu3 %vm557_vm1, %v1626_v21 }
  0x3a   : > { %1398 = vmatmul.msk.bf16.gmra.mxu1 %vm557_vm1, %v1448_v18 }
  0x3b   : > { %1425 = vmatmul.msk.bf16.gmra.mxu2 %vm557_vm1, %v1450_v22 }
  0x49   : > { %1375 = vmatmul.msk.bf16.gmra.mxu0 %vm557_vm1, %v1450_v22  ;;  %1387 = vmatmul.msk.bf16.gmra.mxu3 %vm557_vm1, %v1638_v23 }
  0x4a   : > { %1399 = vmatmul.msk.bf16.gmra.mxu1 %vm557_vm1, %v1449_v20 }
  0x4b   : > { %1426 = vmatmul.msk.bf16.gmra.mxu2 %vm557_vm1, %v1451_v24 }
  0x59   : > { %1376 = vmatmul.msk.bf16.gmra.mxu0 %vm557_vm1, %v1451_v24  ;;  %1408 = vmatmul.msk.bf16.vlgmr.msrb.gmra.mxu3 %vm557_vm1, %v1647_v25 }
  0x5a   : > { %1400 = vmatmul.msk.bf16.gmra.mxu1 %vm557_vm1, %v1450_v22 }
  0x5b   : > { %1427 = vmatmul.msk.bf16.gmra.mxu2 %vm557_vm1, %v1452_v26 }
  0x69   : > { %1377 = vmatmul.msk.bf16.gmra.mxu0 %vm557_vm1, %v1452_v26  ;;  %1409 = vmatmul.msk.bf16.gmra.mxu3 %vm557_vm1, %v1610_v16 }
  0x6a   : > { %1401 = vmatmul.msk.bf16.gmra.mxu1 %vm557_vm1, %v1451_v24 }
  0x6b   : > { %1428 = vmatmul.msk.bf16.gmra.mxu2 %vm557_vm1, %v1453_v27 }
  0x79   : > { %1378 = vmatmul.msk.bf16.gmra.mxu0 %vm557_vm1, %v1453_v27  ;;  %1410 = vmatmul.msk.bf16.gmra.mxu3 %vm557_vm1, %v1460_v19 }
  0x7a   : > { %1402 = vmatmul.msk.bf16.gmra.mxu1 %vm557_vm1, %v1452_v26  ;;  %v1463_v26 = vld [vmem:[%s409_s12] sm:$0xff] }
  0x7b   : > { %1429 = vmatmul.msk.bf16.gmra.mxu2 %vm557_vm1, %v1454_v28 }
  0x89   : > { %1379 = vmatmul.msk.bf16.gmra.mxu0 %vm557_vm1, %v1454_v28  ;;  %1411 = vmatmul.msk.bf16.gmra.mxu3 %vm557_vm1, %v1626_v21 }
  0x8a   : > { %1403 = vmatmul.msk.bf16.gmra.mxu1 %vm557_vm1, %v1453_v27 }
  0x8b   : > { %1430 = vmatmul.msk.bf16.gmra.mxu2 %vm557_vm1, %v1455_v29 }
  0x96   : > { %v619_v30 = vpop.f32.mrf.mxu0 }
  0x97   : > { %v728_v32 = vpop.f32.mrf.mxu1 }
  0x98   : > { %v729_v33 = vadd.f32 %v728_v32, %v619_v30 }
  0x99   : > { %1380 = vmatmul.msk.bf16.gmra.mxu0 %vm557_vm1, %v1455_v29  ;;  %1435 = vmatmul.msk.bf16.vlgmr.msra.gmra.mxu3 %vm557_vm1, %v1460_v19 }
  0x9a   : > { %1404 = vmatmul.msk.bf16.gmra.mxu1 %vm557_vm1, %v1454_v28 }
  0x9b   : > { %1431 = vmatmul.msk.bf16.gmra.mxu2 %vm557_vm1, %v1456_v31 }
  0x9c   : > { %v1677_v34 = vpop.f32.mrf.mxu3 }
  0x9e   : > { %v841_v36 = vpop.f32.mrf.mxu2  ;;  %v621_v39 = vpop.f32.mrf.mxu0 }
  0x9f   : > { %v921_v37 = vadd.f32 %v841_v36, %v729_v33  ;;  %v730_v40 = vpop.f32.mrf.mxu1 }
  0xa0   : > { %v731_v44 = vadd.f32 %v730_v40, %v621_v39 }
  0xa1   : > { %v957_v41 = vmul.f32 %v1682_v35, %v921_v37 }
  0xa3   : > { %v993_v42 = vadd.f32 %v1687_v38, %v957_v41 }
  0xa4   : > { %v1697_v45 = vpop.f32.mrf.mxu3 }
  0xa5   : > { %vm1025_vm2 = vcmp.gt.f32.partialorder %v993_v42, 0.0  ;;  %v1057_v43 = vmul.f32 0.2, %v993_v42 }
  0xa6   : > { %v843_v46 = vpop.f32.mrf.mxu2  ;;  %v624_v49 = vpop.f32.mrf.mxu0 }
  0xa7   : > { %v1089_v47 = vsel %vm1025_vm2, %v993_v42, %v1057_v43  ;;  %v922_v48 = vadd.f32 %v843_v46, %v731_v44  ;;  %v733_v51 = vpop.f32.mrf.mxu1 }
  0xa8   : > { %1121 = vst [vmem:[%s1695_s9] sm:$0xff] %v1089_v47  ;;  %v734_v54 = vadd.f32 %v733_v51, %v624_v49 }
  0xa9   : > { %v958_v52 = vmul.f32 %v1682_v35, %v922_v48  ;;  %1381 = vmatmul.msk.bf16.gmra.mxu0 %vm557_vm1, %v1456_v31  ;;  %1436 = vmatmul.msk.bf16.gmra.mxu3 %vm557_vm1, %v1626_v21 }
  0xaa   : > { %1405 = vmatmul.msk.bf16.gmra.mxu1 %vm557_vm1, %v1455_v29 }
  0xab   : > { %v994_v53 = vadd.f32 %v1687_v38, %v958_v52  ;;  %1432 = vmatmul.msk.bf16.gmra.mxu2 %vm557_vm1, %v1700_v50 }
  0xac   : > { %v1711_v56 = vpop.f32.mrf.mxu3 }
  0xad   : > { %vm1026_vm3 = vcmp.gt.f32.partialorder %v994_v53, 0.0  ;;  %v1058_v55 = vmul.f32 0.2, %v994_v53 }
  0xae   : > { %v846_v57 = vpop.f32.mrf.mxu2  ;;  %v626_v60 = vpop.f32.mrf.mxu0 }
  0xaf   : > { %v1090_v58 = vsel %vm1026_vm3, %v994_v53, %v1058_v55  ;;  %v923_v59 = vadd.f32 %v846_v57, %v734_v54  ;;  %v735_v61 = vpop.f32.mrf.mxu1 }
  0xb0   : > { %1122 = vst [vmem:[%s1695_s9 + $0x8] sm:$0xff] %v1090_v58  ;;  %v736_v1 = vadd.f32 %v735_v61, %v626_v60 }
  0xb1   : > { %v959_v62 = vmul.f32 %v1682_v35, %v923_v59 }
  0xb3   : > { %v995_v63 = vadd.f32 %v1687_v38, %v959_v62 }
  0xb4   : > { %v1716_v2 = vpop.f32.mrf.mxu3 }
  0xb5   : > { %vm1027_vm4 = vcmp.gt.f32.partialorder %v995_v63, 0.0  ;;  %v1059_v0 = vmul.f32 0.2, %v995_v63 }
  0xb6   : > { %v848_v3 = vpop.f32.mrf.mxu2  ;;  %v629_v6 = vpop.f32.mrf.mxu0 }
  0xb7   : > { %v1091_v4 = vsel %vm1027_vm4, %v995_v63, %v1059_v0  ;;  %v924_v5 = vadd.f32 %v848_v3, %v736_v1  ;;  %v738_v7 = vpop.f32.mrf.mxu1 }
  0xb8   : > { %1123 = vst [vmem:[%s1695_s9 + $0x10] sm:$0xff] %v1091_v4  ;;  %v739_v10 = vadd.f32 %v738_v7, %v629_v6 }
  0xb9   : > { %v960_v8 = vmul.f32 %v1682_v35, %v924_v5  ;;  %1382 = vmatmul.msk.bf16.gmra.mxu0 %vm557_vm1, %v1700_v50  ;;  %1437 = vmatmul.msk.bf16.gmra.mxu3 %vm557_vm1, %v1638_v23 }
  0xba   : > { %1406 = vmatmul.msk.bf16.gmra.mxu1 %vm557_vm1, %v1456_v31 }
  0xbb   : > { %v996_v9 = vadd.f32 %v1687_v38, %v960_v8  ;;  %1433 = vmatmul.msk.bf16.gmra.mxu2 %vm557_vm1, %v1647_v25 }
  0xbc   : > { %v1728_v12 = vpop.f32.mrf.mxu3 }
  0xbd   : > { %vm1028_vm5 = vcmp.gt.f32.partialorder %v996_v9, 0.0  ;;  %v1060_v11 = vmul.f32 0.2, %v996_v9 }
  0xbe   : > { %v851_v13 = vpop.f32.mrf.mxu2  ;;  %v631_v17 = vpop.f32.mrf.mxu0 }
  0xbf   : > { %v1092_v14 = vsel %vm1028_vm5, %v996_v9, %v1060_v11  ;;  %v925_v15 = vadd.f32 %v851_v13, %v739_v10  ;;  %v740_v18 = vpop.f32.mrf.mxu1 }
  0xc0   : > { %1124 = vst [vmem:[%s1695_s9 + $0x18] sm:$0xff] %v1092_v14  ;;  %v741_v22 = vadd.f32 %v740_v18, %v631_v17 }
  0xc1   : > { %v961_v19 = vmul.f32 %v1682_v35, %v925_v15 }
  0xc3   : > { %v997_v20 = vadd.f32 %v1687_v38, %v961_v19 }
  0xc4   : > { %v1737_v23 = vpop.f32.mrf.mxu3 }
  0xc5   : > { %vm1029_vm6 = vcmp.gt.f32.partialorder %v997_v20, 0.0  ;;  %v1061_v21 = vmul.f32 0.2, %v997_v20 }
  0xc6   : > { %v853_v24 = vpop.f32.mrf.mxu2  ;;  %v634_v29 = vpop.f32.mrf.mxu0 }
  0xc7   : > { %v1093_v27 = vsel %vm1029_vm6, %v997_v20, %v1061_v21  ;;  %v926_v28 = vadd.f32 %v853_v24, %v741_v22  ;;  %v743_v30 = vpop.f32.mrf.mxu1 }
  0xc8   : > { %1125 = vst [vmem:[%s1695_s9 + $0x20] sm:$0xff] %v1093_v27  ;;  %v744_v33 = vadd.f32 %v743_v30, %v634_v29 }
  0xc9   : > { %v962_v31 = vmul.f32 %v1682_v35, %v926_v28  ;;  %1383 = vmatmul.msk.bf16.gmra.mxu0 %vm557_vm1, %v1647_v25  ;;  %1438 = vmatmul.msk.bf16.gmra.mxu3 %vm557_vm1, %v1463_v26 }
  0xca   : > { %1407 = vmatmul.msk.bf16.gmra.mxu1 %vm557_vm1, %v1700_v50 }
  0xcb   : > { %v998_v32 = vadd.f32 %v1687_v38, %v962_v31  ;;  %1434 = vmatmul.msk.bf16.gmra.mxu2 %vm557_vm1, %v1610_v16 }
  0xcc   : > { %v1749_v37 = vpop.f32.mrf.mxu3 }
  0xcd   : > { %vm1030_vm7 = vcmp.gt.f32.partialorder %v998_v32, 0.0  ;;  %v1062_v36 = vmul.f32 0.2, %v998_v32 }
  0xce   : > { %v856_v39 = vpop.f32.mrf.mxu2  ;;  %v636_v25 = vpop.f32.mrf.mxu0 }
  0xcf   : > { %v1094_v40 = vsel %vm1030_vm7, %v998_v32, %v1062_v36  ;;  %v927_v41 = vadd.f32 %v856_v39, %v744_v33  ;;  %v745_v42 = vpop.f32.mrf.mxu1 }
  0xd0   : > { %1126 = vst [vmem:[%s1695_s9 + $0x28] sm:$0xff] %v1094_v40  ;;  %v746_v47 = vadd.f32 %v745_v42, %v636_v25 }
  0xd1   : > { %v963_v43 = vmul.f32 %v1682_v35, %v927_v41 }
  0xd3   : > { %v999_v44 = vadd.f32 %v1687_v38, %v963_v43 }
  0xd4   : > { %v1754_v48 = vpop.f32.mrf.mxu3 }
  0xd5   : > { %vm1031_vm8 = vcmp.gt.f32.partialorder %v999_v44, 0.0  ;;  %v1063_v46 = vmul.f32 0.2, %v999_v44 }
  0xd6   : > { %v858_v16 = vpop.f32.mrf.mxu2  ;;  %v639_v51 = vpop.f32.mrf.mxu0 }
  0xd7   : > { %v1095_v49 = vsel %vm1031_vm8, %v999_v44, %v1063_v46  ;;  %v928_v50 = vadd.f32 %v858_v16, %v746_v47  ;;  %v748_v52 = vpop.f32.mrf.mxu1 }
  0xd8   : > { %1127 = vst [vmem:[%s1695_s9 + $0x30] sm:$0xff] %v1095_v49  ;;  %v749_v55 = vadd.f32 %v748_v52, %v639_v51 }
  0xd9   : > { %v964_v53 = vmul.f32 %v1682_v35, %v928_v50 }
  0xdb   : > { %v1000_v54 = vadd.f32 %v1687_v38, %v964_v53 }
  0xdc   : > { %v1759_v58 = vpop.f32.mrf.mxu3 }
  0xdd   : > { %vm1032_vm9 = vcmp.gt.f32.partialorder %v1000_v54, 0.0  ;;  %v1064_v57 = vmul.f32 0.2, %v1000_v54 }
  0xde   : > { %v861_v59 = vpop.f32.mrf.mxu2  ;;  %v641_v62 = vpop.f32.mrf.mxu0 }
  0xdf   : > { %v1096_v60 = vsel %vm1032_vm9, %v1000_v54, %v1064_v57  ;;  %v929_v61 = vadd.f32 %v861_v59, %v749_v55  ;;  %v750_v63 = vpop.f32.mrf.mxu1 }
  0xe0   : > { %1128 = vst [vmem:[%s1695_s9 + $0x38] sm:$0xff] %v1096_v60  ;;  %v751_v4 = vadd.f32 %v750_v63, %v641_v62 }
  0xe1   : > { %v965_v0 = vmul.f32 %v1682_v35, %v929_v61 }
  0xe3   : > { %v1001_v1 = vadd.f32 %v1687_v38, %v965_v0 }
  0xe4   : > { %v1764_v5 = vpop.f32.mrf.mxu3 }
  0xe5   : > { %vm1033_vm10 = vcmp.gt.f32.partialorder %v1001_v1, 0.0  ;;  %v1065_v3 = vmul.f32 0.2, %v1001_v1 }
  0xe6   : > { %v863_v6 = vpop.f32.mrf.mxu2  ;;  %v644_v9 = vpop.f32.mrf.mxu0 }
  0xe7   : > { %v1097_v7 = vsel %vm1033_vm10, %v1001_v1, %v1065_v3  ;;  %v930_v8 = vadd.f32 %v863_v6, %v751_v4  ;;  %v753_v10 = vpop.f32.mrf.mxu1 }
  0xe8   : > { %1129 = vst [vmem:[%s1695_s9 + $0x40] sm:$0xff] %v1097_v7  ;;  %v754_v14 = vadd.f32 %v753_v10, %v644_v9 }
  0xe9   : > { %v966_v11 = vmul.f32 %v1682_v35, %v930_v8 }
  0xeb   : > { %v1002_v13 = vadd.f32 %v1687_v38, %v966_v11 }
  0xec   : > { %v1769_v17 = vpop.f32.mrf.mxu3 }
  0xed   : > { %vm1034_vm11 = vcmp.gt.f32.partialorder %v1002_v13, 0.0  ;;  %v1066_v15 = vmul.f32 0.2, %v1002_v13 }
  0xee   : > { %v866_v18 = vpop.f32.mrf.mxu2  ;;  %v646_v21 = vpop.f32.mrf.mxu0 }
  0xef   : > { %v1098_v19 = vsel %vm1034_vm11, %v1002_v13, %v1066_v15  ;;  %v931_v20 = vadd.f32 %v866_v18, %v754_v14  ;;  %v755_v22 = vpop.f32.mrf.mxu1 }
  0xf0   : > { %1130 = vst [vmem:[%s1695_s9 + $0x48] sm:$0xff] %v1098_v19  ;;  %v756_v28 = vadd.f32 %v755_v22, %v646_v21 }
  0xf1   : > { %v967_v24 = vmul.f32 %v1682_v35, %v931_v20 }
  0xf3   : > { %v1003_v26 = vadd.f32 %v1687_v38, %v967_v24 }
  0xf4   : > { %v1774_v29 = vpop.f32.mrf.mxu3 }
  0xf5   : > { %vm1035_vm12 = vcmp.gt.f32.partialorder %v1003_v26, 0.0  ;;  %v1067_v27 = vmul.f32 0.2, %v1003_v26 }
  0xf6   : > { %v868_v30 = vpop.f32.mrf.mxu2  ;;  %v649_v33 = vpop.f32.mrf.mxu0 }
  0xf7   : > { %v1099_v31 = vsel %vm1035_vm12, %v1003_v26, %v1067_v27  ;;  %v932_v32 = vadd.f32 %v868_v30, %v756_v28  ;;  %v758_v36 = vpop.f32.mrf.mxu1  ;;  %v789_v27 = vadd.f32 %v1759_v58, %v1677_v34  ;;  %v791_v58 = vadd.f32 %v1764_v5, %v1697_v45 }
  0xf8   : > { %1131 = vst [vmem:[%s1695_s9 + $0x50] sm:$0xff] %v1099_v31  ;;  %v759_v41 = vadd.f32 %v758_v36, %v649_v33 }
  0xf9   : > { %v968_v39 = vmul.f32 %v1682_v35, %v932_v32 }
  0xfb   : > { %v1004_v40 = vadd.f32 %v1687_v38, %v968_v39 }
  0xfc   : > { %v1779_v42 = vpop.f32.mrf.mxu3 }
  0xfd   : > { %vm1036_vm13 = vcmp.gt.f32.partialorder %v1004_v40, 0.0  ;;  %v1068_v25 = vmul.f32 0.2, %v1004_v40 }
  0xfe   : > { %v871_v43 = vpop.f32.mrf.mxu2  ;;  %v651_v47 = vpop.f32.mrf.mxu0 }
  0xff   : > { %v1100_v44 = vsel %vm1036_vm13, %v1004_v40, %v1068_v25  ;;  %v933_v46 = vadd.f32 %v871_v43, %v759_v41  ;;  %v760_v16 = vpop.f32.mrf.mxu1 }
 0x100   : > { %1132 = vst [vmem:[%s1695_s9 + $0x58] sm:$0xff] %v1100_v44  ;;  %v761_v52 = vadd.f32 %v760_v16, %v651_v47 }
 0x101   : > { %v969_v49 = vmul.f32 %v1682_v35, %v933_v46 }
 0x103   : > { %v1005_v50 = vadd.f32 %v1687_v38, %v969_v49 }
 0x104   : > { %v1784_v53 = vpop.f32.mrf.mxu3 }
 0x105   : > { %vm1037_vm14 = vcmp.gt.f32.partialorder %v1005_v50, 0.0  ;;  %v1069_v51 = vmul.f32 0.2, %v1005_v50 }
 0x106   : > { %v873_v54 = vpop.f32.mrf.mxu2  ;;  %v654_v59 = vpop.f32.mrf.mxu0 }
 0x107   : > { %v1101_v55 = vsel %vm1037_vm14, %v1005_v50, %v1069_v51  ;;  %v934_v57 = vadd.f32 %v873_v54, %v761_v52  ;;  %v763_v60 = vpop.f32.mrf.mxu1 }
 0x108   : > { %1133 = vst [vmem:[%s1695_s9 + $0x60] sm:$0xff] %v1101_v55  ;;  %v764_v63 = vadd.f32 %v763_v60, %v654_v59 }
 0x109   : > { %v970_v61 = vmul.f32 %v1682_v35, %v934_v57 }
 0x10b   : > { %v1006_v62 = vadd.f32 %v1687_v38, %v970_v61 }
 0x10c   : > { %v1789_v1 = vpop.f32.mrf.mxu3 }
 0x10d   : > { %vm1038_vm15 = vcmp.gt.f32.partialorder %v1006_v62, 0.0  ;;  %v1070_v0 = vmul.f32 0.2, %v1006_v62 }
 0x10e   : > { %v876_v3 = vpop.f32.mrf.mxu2  ;;  %v656_v7 = vpop.f32.mrf.mxu0 }
 0x10f   : > { %v1102_v4 = vsel %vm1038_vm15, %v1006_v62, %v1070_v0  ;;  %v935_v6 = vadd.f32 %v876_v3, %v764_v63  ;;  %v765_v8 = vpop.f32.mrf.mxu1  ;;  %v794_v62 = vadd.f32 %v1769_v17, %v1711_v56 }
 0x110   : > { %1134 = vst [vmem:[%s1695_s9 + $0x68] sm:$0xff] %v1102_v4  ;;  %v766_v13 = vadd.f32 %v765_v8, %v656_v7 }
 0x111   : > { %v971_v9 = vmul.f32 %v1682_v35, %v935_v6 }
 0x113   : > { %v1007_v10 = vadd.f32 %v1687_v38, %v971_v9 }
 0x114   : > { %v1794_v14 = vpop.f32.mrf.mxu3 }
 0x115   : > { %vm1039_vm0 = vcmp.gt.f32.partialorder %v1007_v10, 0.0  ;;  %v1071_v11 = vmul.f32 0.2, %v1007_v10 }
 0x116   : > { %v878_v15 = vpop.f32.mrf.mxu2  ;;  %v659_v20 = vpop.f32.mrf.mxu0 }
 0x117   : > { %v1103_v18 = vsel %vm1039_vm0, %v1007_v10, %v1071_v11  ;;  %v936_v19 = vadd.f32 %v878_v15, %v766_v13  ;;  %v768_v21 = vpop.f32.mrf.mxu1 }
 0x118   : > { %1135 = vst [vmem:[%s1695_s9 + $0x70] sm:$0xff] %v1103_v18  ;;  %v769_v26 = vadd.f32 %v768_v21, %v659_v20  ;;  %v796_v18 = vadd.f32 %v1774_v29, %v1716_v2 }
 0x119   : > { %v972_v22 = vmul.f32 %v1682_v35, %v936_v19 }
 0x11b   : > { %v1008_v24 = vadd.f32 %v1687_v38, %v972_v22 }
 0x11c   : > { %v901_v30 = vpop.f32.mrf.mxu3 }
 0x11d   : > { %vm1040_vm1 = vcmp.gt.f32.partialorder %v1008_v24, 0.0  ;;  %v1072_v28 = vmul.f32 0.2, %v1008_v24  ;;  %v945_v32 = vadd.f32 %v901_v30, %v789_v27 }
 0x11e   : > { %v881_v31 = vpop.f32.mrf.mxu2  ;;  %v661_v39 = vpop.f32.mrf.mxu0 }
 0x11f   : > { %v1104_v33 = vsel %vm1040_vm1, %v1008_v24, %v1072_v28  ;;  %v937_v36 = vadd.f32 %v881_v31, %v769_v26  ;;  %v981_v40 = vmul.f32 %v1682_v35, %v945_v32  ;;  %v770_v41 = vpop.f32.mrf.mxu1 }
 0x120   : > { %1136 = vst [vmem:[%s1695_s9 + $0x78] sm:$0xff] %v1104_v33  ;;  %v771_v47 = vadd.f32 %v770_v41, %v661_v39 }
 0x121   : > { %v973_v25 = vmul.f32 %v1682_v35, %v937_v36  ;;  %v1017_v43 = vadd.f32 %v1687_v38, %v981_v40  ;;  %v799_v40 = vadd.f32 %v1779_v42, %v1728_v12 }
 0x123   : > { %v1009_v34 = vadd.f32 %v1687_v38, %v973_v25  ;;  %vm1049_vm2 = vcmp.gt.f32.partialorder %v1017_v43, 0.0  ;;  %v1081_v44 = vmul.f32 0.2, %v1017_v43 }
 0x124   : > { %v903_v16 = vpop.f32.mrf.mxu3 }
 0x125   : > { %vm1041_vm3 = vcmp.gt.f32.partialorder %v1009_v34, 0.0  ;;  %v1073_v46 = vmul.f32 0.2, %v1009_v34  ;;  %v1113_v49 = vsel %vm1049_vm2, %v1017_v43, %v1081_v44  ;;  %v946_v51 = vadd.f32 %v903_v16, %v791_v58 }
 0x126   : > { %v883_v50 = vpop.f32.mrf.mxu2  ;;  %1145 = vst [vmem:[%s1695_s9 + $0xc0] sm:$0xff] %v1113_v49  ;;  %v664_v55 = vpop.f32.mrf.mxu0 }
 0x127   : > { %v1105_v52 = vsel %vm1041_vm3, %v1009_v34, %v1073_v46  ;;  %v938_v54 = vadd.f32 %v883_v50, %v771_v47  ;;  %v982_v57 = vmul.f32 %v1682_v35, %v946_v51  ;;  %v773_v59 = vpop.f32.mrf.mxu1 }
 0x128   : > { %1137 = vst [vmem:[%s1695_s9 + $0x80] sm:$0xff] %v1105_v52  ;;  %v774_v61 = vadd.f32 %v773_v59, %v664_v55  ;;  %v801_v52 = vadd.f32 %v1784_v53, %v1737_v23 }
 0x129   : > { %v974_v45 = vmul.f32 %v1682_v35, %v938_v54  ;;  %v1018_v5 = vadd.f32 %v1687_v38, %v982_v57 }
 0x12b   : > { %v1010_v60 = vadd.f32 %v1687_v38, %v974_v45  ;;  %vm1050_vm4 = vcmp.gt.f32.partialorder %v1018_v5, 0.0  ;;  %v1082_v63 = vmul.f32 0.2, %v1018_v5 }
 0x12c   : > { %v906_v3 = vpop.f32.mrf.mxu3 }
 0x12d   : > { %vm1042_vm5 = vcmp.gt.f32.partialorder %v1010_v60, 0.0  ;;  %v1074_v0 = vmul.f32 0.2, %v1010_v60  ;;  %v1114_v4 = vsel %vm1050_vm4, %v1018_v5, %v1082_v63  ;;  %v947_v7 = vadd.f32 %v906_v3, %v794_v62 }
 0x12e   : > { %v886_v6 = vpop.f32.mrf.mxu2  ;;  %1146 = vst [vmem:[%s1695_s9 + $0xc8] sm:$0xff] %v1114_v4  ;;  %v666_v10 = vpop.f32.mrf.mxu0 }
 0x12f   : > { %v1106_v8 = vsel %vm1042_vm5, %v1010_v60, %v1074_v0  ;;  %v939_v9 = vadd.f32 %v886_v6, %v774_v61  ;;  %v983_v11 = vmul.f32 %v1682_v35, %v947_v7  ;;  %v775_v13 = vpop.f32.mrf.mxu1  ;;  %v804_v7 = vadd.f32 %v1789_v1, %v1749_v37 }
 0x130   : > { %1138 = vst [vmem:[%s1695_s9 + $0x88] sm:$0xff] %v1106_v8  ;;  %v776_v21 = vadd.f32 %v775_v13, %v666_v10 }
 0x131   : > { %v975_v15 = vmul.f32 %v1682_v35, %v939_v9  ;;  %v1019_v56 = vadd.f32 %v1687_v38, %v983_v11 }
 0x133   : > { %v1011_v17 = vadd.f32 %v1687_v38, %v975_v15  ;;  %vm1051_vm6 = vcmp.gt.f32.partialorder %v1019_v56, 0.0  ;;  %v1083_v19 = vmul.f32 0.2, %v1019_v56 }
 0x134   : > { %v908_v22 = vpop.f32.mrf.mxu3 }
 0x135   : > { %vm1043_vm7 = vcmp.gt.f32.partialorder %v1011_v17, 0.0  ;;  %v1075_v20 = vmul.f32 0.2, %v1011_v17  ;;  %v1115_v24 = vsel %vm1051_vm6, %v1019_v56, %v1083_v19  ;;  %v948_v27 = vadd.f32 %v908_v22, %v796_v18 }
 0x136   : > { %v888_v26 = vpop.f32.mrf.mxu2  ;;  %1147 = vst [vmem:[%s1695_s9 + $0xd0] sm:$0xff] %v1115_v24  ;;  %v669_v31 = vpop.f32.mrf.mxu0  ;;  %v806_v22 = vadd.f32 %v1794_v14, %v1754_v48 }
 0x137   : > { %v1107_v28 = vsel %vm1043_vm7, %v1011_v17, %v1075_v20  ;;  %v940_v30 = vadd.f32 %v888_v26, %v776_v21  ;;  %v984_v32 = vmul.f32 %v1682_v35, %v948_v27  ;;  %v778_v33 = vpop.f32.mrf.mxu1 }
 0x138   : > { %1139 = vst [vmem:[%s1695_s9 + $0x90] sm:$0xff] %v1107_v28  ;;  %v779_v39 = vadd.f32 %v778_v33, %v669_v31 }
 0x139   : > { %v976_v2 = vmul.f32 %v1682_v35, %v940_v30  ;;  %v1020_v29 = vadd.f32 %v1687_v38, %v984_v32 }
 0x13b   : > { %v1012_v36 = vadd.f32 %v1687_v38, %v976_v2  ;;  %vm1052_vm8 = vcmp.gt.f32.partialorder %v1020_v29, 0.0  ;;  %v1084_v41 = vmul.f32 0.2, %v1020_v29 }
 0x13c   : > { %v911_v43 = vpop.f32.mrf.mxu3 }
 0x13d   : > { %vm1044_vm9 = vcmp.gt.f32.partialorder %v1012_v36, 0.0  ;;  %v1076_v25 = vmul.f32 0.2, %v1012_v36  ;;  %v1116_v34 = vsel %vm1052_vm8, %v1020_v29, %v1084_v41  ;;  %v949_v44 = vadd.f32 %v911_v43, %v799_v40 }
 0x13e   : > { %v891_v58 = vpop.f32.mrf.mxu2  ;;  %1148 = vst [vmem:[%s1695_s9 + $0xd8] sm:$0xff] %v1116_v34  ;;  %v671_v16 = vpop.f32.mrf.mxu0 }
 0x13f   : > { %v1108_v46 = vsel %vm1044_vm9, %v1012_v36, %v1076_v25  ;;  %v941_v47 = vadd.f32 %v891_v58, %v779_v39  ;;  %v985_v49 = vmul.f32 %v1682_v35, %v949_v44  ;;  %v780_v50 = vpop.f32.mrf.mxu1 }
 0x140   : > { %1140 = vst [vmem:[%s1695_s9 + $0x98] sm:$0xff] %v1108_v46  ;;  %v781_v57 = vadd.f32 %v780_v50, %v671_v16 }
 0x141   : > { %v977_v51 = vmul.f32 %v1682_v35, %v941_v47  ;;  %v1021_v12 = vadd.f32 %v1687_v38, %v985_v49 }
 0x143   : > { %v1013_v42 = vadd.f32 %v1687_v38, %v977_v51  ;;  %vm1053_vm10 = vcmp.gt.f32.partialorder %v1021_v12, 0.0  ;;  %v1085_v54 = vmul.f32 0.2, %v1021_v12 }
 0x144   : > { %v913_v59 = vpop.f32.mrf.mxu3 }
 0x145   : > { %vm1045_vm11 = vcmp.gt.f32.partialorder %v1013_v42, 0.0  ;;  %v1077_v55 = vmul.f32 0.2, %v1013_v42  ;;  %v1117_v45 = vsel %vm1053_vm10, %v1021_v12, %v1085_v54  ;;  %v950_v60 = vadd.f32 %v913_v59, %v801_v52 }
 0x146   : > { %v893_v5 = vpop.f32.mrf.mxu2  ;;  %1149 = vst [vmem:[%s1695_s9 + $0xe0] sm:$0xff] %v1117_v45  ;;  %v674_v0 = vpop.f32.mrf.mxu0 }
 0x147   : > { %v1109_v61 = vsel %vm1045_vm11, %v1013_v42, %v1077_v55  ;;  %v942_v62 = vadd.f32 %v893_v5, %v781_v57  ;;  %v986_v63 = vmul.f32 %v1682_v35, %v950_v60  ;;  %v783_v3 = vpop.f32.mrf.mxu1 }
 0x148   : > { %1141 = vst [vmem:[%s1695_s9 + $0xa0] sm:$0xff] %v1109_v61  ;;  %v784_v6 = vadd.f32 %v783_v3, %v674_v0 }
 0x149   : > { %v978_v23 = vmul.f32 %v1682_v35, %v942_v62  ;;  %v1022_v53 = vadd.f32 %v1687_v38, %v986_v63 }
 0x14b   : > { %v1014_v4 = vadd.f32 %v1687_v38, %v978_v23  ;;  %vm1054_vm12 = vcmp.gt.f32.partialorder %v1022_v53, 0.0  ;;  %v1086_v8 = vmul.f32 0.2, %v1022_v53 }
 0x14c   : > { %v916_v10 = vpop.f32.mrf.mxu3 }
 0x14d   : > { %vm1046_vm13 = vcmp.gt.f32.partialorder %v1014_v4, 0.0  ;;  %v1078_v9 = vmul.f32 0.2, %v1014_v4  ;;  %v1118_v11 = vsel %vm1054_vm12, %v1022_v53, %v1086_v8  ;;  %v951_v15 = vadd.f32 %v916_v10, %v804_v7 }
 0x14e   : > { %v896_v13 = vpop.f32.mrf.mxu2  ;;  %1150 = vst [vmem:[%s1695_s9 + $0xe8] sm:$0xff] %v1118_v11  ;;  %v676_v37 = vpop.f32.mrf.mxu0 }
 0x14f   : > { %v1110_v56 = vsel %vm1046_vm13, %v1014_v4, %v1078_v9  ;;  %v943_v17 = vadd.f32 %v896_v13, %v784_v6  ;;  %v987_v18 = vmul.f32 %v1682_v35, %v951_v15  ;;  %v785_v1 = vpop.f32.mrf.mxu1 }
 0x150   : > { %1142 = vst [vmem:[%s1695_s9 + $0xa8] sm:$0xff] %v1110_v56  ;;  %v786_v27 = vadd.f32 %v785_v1, %v676_v37 }
 0x151   : > { %v979_v19 = vmul.f32 %v1682_v35, %v943_v17  ;;  %v1023_v20 = vadd.f32 %v1687_v38, %v987_v18 }
 0x153   : > { %v1015_v21 = vadd.f32 %v1687_v38, %v979_v19  ;;  %vm1055_vm14 = vcmp.gt.f32.partialorder %v1023_v20, 0.0  ;;  %v1087_v24 = vmul.f32 0.2, %v1023_v20 }
 0x154   : > { %v918_v28 = vpop.f32.mrf.mxu3 }
 0x155   : > { %vm1047_vm15 = vcmp.gt.f32.partialorder %v1015_v21, 0.0  ;;  %v1079_v26 = vmul.f32 0.2, %v1015_v21  ;;  %v1119_v30 = vsel %vm1055_vm14, %v1023_v20, %v1087_v24  ;;  %v952_v32 = vadd.f32 %v918_v28, %v806_v22 }
 0x156   : > { %v898_v31 = vpop.f32.mrf.mxu2  ;;  %1151 = vst [vmem:[%s1695_s9 + $0xf0] sm:$0xff] %v1119_v30 }
 0x157   : > { %v1111_v33 = vsel %vm1047_vm15, %v1015_v21, %v1079_v26  ;;  %v944_v2 = vadd.f32 %v898_v31, %v786_v27  ;;  %v988_v29 = vmul.f32 %v1682_v35, %v952_v32 }
 0x158   : > { %1143 = vst [vmem:[%s1695_s9 + $0xb0] sm:$0xff] %v1111_v33 }
 0x159   : > { %v980_v36 = vmul.f32 %v1682_v35, %v944_v2  ;;  %v1024_v48 = vadd.f32 %v1687_v38, %v988_v29 }
 0x15b   : > { %v1016_v14 = vadd.f32 %v1687_v38, %v980_v36  ;;  %vm1056_vm0 = vcmp.gt.f32.partialorder %v1024_v48, 0.0  ;;  %v1088_v39 = vmul.f32 0.2, %v1024_v48 }
 0x15d   : > { %vm1048_vm1 = vcmp.gt.f32.partialorder %v1016_v14, 0.0  ;;  %v1080_v40 = vmul.f32 0.2, %v1016_v14  ;;  %v1120_v41 = vsel %vm1056_vm0, %v1024_v48, %v1088_v39 }
 0x15e   : > { %1152 = vst [vmem:[%s1695_s9 + $0xf8] sm:$0xff] %v1120_v41 }
 0x15f   : > { %v1112_v25 = vsel %vm1048_vm1, %v1016_v14, %v1080_v40 }
 0x160   : > { %1144 = vst [vmem:[%s1695_s9 + $0xb8] sm:$0xff] %v1112_v25 }
 0x161 PF: > { %s16_s23 = sadd.s32 1, %s1524_s23   ;;  %s1880_s21 = smov %s1520_s22 }
 0x162   : > { %p13_p5 = scmp.ge.s32.totalorder %s16_s23, 4   ;;  %s1881_s22 = smov %s1883_s24 }
 0x164   :  { %15 = sbr.rel (!%p13_p5) target bundleno = 2 (0x2), region = 82 }

</bundles_post_ra>
